<compile_context>
chip_gen: v7x
topology: tpu7x:2x2x1
jax: 0.10.0
libtpu: 0.0.40
codegen_flags: <defaults>
</compile_context>

<pallas_src>
import jax
import jax.numpy as jnp
from jax.experimental import pallas as pl
from jax.experimental.pallas import tpu as pltpu

# ---- config (mirrors __C) ----------------------------------------------------
B = 2             # batch
T = 8             # sequence length
TOKEN_SIZE = 50   # token_size
E = 32            # WORD_EMBED_SIZE
H = 32            # HIDDEN_SIZE
NH = 4            # MULTI_HEAD
HH = H // NH      # HIDDEN_SIZE_HEAD
FF = 64           # FF_SIZE
N_SA = 2          # N_SA
FM = 64           # FLAT_MLP_SIZE
G = 1             # FLAT_GLIMPSES
FO = 64           # FLAT_OUT_SIZE
LN_EPS = 1e-6
NEG = -1e9


def _layer_norm(x, gamma, beta):
    # MCAN-style LayerNorm: gamma * (x - mean) / (std + eps) + beta, unbiased std (ddof=1)
    mean = jnp.mean(x, axis=-1, keepdims=True)
    d = x - mean
    var = jnp.sum(d * d, axis=-1, keepdims=True) * (1.0 / (x.shape[-1] - 1))
    inv = pl.reciprocal(jnp.sqrt(var) + LN_EPS, approx=True)   # EUP slot, nearly free
    return gamma * (d * inv) + beta


def lstm_sa_kernel(
    x_emb_ref, mask_ref,
    gru_wih_ref, gru_whh_ref, gru_bih_ref, gru_bhh_ref,
    sa_qkv_w_ref, sa_qkv_b_ref, sa_merge_w_ref, sa_merge_b_ref,
    sa_ffn_w1_ref, sa_ffn_b1_ref, sa_ffn_w2_ref, sa_ffn_b2_ref,
    sa_ln_ref,
    flat_w1_ref, flat_b1_ref, flat_w2_ref, flat_b2_ref,
    flat_mw_ref, flat_mb_ref,
    flat_out_ref, lang_out_ref,
    hs_ref,                          # VMEM scratch [B, T, H] for the GRU history
):
    f32 = jnp.float32
    xe = x_emb_ref[...]            # [B, T, E]
    maskf = mask_ref[...]          # [B, T]   1.0 = padding token

    # ---------------- GRU (single layer, batch_first, h0 = 0) ----------------
    wih = gru_wih_ref[...]         # [E, 3H]   gate order: r, z, n (PyTorch)
    whh = gru_whh_ref[...]         # [H, 3H]
    bih = gru_bih_ref[...]         # [1, 3H]
    bhh = gru_bhh_ref[...]         # [1, 3H]

    # Input projection for ALL timesteps at once (off the serial chain).
    gi_all = jnp.dot(xe.reshape(B * T, E), wih, preferred_element_type=f32) + bih
    gi_all = gi_all.reshape(B, T, 3 * H)

    # TODO(synk): whh could be pinned in the MXU via pltpu.matmul_push_rhs /
    # matmul_acc_lhs / matmul_pop; left to the compiler to hoist the weight push.
    h = jnp.zeros((B, H), f32)
    for t in range(T):                                   # static unroll, T small
        gi = gi_all[:, t, :]                             # [B, 3H]
        gh = jnp.dot(h, whh, preferred_element_type=f32) + bhh
        r = jax.nn.sigmoid(gi[:, 0:H] + gh[:, 0:H])
        z = jax.nn.sigmoid(gi[:, H:2 * H] + gh[:, H:2 * H])
        n = jnp.tanh(gi[:, 2 * H:3 * H] + r * gh[:, 2 * H:3 * H])
        h = (1.0 - z) * n + z * h
        hs_ref[:, pl.ds(t, 1), :] = h[:, None, :]        # write row, no stack/relayout

    xf = hs_ref[...].reshape(B * T, H)                   # [B*T, H] (layout-preserving)

    # ---------------- N_SA self-attention blocks -----------------------------
    qkv_w = sa_qkv_w_ref[...]      # [N_SA, H, 3H]  (Wq | Wk | Wv fused)
    qkv_b = sa_qkv_b_ref[...]      # [N_SA, 1, 3H]
    mrg_w = sa_merge_w_ref[...]    # [N_SA, H, H]
    mrg_b = sa_merge_b_ref[...]    # [N_SA, 1, H]
    ffn_w1 = sa_ffn_w1_ref[...]    # [N_SA, H, FF]
    ffn_b1 = sa_ffn_b1_ref[...]    # [N_SA, 1, FF]
    ffn_w2 = sa_ffn_w2_ref[...]    # [N_SA, FF, H]
    ffn_b2 = sa_ffn_b2_ref[...]    # [N_SA, 1, H]
    ln_p = sa_ln_ref[...]          # [N_SA, 4, 1, H]   (g1, b1, g2, b2)

    # Additive key-mask bias, materialized ONCE and reused by every head / layer.
    mask_bias = jnp.broadcast_to((maskf * NEG)[:, None, :], (B, T, T))   # [B, T, T]
    scale = 1.0 / (HH ** 0.5)

    for l in range(N_SA):
        # Fused QKV projection: one [B*T,H] x [H,3H] matmul.
        qkv = jnp.dot(xf, qkv_w[l], preferred_element_type=f32) + qkv_b[l]   # [B*T, 3H]
        q3 = qkv[:, 0:H].reshape(B, T, H)
        k3 = qkv[:, H:2 * H].reshape(B, T, H)
        v3 = qkv[:, 2 * H:3 * H].reshape(B, T, H)

        head_outs = []
        for hd in range(NH):                        # static, batched over B via einsum
            sl = slice(hd * HH, (hd + 1) * HH)
            qh = q3[:, :, sl]                       # [B, T, HH]
            kh = k3[:, :, sl]
            vh = v3[:, :, sl]
            s = jnp.einsum('bqd,bkd->bqk', qh, kh,
                           preferred_element_type=f32) * scale              # [B, T, T]
            s = s + mask_bias
            s = s - jnp.max(s, axis=-1, keepdims=True)
            p = jnp.exp(s)
            p = p * pl.reciprocal(jnp.sum(p, axis=-1, keepdims=True), approx=True)
            head_outs.append(jnp.einsum('bqk,bkd->bqd', p, vh,
                                        preferred_element_type=f32))        # [B, T, HH]
        ctx = jnp.concatenate(head_outs, axis=-1).reshape(B * T, H)          # lane concat
        atted = jnp.dot(ctx, mrg_w[l], preferred_element_type=f32) + mrg_b[l]

        g1, bt1, g2, bt2 = (ln_p[l, j] for j in range(4))
        xf = _layer_norm(xf + atted, g1, bt1)

        ff = jnp.maximum(jnp.dot(xf, ffn_w1[l], preferred_element_type=f32) + ffn_b1[l], 0.0)
        ff = jnp.dot(ff, ffn_w2[l], preferred_element_type=f32) + ffn_b2[l]
        xf = _layer_norm(xf + ff, g2, bt2)

    lang_out_ref[...] = xf.reshape(B, T, H)

    # ---------------- AttFlat -------------------------------------------------
    a = jnp.maximum(
        jnp.dot(xf, flat_w1_ref[...], preferred_element_type=f32) + flat_b1_ref[...], 0.0)
    a = jnp.dot(a, flat_w2_ref[...], preferred_element_type=f32) + flat_b2_ref[...]  # [B*T, G]
    a3 = a.reshape(B, T, G) + (maskf * NEG)[:, :, None]   # additive mask bias
    a3 = a3 - jnp.max(a3, axis=1, keepdims=True)          # softmax over sequence dim
    ea = jnp.exp(a3)
    a3 = ea * pl.reciprocal(jnp.sum(ea, axis=1, keepdims=True), approx=True)

    x3f = xf.reshape(B, T, H)
    glimpses = []
    for i in range(G):
        glimpses.append(jnp.sum(a3[:, :, i:i + 1] * x3f, axis=1))            # [B, H]
    xg = jnp.concatenate(glimpses, axis=-1)                                  # [B, H*G]
    flat_out_ref[...] = (
        jnp.dot(xg, flat_mw_ref[...], preferred_element_type=f32) + flat_mb_ref[...])


# ---- parameter construction (deterministic, synthetic, pre-packed) -----------
def make_params(key):
    ks = jax.random.split(key, 24)
    n = lambda k, shp, s=0.05: (s * jax.random.normal(k, shp)).astype(jnp.float32)
    p = {}
    p["emb"] = n(ks[0], (TOKEN_SIZE, E), 0.1)
    p["gru_wih"] = n(ks[1], (E, 3 * H))
    p["gru_whh"] = n(ks[2], (H, 3 * H))
    p["gru_bih"] = n(ks[3], (1, 3 * H))
    p["gru_bhh"] = n(ks[4], (1, 3 * H))
    # Q/K/V packed into a single (in, 3*out) matrix per layer (fused QKV matmul).
    p["sa_qkv_w"] = n(ks[5], (N_SA, H, 3 * H))
    p["sa_qkv_b"] = n(ks[6], (N_SA, 1, 3 * H))
    p["sa_merge_w"] = n(ks[7], (N_SA, H, H))
    p["sa_merge_b"] = n(ks[8], (N_SA, 1, H))
    p["sa_ffn_w1"] = n(ks[9], (N_SA, H, FF))
    p["sa_ffn_b1"] = n(ks[10], (N_SA, 1, FF))
    p["sa_ffn_w2"] = n(ks[11], (N_SA, FF, H))
    p["sa_ffn_b2"] = n(ks[12], (N_SA, 1, H))
    # LayerNorm params: (gamma1, beta1, gamma2, beta2); gammas near 1, betas near 0
    ln = jnp.stack(
        [jnp.stack([jnp.ones((1, H)), jnp.zeros((1, H)),
                    jnp.ones((1, H)), jnp.zeros((1, H))], axis=0)
         for _ in range(N_SA)], axis=0).astype(jnp.float32)
    p["sa_ln"] = ln + n(ks[13], (N_SA, 4, 1, H), 0.01)
    p["flat_w1"] = n(ks[14], (H, FM))
    p["flat_b1"] = n(ks[15], (1, FM))
    p["flat_w2"] = n(ks[16], (FM, G))
    p["flat_b2"] = n(ks[17], (1, G))
    p["flat_mw"] = n(ks[18], (H * G, FO))
    p["flat_mb"] = n(ks[19], (1, FO))
    return p


@jax.jit
def lstm_sa_forward(ques_ix, params):
    # make_mask(ques_ix.unsqueeze(2)): True where token id == 0 (padding)
    mask_bool = (ques_ix == 0)
    lang_feat_mask = mask_bool[:, None, None, :]                 # [B, 1, 1, T] bool
    maskf = mask_bool.astype(jnp.float32)                        # [B, T]
    x_emb = jnp.take(params["emb"], ques_ix, axis=0)             # embedding gather (glue)

    weights = [
        params["gru_wih"], params["gru_whh"], params["gru_bih"], params["gru_bhh"],
        params["sa_qkv_w"], params["sa_qkv_b"],
        params["sa_merge_w"], params["sa_merge_b"],
        params["sa_ffn_w1"], params["sa_ffn_b1"],
        params["sa_ffn_w2"], params["sa_ffn_b2"],
        params["sa_ln"],
        params["flat_w1"], params["flat_b1"], params["flat_w2"], params["flat_b2"],
        params["flat_mw"], params["flat_mb"],
    ]
    n_in = 2 + len(weights)

    flat, lang = pl.pallas_call(
        lstm_sa_kernel,
        out_shape=(jax.ShapeDtypeStruct((B, FO), jnp.float32),
                   jax.ShapeDtypeStruct((B, T, H), jnp.float32)),
        in_specs=[pl.BlockSpec(memory_space=pltpu.MemorySpace.VMEM)] * n_in,
        out_specs=(pl.BlockSpec(memory_space=pltpu.MemorySpace.VMEM),
                   pl.BlockSpec(memory_space=pltpu.MemorySpace.VMEM)),
        scratch_shapes=[pltpu.VMEM((B, T, H), jnp.float32)],
    )(x_emb, maskf, *weights)

    return {"flat_lang_feat": flat,
            "lang_feat": lang,
            "lang_feat_mask": lang_feat_mask}


if __name__ == "__main__":
    key = jax.random.PRNGKey(0)
    pkey, ikey = jax.random.split(key)
    params = make_params(pkey)

    # token ids in [1, TOKEN_SIZE), with trailing padding (id 0) to exercise the mask
    ques_ix = jax.random.randint(ikey, (B, T), 1, TOKEN_SIZE, dtype=jnp.int32)
    ques_ix = ques_ix.at[:, T - 2:].set(0)

    out = lstm_sa_forward(ques_ix, params)
    jax.block_until_ready(out)

    assert out["flat_lang_feat"].shape == (B, FO)
    assert out["lang_feat"].shape == (B, T, H)
    assert out["lang_feat_mask"].shape == (B, 1, 1, T)
    assert bool(jnp.all(jnp.isfinite(out["flat_lang_feat"])))
    assert bool(jnp.all(jnp.isfinite(out["lang_feat"])))
    print("KERNEL_OK")
</pallas_src>

<mosaic_0001>
module attributes {stable_mosaic.version = 11 : i64} {
  func.func @lstm_sa_kernel(%arg0: memref<2x8x32xf32, #tpu.memory_space<vmem>>, %arg1: memref<2x8xf32, #tpu.memory_space<vmem>>, %arg2: memref<32x96xf32, #tpu.memory_space<vmem>>, %arg3: memref<32x96xf32, #tpu.memory_space<vmem>>, %arg4: memref<1x96xf32, #tpu.memory_space<vmem>>, %arg5: memref<1x96xf32, #tpu.memory_space<vmem>>, %arg6: memref<2x32x96xf32, #tpu.memory_space<vmem>>, %arg7: memref<2x1x96xf32, #tpu.memory_space<vmem>>, %arg8: memref<2x32x32xf32, #tpu.memory_space<vmem>>, %arg9: memref<2x1x32xf32, #tpu.memory_space<vmem>>, %arg10: memref<2x32x64xf32, #tpu.memory_space<vmem>>, %arg11: memref<2x1x64xf32, #tpu.memory_space<vmem>>, %arg12: memref<2x64x32xf32, #tpu.memory_space<vmem>>, %arg13: memref<2x1x32xf32, #tpu.memory_space<vmem>>, %arg14: memref<2x4x1x32xf32, #tpu.memory_space<vmem>>, %arg15: memref<32x64xf32, #tpu.memory_space<vmem>>, %arg16: memref<1x64xf32, #tpu.memory_space<vmem>>, %arg17: memref<64x1xf32, #tpu.memory_space<vmem>>, %arg18: memref<1x1xf32, #tpu.memory_space<vmem>>, %arg19: memref<32x64xf32, #tpu.memory_space<vmem>>, %arg20: memref<1x64xf32, #tpu.memory_space<vmem>>, %arg21: memref<2x64xf32, #tpu.memory_space<vmem>>, %arg22: memref<2x8x32xf32, #tpu.memory_space<vmem>>, %arg23: memref<2x8x32xf32, #tpu.memory_space<vmem>>) attributes {dimension_semantics = [], scalar_prefetch = 0 : i64, scratch_operands = 1 : i64, tpu.core_type = #tpu.core_type<tc>} {
    %c0 = arith.constant 0 : index
    %c0_0 = arith.constant 0 : index
    %c0_1 = arith.constant 0 : index
    %0 = vector.load %arg0[%c0, %c0_0, %c0_1] : memref<2x8x32xf32, #tpu.memory_space<vmem>>, vector<2x8x32xf32>
    %c0_2 = arith.constant 0 : index
    %c0_3 = arith.constant 0 : index
    %1 = vector.load %arg1[%c0_2, %c0_3] : memref<2x8xf32, #tpu.memory_space<vmem>>, vector<2x8xf32>
    %c0_4 = arith.constant 0 : index
    %c0_5 = arith.constant 0 : index
    %2 = vector.load %arg2[%c0_4, %c0_5] : memref<32x96xf32, #tpu.memory_space<vmem>>, vector<32x96xf32>
    %c0_6 = arith.constant 0 : index
    %c0_7 = arith.constant 0 : index
    %3 = vector.load %arg3[%c0_6, %c0_7] : memref<32x96xf32, #tpu.memory_space<vmem>>, vector<32x96xf32>
    %c0_8 = arith.constant 0 : index
    %c0_9 = arith.constant 0 : index
    %4 = vector.load %arg4[%c0_8, %c0_9] : memref<1x96xf32, #tpu.memory_space<vmem>>, vector<1x96xf32>
    %c0_10 = arith.constant 0 : index
    %c0_11 = arith.constant 0 : index
    %5 = vector.load %arg5[%c0_10, %c0_11] : memref<1x96xf32, #tpu.memory_space<vmem>>, vector<1x96xf32>
    %6 = vector.shape_cast %0 : vector<2x8x32xf32> to vector<16x32xf32>
    %cst = arith.constant dense<0.000000e+00> : vector<16x96xf32>
    %7 = tpu.matmul %6, %2, %cst {dimension_numbers = #tpu.dot_dimension_numbers<[1], [0], [0], [1], [0, 0, 1, 1], [], []>} : vector<16x32xf32>, vector<32x96xf32>, vector<16x96xf32> -> vector<16x96xf32>
    %8 = vector.broadcast %4 : vector<1x96xf32> to vector<16x96xf32>
    %9 = arith.addf %7, %8 : vector<16x96xf32>
    %10 = vector.shape_cast %9 : vector<16x96xf32> to vector<2x8x96xf32>
    %cst_12 = arith.constant 0.000000e+00 : f32
    %11 = vector.broadcast %cst_12 : f32 to vector<2x32xf32>
    %12 = vector.extract_strided_slice %10 {offsets = [0, 0, 0], sizes = [2, 1, 96], strides = [1, 1, 1]} : vector<2x8x96xf32> to vector<2x1x96xf32>
    %13 = vector.shape_cast %12 : vector<2x1x96xf32> to vector<2x96xf32>
    %cst_13 = arith.constant dense<0.000000e+00> : vector<2x96xf32>
    %14 = tpu.matmul %11, %3, %cst_13 {dimension_numbers = #tpu.dot_dimension_numbers<[1], [0], [0], [1], [0, 0, 1, 1], [], []>} : vector<2x32xf32>, vector<32x96xf32>, vector<2x96xf32> -> vector<2x96xf32>
    %15 = vector.broadcast %5 : vector<1x96xf32> to vector<2x96xf32>
    %16 = arith.addf %14, %15 : vector<2x96xf32>
    %17 = vector.extract_strided_slice %13 {offsets = [0, 0], sizes = [2, 32], strides = [1, 1]} : vector<2x96xf32> to vector<2x32xf32>
    %18 = vector.extract_strided_slice %16 {offsets = [0, 0], sizes = [2, 32], strides = [1, 1]} : vector<2x96xf32> to vector<2x32xf32>
    %19 = arith.addf %17, %18 : vector<2x32xf32>
    %20 = arith.negf %19 : vector<2x32xf32>
    %21 = math.exp %20 : vector<2x32xf32>
    %cst_14 = arith.constant 1.000000e+00 : f32
    %22 = vector.broadcast %cst_14 : f32 to vector<2x32xf32>
    %23 = arith.addf %22, %21 : vector<2x32xf32>
    %24 = arith.divf %22, %23 : vector<2x32xf32>
    %25 = vector.extract_strided_slice %13 {offsets = [0, 32], sizes = [2, 32], strides = [1, 1]} : vector<2x96xf32> to vector<2x32xf32>
    %26 = vector.extract_strided_slice %16 {offsets = [0, 32], sizes = [2, 32], strides = [1, 1]} : vector<2x96xf32> to vector<2x32xf32>
    %27 = arith.addf %25, %26 : vector<2x32xf32>
    %28 = arith.negf %27 : vector<2x32xf32>
    %29 = math.exp %28 : vector<2x32xf32>
    %cst_15 = arith.constant 1.000000e+00 : f32
    %30 = vector.broadcast %cst_15 : f32 to vector<2x32xf32>
    %31 = arith.addf %30, %29 : vector<2x32xf32>
    %32 = arith.divf %30, %31 : vector<2x32xf32>
    %33 = vector.extract_strided_slice %13 {offsets = [0, 64], sizes = [2, 32], strides = [1, 1]} : vector<2x96xf32> to vector<2x32xf32>
    %34 = vector.extract_strided_slice %16 {offsets = [0, 64], sizes = [2, 32], strides = [1, 1]} : vector<2x96xf32> to vector<2x32xf32>
    %35 = arith.mulf %24, %34 : vector<2x32xf32>
    %36 = arith.addf %33, %35 : vector<2x32xf32>
    %37 = math.tanh %36 : vector<2x32xf32>
    %cst_16 = arith.constant 1.000000e+00 : f32
    %38 = vector.broadcast %cst_16 : f32 to vector<2x32xf32>
    %39 = arith.subf %38, %32 : vector<2x32xf32>
    %40 = arith.mulf %39, %37 : vector<2x32xf32>
    %41 = arith.mulf %32, %11 : vector<2x32xf32>
    %42 = arith.addf %40, %41 : vector<2x32xf32>
    %43 = vector.shape_cast %42 : vector<2x32xf32> to vector<2x1x32xf32>
    %c0_17 = arith.constant 0 : index
    %c0_18 = arith.constant 0 : index
    %c0_19 = arith.constant 0 : index
    %44 = vector.load %arg23[%c0_17, %c0_18, %c0_19] : memref<2x8x32xf32, #tpu.memory_space<vmem>>, vector<2x1x32xf32>
    tpu.vector_store %arg23[%c0_17, %c0_18, %c0_19], %43 {strides = array<i32>} : memref<2x8x32xf32, #tpu.memory_space<vmem>>, vector<2x1x32xf32>,
    %45 = vector.extract_strided_slice %10 {offsets = [0, 1, 0], sizes = [2, 1, 96], strides = [1, 1, 1]} : vector<2x8x96xf32> to vector<2x1x96xf32>
    %46 = vector.shape_cast %45 : vector<2x1x96xf32> to vector<2x96xf32>
    %cst_20 = arith.constant dense<0.000000e+00> : vector<2x96xf32>
    %47 = tpu.matmul %42, %3, %cst_20 {dimension_numbers = #tpu.dot_dimension_numbers<[1], [0], [0], [1], [0, 0, 1, 1], [], []>} : vector<2x32xf32>, vector<32x96xf32>, vector<2x96xf32> -> vector<2x96xf32>
    %48 = vector.broadcast %5 : vector<1x96xf32> to vector<2x96xf32>
    %49 = arith.addf %47, %48 : vector<2x96xf32>
    %50 = vector.extract_strided_slice %46 {offsets = [0, 0], sizes = [2, 32], strides = [1, 1]} : vector<2x96xf32> to vector<2x32xf32>
    %51 = vector.extract_strided_slice %49 {offsets = [0, 0], sizes = [2, 32], strides = [1, 1]} : vector<2x96xf32> to vector<2x32xf32>
    %52 = arith.addf %50, %51 : vector<2x32xf32>
    %53 = arith.negf %52 : vector<2x32xf32>
    %54 = math.exp %53 : vector<2x32xf32>
    %cst_21 = arith.constant 1.000000e+00 : f32
    %55 = vector.broadcast %cst_21 : f32 to vector<2x32xf32>
    %56 = arith.addf %55, %54 : vector<2x32xf32>
    %57 = arith.divf %55, %56 : vector<2x32xf32>
    %58 = vector.extract_strided_slice %46 {offsets = [0, 32], sizes = [2, 32], strides = [1, 1]} : vector<2x96xf32> to vector<2x32xf32>
    %59 = vector.extract_strided_slice %49 {offsets = [0, 32], sizes = [2, 32], strides = [1, 1]} : vector<2x96xf32> to vector<2x32xf32>
    %60 = arith.addf %58, %59 : vector<2x32xf32>
    %61 = arith.negf %60 : vector<2x32xf32>
    %62 = math.exp %61 : vector<2x32xf32>
    %cst_22 = arith.constant 1.000000e+00 : f32
    %63 = vector.broadcast %cst_22 : f32 to vector<2x32xf32>
    %64 = arith.addf %63, %62 : vector<2x32xf32>
    %65 = arith.divf %63, %64 : vector<2x32xf32>
    %66 = vector.extract_strided_slice %46 {offsets = [0, 64], sizes = [2, 32], strides = [1, 1]} : vector<2x96xf32> to vector<2x32xf32>
    %67 = vector.extract_strided_slice %49 {offsets = [0, 64], sizes = [2, 32], strides = [1, 1]} : vector<2x96xf32> to vector<2x32xf32>
    %68 = arith.mulf %57, %67 : vector<2x32xf32>
    %69 = arith.addf %66, %68 : vector<2x32xf32>
    %70 = math.tanh %69 : vector<2x32xf32>
    %cst_23 = arith.constant 1.000000e+00 : f32
    %71 = vector.broadcast %cst_23 : f32 to vector<2x32xf32>
    %72 = arith.subf %71, %65 : vector<2x32xf32>
    %73 = arith.mulf %72, %70 : vector<2x32xf32>
    %74 = arith.mulf %65, %42 : vector<2x32xf32>
    %75 = arith.addf %73, %74 : vector<2x32xf32>
    %76 = vector.shape_cast %75 : vector<2x32xf32> to vector<2x1x32xf32>
    %c0_24 = arith.constant 0 : index
    %c1 = arith.constant 1 : index
    %c0_25 = arith.constant 0 : index
    %77 = vector.load %arg23[%c0_24, %c1, %c0_25] : memref<2x8x32xf32, #tpu.memory_space<vmem>>, vector<2x1x32xf32>
    tpu.vector_store %arg23[%c0_24, %c1, %c0_25], %76 {strides = array<i32>} : memref<2x8x32xf32, #tpu.memory_space<vmem>>, vector<2x1x32xf32>,
    %78 = vector.extract_strided_slice %10 {offsets = [0, 2, 0], sizes = [2, 1, 96], strides = [1, 1, 1]} : vector<2x8x96xf32> to vector<2x1x96xf32>
    %79 = vector.shape_cast %78 : vector<2x1x96xf32> to vector<2x96xf32>
    %cst_26 = arith.constant dense<0.000000e+00> : vector<2x96xf32>
    %80 = tpu.matmul %75, %3, %cst_26 {dimension_numbers = #tpu.dot_dimension_numbers<[1], [0], [0], [1], [0, 0, 1, 1], [], []>} : vector<2x32xf32>, vector<32x96xf32>, vector<2x96xf32> -> vector<2x96xf32>
    %81 = vector.broadcast %5 : vector<1x96xf32> to vector<2x96xf32>
    %82 = arith.addf %80, %81 : vector<2x96xf32>
    %83 = vector.extract_strided_slice %79 {offsets = [0, 0], sizes = [2, 32], strides = [1, 1]} : vector<2x96xf32> to vector<2x32xf32>
    %84 = vector.extract_strided_slice %82 {offsets = [0, 0], sizes = [2, 32], strides = [1, 1]} : vector<2x96xf32> to vector<2x32xf32>
    %85 = arith.addf %83, %84 : vector<2x32xf32>
    %86 = arith.negf %85 : vector<2x32xf32>
    %87 = math.exp %86 : vector<2x32xf32>
    %cst_27 = arith.constant 1.000000e+00 : f32
    %88 = vector.broadcast %cst_27 : f32 to vector<2x32xf32>
    %89 = arith.addf %88, %87 : vector<2x32xf32>
    %90 = arith.divf %88, %89 : vector<2x32xf32>
    %91 = vector.extract_strided_slice %79 {offsets = [0, 32], sizes = [2, 32], strides = [1, 1]} : vector<2x96xf32> to vector<2x32xf32>
    %92 = vector.extract_strided_slice %82 {offsets = [0, 32], sizes = [2, 32], strides = [1, 1]} : vector<2x96xf32> to vector<2x32xf32>
    %93 = arith.addf %91, %92 : vector<2x32xf32>
    %94 = arith.negf %93 : vector<2x32xf32>
    %95 = math.exp %94 : vector<2x32xf32>
    %cst_28 = arith.constant 1.000000e+00 : f32
    %96 = vector.broadcast %cst_28 : f32 to vector<2x32xf32>
    %97 = arith.addf %96, %95 : vector<2x32xf32>
    %98 = arith.divf %96, %97 : vector<2x32xf32>
    %99 = vector.extract_strided_slice %79 {offsets = [0, 64], sizes = [2, 32], strides = [1, 1]} : vector<2x96xf32> to vector<2x32xf32>
    %100 = vector.extract_strided_slice %82 {offsets = [0, 64], sizes = [2, 32], strides = [1, 1]} : vector<2x96xf32> to vector<2x32xf32>
    %101 = arith.mulf %90, %100 : vector<2x32xf32>
    %102 = arith.addf %99, %101 : vector<2x32xf32>
    %103 = math.tanh %102 : vector<2x32xf32>
    %cst_29 = arith.constant 1.000000e+00 : f32
    %104 = vector.broadcast %cst_29 : f32 to vector<2x32xf32>
    %105 = arith.subf %104, %98 : vector<2x32xf32>
    %106 = arith.mulf %105, %103 : vector<2x32xf32>
    %107 = arith.mulf %98, %75 : vector<2x32xf32>
    %108 = arith.addf %106, %107 : vector<2x32xf32>
    %109 = vector.shape_cast %108 : vector<2x32xf32> to vector<2x1x32xf32>
    %c0_30 = arith.constant 0 : index
    %c2 = arith.constant 2 : index
    %c0_31 = arith.constant 0 : index
    %110 = vector.load %arg23[%c0_30, %c2, %c0_31] : memref<2x8x32xf32, #tpu.memory_space<vmem>>, vector<2x1x32xf32>
    tpu.vector_store %arg23[%c0_30, %c2, %c0_31], %109 {strides = array<i32>} : memref<2x8x32xf32, #tpu.memory_space<vmem>>, vector<2x1x32xf32>,
    %111 = vector.extract_strided_slice %10 {offsets = [0, 3, 0], sizes = [2, 1, 96], strides = [1, 1, 1]} : vector<2x8x96xf32> to vector<2x1x96xf32>
    %112 = vector.shape_cast %111 : vector<2x1x96xf32> to vector<2x96xf32>
    %cst_32 = arith.constant dense<0.000000e+00> : vector<2x96xf32>
    %113 = tpu.matmul %108, %3, %cst_32 {dimension_numbers = #tpu.dot_dimension_numbers<[1], [0], [0], [1], [0, 0, 1, 1], [], []>} : vector<2x32xf32>, vector<32x96xf32>, vector<2x96xf32> -> vector<2x96xf32>
    %114 = vector.broadcast %5 : vector<1x96xf32> to vector<2x96xf32>
    %115 = arith.addf %113, %114 : vector<2x96xf32>
    %116 = vector.extract_strided_slice %112 {offsets = [0, 0], sizes = [2, 32], strides = [1, 1]} : vector<2x96xf32> to vector<2x32xf32>
    %117 = vector.extract_strided_slice %115 {offsets = [0, 0], sizes = [2, 32], strides = [1, 1]} : vector<2x96xf32> to vector<2x32xf32>
    %118 = arith.addf %116, %117 : vector<2x32xf32>
    %119 = arith.negf %118 : vector<2x32xf32>
    %120 = math.exp %119 : vector<2x32xf32>
    %cst_33 = arith.constant 1.000000e+00 : f32
    %121 = vector.broadcast %cst_33 : f32 to vector<2x32xf32>
    %122 = arith.addf %121, %120 : vector<2x32xf32>
    %123 = arith.divf %121, %122 : vector<2x32xf32>
    %124 = vector.extract_strided_slice %112 {offsets = [0, 32], sizes = [2, 32], strides = [1, 1]} : vector<2x96xf32> to vector<2x32xf32>
    %125 = vector.extract_strided_slice %115 {offsets = [0, 32], sizes = [2, 32], strides = [1, 1]} : vector<2x96xf32> to vector<2x32xf32>
    %126 = arith.addf %124, %125 : vector<2x32xf32>
    %127 = arith.negf %126 : vector<2x32xf32>
    %128 = math.exp %127 : vector<2x32xf32>
    %cst_34 = arith.constant 1.000000e+00 : f32
    %129 = vector.broadcast %cst_34 : f32 to vector<2x32xf32>
    %130 = arith.addf %129, %128 : vector<2x32xf32>
    %131 = arith.divf %129, %130 : vector<2x32xf32>
    %132 = vector.extract_strided_slice %112 {offsets = [0, 64], sizes = [2, 32], strides = [1, 1]} : vector<2x96xf32> to vector<2x32xf32>
    %133 = vector.extract_strided_slice %115 {offsets = [0, 64], sizes = [2, 32], strides = [1, 1]} : vector<2x96xf32> to vector<2x32xf32>
    %134 = arith.mulf %123, %133 : vector<2x32xf32>
    %135 = arith.addf %132, %134 : vector<2x32xf32>
    %136 = math.tanh %135 : vector<2x32xf32>
    %cst_35 = arith.constant 1.000000e+00 : f32
    %137 = vector.broadcast %cst_35 : f32 to vector<2x32xf32>
    %138 = arith.subf %137, %131 : vector<2x32xf32>
    %139 = arith.mulf %138, %136 : vector<2x32xf32>
    %140 = arith.mulf %131, %108 : vector<2x32xf32>
    %141 = arith.addf %139, %140 : vector<2x32xf32>
    %142 = vector.shape_cast %141 : vector<2x32xf32> to vector<2x1x32xf32>
    %c0_36 = arith.constant 0 : index
    %c3 = arith.constant 3 : index
    %c0_37 = arith.constant 0 : index
    %143 = vector.load %arg23[%c0_36, %c3, %c0_37] : memref<2x8x32xf32, #tpu.memory_space<vmem>>, vector<2x1x32xf32>
    tpu.vector_store %arg23[%c0_36, %c3, %c0_37], %142 {strides = array<i32>} : memref<2x8x32xf32, #tpu.memory_space<vmem>>, vector<2x1x32xf32>,
    %144 = vector.extract_strided_slice %10 {offsets = [0, 4, 0], sizes = [2, 1, 96], strides = [1, 1, 1]} : vector<2x8x96xf32> to vector<2x1x96xf32>
    %145 = vector.shape_cast %144 : vector<2x1x96xf32> to vector<2x96xf32>
    %cst_38 = arith.constant dense<0.000000e+00> : vector<2x96xf32>
    %146 = tpu.matmul %141, %3, %cst_38 {dimension_numbers = #tpu.dot_dimension_numbers<[1], [0], [0], [1], [0, 0, 1, 1], [], []>} : vector<2x32xf32>, vector<32x96xf32>, vector<2x96xf32> -> vector<2x96xf32>
    %147 = vector.broadcast %5 : vector<1x96xf32> to vector<2x96xf32>
    %148 = arith.addf %146, %147 : vector<2x96xf32>
    %149 = vector.extract_strided_slice %145 {offsets = [0, 0], sizes = [2, 32], strides = [1, 1]} : vector<2x96xf32> to vector<2x32xf32>
    %150 = vector.extract_strided_slice %148 {offsets = [0, 0], sizes = [2, 32], strides = [1, 1]} : vector<2x96xf32> to vector<2x32xf32>
    %151 = arith.addf %149, %150 : vector<2x32xf32>
    %152 = arith.negf %151 : vector<2x32xf32>
    %153 = math.exp %152 : vector<2x32xf32>
    %cst_39 = arith.constant 1.000000e+00 : f32
    %154 = vector.broadcast %cst_39 : f32 to vector<2x32xf32>
    %155 = arith.addf %154, %153 : vector<2x32xf32>
    %156 = arith.divf %154, %155 : vector<2x32xf32>
    %157 = vector.extract_strided_slice %145 {offsets = [0, 32], sizes = [2, 32], strides = [1, 1]} : vector<2x96xf32> to vector<2x32xf32>
    %158 = vector.extract_strided_slice %148 {offsets = [0, 32], sizes = [2, 32], strides = [1, 1]} : vector<2x96xf32> to vector<2x32xf32>
    %159 = arith.addf %157, %158 : vector<2x32xf32>
    %160 = arith.negf %159 : vector<2x32xf32>
    %161 = math.exp %160 : vector<2x32xf32>
    %cst_40 = arith.constant 1.000000e+00 : f32
    %162 = vector.broadcast %cst_40 : f32 to vector<2x32xf32>
    %163 = arith.addf %162, %161 : vector<2x32xf32>
    %164 = arith.divf %162, %163 : vector<2x32xf32>
    %165 = vector.extract_strided_slice %145 {offsets = [0, 64], sizes = [2, 32], strides = [1, 1]} : vector<2x96xf32> to vector<2x32xf32>
    %166 = vector.extract_strided_slice %148 {offsets = [0, 64], sizes = [2, 32], strides = [1, 1]} : vector<2x96xf32> to vector<2x32xf32>
    %167 = arith.mulf %156, %166 : vector<2x32xf32>
    %168 = arith.addf %165, %167 : vector<2x32xf32>
    %169 = math.tanh %168 : vector<2x32xf32>
    %cst_41 = arith.constant 1.000000e+00 : f32
    %170 = vector.broadcast %cst_41 : f32 to vector<2x32xf32>
    %171 = arith.subf %170, %164 : vector<2x32xf32>
    %172 = arith.mulf %171, %169 : vector<2x32xf32>
    %173 = arith.mulf %164, %141 : vector<2x32xf32>
    %174 = arith.addf %172, %173 : vector<2x32xf32>
    %175 = vector.shape_cast %174 : vector<2x32xf32> to vector<2x1x32xf32>
    %c0_42 = arith.constant 0 : index
    %c4 = arith.constant 4 : index
    %c0_43 = arith.constant 0 : index
    %176 = vector.load %arg23[%c0_42, %c4, %c0_43] : memref<2x8x32xf32, #tpu.memory_space<vmem>>, vector<2x1x32xf32>
    tpu.vector_store %arg23[%c0_42, %c4, %c0_43], %175 {strides = array<i32>} : memref<2x8x32xf32, #tpu.memory_space<vmem>>, vector<2x1x32xf32>,
    %177 = vector.extract_strided_slice %10 {offsets = [0, 5, 0], sizes = [2, 1, 96], strides = [1, 1, 1]} : vector<2x8x96xf32> to vector<2x1x96xf32>
    %178 = vector.shape_cast %177 : vector<2x1x96xf32> to vector<2x96xf32>
    %cst_44 = arith.constant dense<0.000000e+00> : vector<2x96xf32>
    %179 = tpu.matmul %174, %3, %cst_44 {dimension_numbers = #tpu.dot_dimension_numbers<[1], [0], [0], [1], [0, 0, 1, 1], [], []>} : vector<2x32xf32>, vector<32x96xf32>, vector<2x96xf32> -> vector<2x96xf32>
    %180 = vector.broadcast %5 : vector<1x96xf32> to vector<2x96xf32>
    %181 = arith.addf %179, %180 : vector<2x96xf32>
    %182 = vector.extract_strided_slice %178 {offsets = [0, 0], sizes = [2, 32], strides = [1, 1]} : vector<2x96xf32> to vector<2x32xf32>
    %183 = vector.extract_strided_slice %181 {offsets = [0, 0], sizes = [2, 32], strides = [1, 1]} : vector<2x96xf32> to vector<2x32xf32>
    %184 = arith.addf %182, %183 : vector<2x32xf32>
    %185 = arith.negf %184 : vector<2x32xf32>
    %186 = math.exp %185 : vector<2x32xf32>
    %cst_45 = arith.constant 1.000000e+00 : f32
    %187 = vector.broadcast %cst_45 : f32 to vector<2x32xf32>
    %188 = arith.addf %187, %186 : vector<2x32xf32>
    %189 = arith.divf %187, %188 : vector<2x32xf32>
    %190 = vector.extract_strided_slice %178 {offsets = [0, 32], sizes = [2, 32], strides = [1, 1]} : vector<2x96xf32> to vector<2x32xf32>
    %191 = vector.extract_strided_slice %181 {offsets = [0, 32], sizes = [2, 32], strides = [1, 1]} : vector<2x96xf32> to vector<2x32xf32>
    %192 = arith.addf %190, %191 : vector<2x32xf32>
    %193 = arith.negf %192 : vector<2x32xf32>
    %194 = math.exp %193 : vector<2x32xf32>
    %cst_46 = arith.constant 1.000000e+00 : f32
    %195 = vector.broadcast %cst_46 : f32 to vector<2x32xf32>
    %196 = arith.addf %195, %194 : vector<2x32xf32>
    %197 = arith.divf %195, %196 : vector<2x32xf32>
    %198 = vector.extract_strided_slice %178 {offsets = [0, 64], sizes = [2, 32], strides = [1, 1]} : vector<2x96xf32> to vector<2x32xf32>
    %199 = vector.extract_strided_slice %181 {offsets = [0, 64], sizes = [2, 32], strides = [1, 1]} : vector<2x96xf32> to vector<2x32xf32>
    %200 = arith.mulf %189, %199 : vector<2x32xf32>
    %201 = arith.addf %198, %200 : vector<2x32xf32>
    %202 = math.tanh %201 : vector<2x32xf32>
    %cst_47 = arith.constant 1.000000e+00 : f32
    %203 = vector.broadcast %cst_47 : f32 to vector<2x32xf32>
    %204 = arith.subf %203, %197 : vector<2x32xf32>
    %205 = arith.mulf %204, %202 : vector<2x32xf32>
    %206 = arith.mulf %197, %174 : vector<2x32xf32>
    %207 = arith.addf %205, %206 : vector<2x32xf32>
    %208 = vector.shape_cast %207 : vector<2x32xf32> to vector<2x1x32xf32>
    %c0_48 = arith.constant 0 : index
    %c5 = arith.constant 5 : index
    %c0_49 = arith.constant 0 : index
    %209 = vector.load %arg23[%c0_48, %c5, %c0_49] : memref<2x8x32xf32, #tpu.memory_space<vmem>>, vector<2x1x32xf32>
    tpu.vector_store %arg23[%c0_48, %c5, %c0_49], %208 {strides = array<i32>} : memref<2x8x32xf32, #tpu.memory_space<vmem>>, vector<2x1x32xf32>,
    %210 = vector.extract_strided_slice %10 {offsets = [0, 6, 0], sizes = [2, 1, 96], strides = [1, 1, 1]} : vector<2x8x96xf32> to vector<2x1x96xf32>
    %211 = vector.shape_cast %210 : vector<2x1x96xf32> to vector<2x96xf32>
    %cst_50 = arith.constant dense<0.000000e+00> : vector<2x96xf32>
    %212 = tpu.matmul %207, %3, %cst_50 {dimension_numbers = #tpu.dot_dimension_numbers<[1], [0], [0], [1], [0, 0, 1, 1], [], []>} : vector<2x32xf32>, vector<32x96xf32>, vector<2x96xf32> -> vector<2x96xf32>
    %213 = vector.broadcast %5 : vector<1x96xf32> to vector<2x96xf32>
    %214 = arith.addf %212, %213 : vector<2x96xf32>
    %215 = vector.extract_strided_slice %211 {offsets = [0, 0], sizes = [2, 32], strides = [1, 1]} : vector<2x96xf32> to vector<2x32xf32>
    %216 = vector.extract_strided_slice %214 {offsets = [0, 0], sizes = [2, 32], strides = [1, 1]} : vector<2x96xf32> to vector<2x32xf32>
    %217 = arith.addf %215, %216 : vector<2x32xf32>
    %218 = arith.negf %217 : vector<2x32xf32>
    %219 = math.exp %218 : vector<2x32xf32>
    %cst_51 = arith.constant 1.000000e+00 : f32
    %220 = vector.broadcast %cst_51 : f32 to vector<2x32xf32>
    %221 = arith.addf %220, %219 : vector<2x32xf32>
    %222 = arith.divf %220, %221 : vector<2x32xf32>
    %223 = vector.extract_strided_slice %211 {offsets = [0, 32], sizes = [2, 32], strides = [1, 1]} : vector<2x96xf32> to vector<2x32xf32>
    %224 = vector.extract_strided_slice %214 {offsets = [0, 32], sizes = [2, 32], strides = [1, 1]} : vector<2x96xf32> to vector<2x32xf32>
    %225 = arith.addf %223, %224 : vector<2x32xf32>
    %226 = arith.negf %225 : vector<2x32xf32>
    %227 = math.exp %226 : vector<2x32xf32>
    %cst_52 = arith.constant 1.000000e+00 : f32
    %228 = vector.broadcast %cst_52 : f32 to vector<2x32xf32>
    %229 = arith.addf %228, %227 : vector<2x32xf32>
    %230 = arith.divf %228, %229 : vector<2x32xf32>
    %231 = vector.extract_strided_slice %211 {offsets = [0, 64], sizes = [2, 32], strides = [1, 1]} : vector<2x96xf32> to vector<2x32xf32>
    %232 = vector.extract_strided_slice %214 {offsets = [0, 64], sizes = [2, 32], strides = [1, 1]} : vector<2x96xf32> to vector<2x32xf32>
    %233 = arith.mulf %222, %232 : vector<2x32xf32>
    %234 = arith.addf %231, %233 : vector<2x32xf32>
    %235 = math.tanh %234 : vector<2x32xf32>
    %cst_53 = arith.constant 1.000000e+00 : f32
    %236 = vector.broadcast %cst_53 : f32 to vector<2x32xf32>
    %237 = arith.subf %236, %230 : vector<2x32xf32>
    %238 = arith.mulf %237, %235 : vector<2x32xf32>
    %239 = arith.mulf %230, %207 : vector<2x32xf32>
    %240 = arith.addf %238, %239 : vector<2x32xf32>
    %241 = vector.shape_cast %240 : vector<2x32xf32> to vector<2x1x32xf32>
    %c0_54 = arith.constant 0 : index
    %c6 = arith.constant 6 : index
    %c0_55 = arith.constant 0 : index
    %242 = vector.load %arg23[%c0_54, %c6, %c0_55] : memref<2x8x32xf32, #tpu.memory_space<vmem>>, vector<2x1x32xf32>
    tpu.vector_store %arg23[%c0_54, %c6, %c0_55], %241 {strides = array<i32>} : memref<2x8x32xf32, #tpu.memory_space<vmem>>, vector<2x1x32xf32>,
    %243 = vector.extract_strided_slice %10 {offsets = [0, 7, 0], sizes = [2, 1, 96], strides = [1, 1, 1]} : vector<2x8x96xf32> to vector<2x1x96xf32>
    %244 = vector.shape_cast %243 : vector<2x1x96xf32> to vector<2x96xf32>
    %cst_56 = arith.constant dense<0.000000e+00> : vector<2x96xf32>
    %245 = tpu.matmul %240, %3, %cst_56 {dimension_numbers = #tpu.dot_dimension_numbers<[1], [0], [0], [1], [0, 0, 1, 1], [], []>} : vector<2x32xf32>, vector<32x96xf32>, vector<2x96xf32> -> vector<2x96xf32>
    %246 = vector.broadcast %5 : vector<1x96xf32> to vector<2x96xf32>
    %247 = arith.addf %245, %246 : vector<2x96xf32>
    %248 = vector.extract_strided_slice %244 {offsets = [0, 0], sizes = [2, 32], strides = [1, 1]} : vector<2x96xf32> to vector<2x32xf32>
    %249 = vector.extract_strided_slice %247 {offsets = [0, 0], sizes = [2, 32], strides = [1, 1]} : vector<2x96xf32> to vector<2x32xf32>
    %250 = arith.addf %248, %249 : vector<2x32xf32>
    %251 = arith.negf %250 : vector<2x32xf32>
    %252 = math.exp %251 : vector<2x32xf32>
    %cst_57 = arith.constant 1.000000e+00 : f32
    %253 = vector.broadcast %cst_57 : f32 to vector<2x32xf32>
    %254 = arith.addf %253, %252 : vector<2x32xf32>
    %255 = arith.divf %253, %254 : vector<2x32xf32>
    %256 = vector.extract_strided_slice %244 {offsets = [0, 32], sizes = [2, 32], strides = [1, 1]} : vector<2x96xf32> to vector<2x32xf32>
    %257 = vector.extract_strided_slice %247 {offsets = [0, 32], sizes = [2, 32], strides = [1, 1]} : vector<2x96xf32> to vector<2x32xf32>
    %258 = arith.addf %256, %257 : vector<2x32xf32>
    %259 = arith.negf %258 : vector<2x32xf32>
    %260 = math.exp %259 : vector<2x32xf32>
    %cst_58 = arith.constant 1.000000e+00 : f32
    %261 = vector.broadcast %cst_58 : f32 to vector<2x32xf32>
    %262 = arith.addf %261, %260 : vector<2x32xf32>
    %263 = arith.divf %261, %262 : vector<2x32xf32>
    %264 = vector.extract_strided_slice %244 {offsets = [0, 64], sizes = [2, 32], strides = [1, 1]} : vector<2x96xf32> to vector<2x32xf32>
    %265 = vector.extract_strided_slice %247 {offsets = [0, 64], sizes = [2, 32], strides = [1, 1]} : vector<2x96xf32> to vector<2x32xf32>
    %266 = arith.mulf %255, %265 : vector<2x32xf32>
    %267 = arith.addf %264, %266 : vector<2x32xf32>
    %268 = math.tanh %267 : vector<2x32xf32>
    %cst_59 = arith.constant 1.000000e+00 : f32
    %269 = vector.broadcast %cst_59 : f32 to vector<2x32xf32>
    %270 = arith.subf %269, %263 : vector<2x32xf32>
    %271 = arith.mulf %270, %268 : vector<2x32xf32>
    %272 = arith.mulf %263, %240 : vector<2x32xf32>
    %273 = arith.addf %271, %272 : vector<2x32xf32>
    %274 = vector.shape_cast %273 : vector<2x32xf32> to vector<2x1x32xf32>
    %c0_60 = arith.constant 0 : index
    %c7 = arith.constant 7 : index
    %c0_61 = arith.constant 0 : index
    %275 = vector.load %arg23[%c0_60, %c7, %c0_61] : memref<2x8x32xf32, #tpu.memory_space<vmem>>, vector<2x1x32xf32>
    tpu.vector_store %arg23[%c0_60, %c7, %c0_61], %274 {strides = array<i32>} : memref<2x8x32xf32, #tpu.memory_space<vmem>>, vector<2x1x32xf32>,
    %c0_62 = arith.constant 0 : index
    %c0_63 = arith.constant 0 : index
    %c0_64 = arith.constant 0 : index
    %276 = vector.load %arg23[%c0_62, %c0_63, %c0_64] : memref<2x8x32xf32, #tpu.memory_space<vmem>>, vector<2x8x32xf32>
    %277 = vector.shape_cast %276 : vector<2x8x32xf32> to vector<16x32xf32>
    %c0_65 = arith.constant 0 : index
    %c0_66 = arith.constant 0 : index
    %c0_67 = arith.constant 0 : index
    %278 = vector.load %arg6[%c0_65, %c0_66, %c0_67] : memref<2x32x96xf32, #tpu.memory_space<vmem>>, vector<2x32x96xf32>
    %c0_68 = arith.constant 0 : index
    %c0_69 = arith.constant 0 : index
    %c0_70 = arith.constant 0 : index
    %279 = vector.load %arg7[%c0_68, %c0_69, %c0_70] : memref<2x1x96xf32, #tpu.memory_space<vmem>>, vector<2x1x96xf32>
    %c0_71 = arith.constant 0 : index
    %c0_72 = arith.constant 0 : index
    %c0_73 = arith.constant 0 : index
    %280 = vector.load %arg8[%c0_71, %c0_72, %c0_73] : memref<2x32x32xf32, #tpu.memory_space<vmem>>, vector<2x32x32xf32>
    %c0_74 = arith.constant 0 : index
    %c0_75 = arith.constant 0 : index
    %c0_76 = arith.constant 0 : index
    %281 = vector.load %arg9[%c0_74, %c0_75, %c0_76] : memref<2x1x32xf32, #tpu.memory_space<vmem>>, vector<2x1x32xf32>
    %c0_77 = arith.constant 0 : index
    %c0_78 = arith.constant 0 : index
    %c0_79 = arith.constant 0 : index
    %282 = vector.load %arg10[%c0_77, %c0_78, %c0_79] : memref<2x32x64xf32, #tpu.memory_space<vmem>>, vector<2x32x64xf32>
    %c0_80 = arith.constant 0 : index
    %c0_81 = arith.constant 0 : index
    %c0_82 = arith.constant 0 : index
    %283 = vector.load %arg11[%c0_80, %c0_81, %c0_82] : memref<2x1x64xf32, #tpu.memory_space<vmem>>, vector<2x1x64xf32>
    %c0_83 = arith.constant 0 : index
    %c0_84 = arith.constant 0 : index
    %c0_85 = arith.constant 0 : index
    %284 = vector.load %arg12[%c0_83, %c0_84, %c0_85] : memref<2x64x32xf32, #tpu.memory_space<vmem>>, vector<2x64x32xf32>
    %c0_86 = arith.constant 0 : index
    %c0_87 = arith.constant 0 : index
    %c0_88 = arith.constant 0 : index
    %285 = vector.load %arg13[%c0_86, %c0_87, %c0_88] : memref<2x1x32xf32, #tpu.memory_space<vmem>>, vector<2x1x32xf32>
    %c0_89 = arith.constant 0 : index
    %c0_90 = arith.constant 0 : index
    %c0_91 = arith.constant 0 : index
    %c0_92 = arith.constant 0 : index
    %286 = vector.load %arg14[%c0_89, %c0_90, %c0_91, %c0_92] : memref<2x4x1x32xf32, #tpu.memory_space<vmem>>, vector<2x4x1x32xf32>
    %cst_93 = arith.constant -1.000000e+09 : f32
    %287 = vector.broadcast %cst_93 : f32 to vector<2x8xf32>
    %288 = arith.mulf %1, %287 : vector<2x8xf32>
    %289 = vector.shape_cast %288 : vector<2x8xf32> to vector<2x1x8xf32>
    %290 = vector.shape_cast %289 : vector<2x1x8xf32> to vector<2x1x8xf32>
    %291 = vector.broadcast %290 : vector<2x1x8xf32> to vector<2x8x8xf32>
    %292 = vector.extract_strided_slice %278 {offsets = [0, 0, 0], sizes = [1, 32, 96], strides = [1, 1, 1]} : vector<2x32x96xf32> to vector<1x32x96xf32>
    %293 = vector.shape_cast %292 : vector<1x32x96xf32> to vector<32x96xf32>
    %cst_94 = arith.constant dense<0.000000e+00> : vector<16x96xf32>
    %294 = tpu.matmul %277, %293, %cst_94 {dimension_numbers = #tpu.dot_dimension_numbers<[1], [0], [0], [1], [0, 0, 1, 1], [], []>} : vector<16x32xf32>, vector<32x96xf32>, vector<16x96xf32> -> vector<16x96xf32>
    %295 = vector.extract_strided_slice %279 {offsets = [0, 0, 0], sizes = [1, 1, 96], strides = [1, 1, 1]} : vector<2x1x96xf32> to vector<1x1x96xf32>
    %296 = vector.shape_cast %295 : vector<1x1x96xf32> to vector<1x96xf32>
    %297 = vector.broadcast %296 : vector<1x96xf32> to vector<16x96xf32>
    %298 = arith.addf %294, %297 : vector<16x96xf32>
    %299 = vector.extract_strided_slice %298 {offsets = [0, 0], sizes = [16, 32], strides = [1, 1]} : vector<16x96xf32> to vector<16x32xf32>
    %300 = vector.shape_cast %299 : vector<16x32xf32> to vector<2x8x32xf32>
    %301 = vector.extract_strided_slice %298 {offsets = [0, 32], sizes = [16, 32], strides = [1, 1]} : vector<16x96xf32> to vector<16x32xf32>
    %302 = vector.shape_cast %301 : vector<16x32xf32> to vector<2x8x32xf32>
    %303 = vector.extract_strided_slice %298 {offsets = [0, 64], sizes = [16, 32], strides = [1, 1]} : vector<16x96xf32> to vector<16x32xf32>
    %304 = vector.shape_cast %303 : vector<16x32xf32> to vector<2x8x32xf32>
    %305 = vector.extract_strided_slice %300 {offsets = [0, 0, 0], sizes = [2, 8, 8], strides = [1, 1, 1]} : vector<2x8x32xf32> to vector<2x8x8xf32>
    %306 = vector.extract_strided_slice %302 {offsets = [0, 0, 0], sizes = [2, 8, 8], strides = [1, 1, 1]} : vector<2x8x32xf32> to vector<2x8x8xf32>
    %307 = vector.extract_strided_slice %304 {offsets = [0, 0, 0], sizes = [2, 8, 8], strides = [1, 1, 1]} : vector<2x8x32xf32> to vector<2x8x8xf32>
    "tpu.trace_start"() <{level = 10 : i32, message = "bqd,bkd->bqk"}> : () -> ()
    %cst_95 = arith.constant dense<0.000000e+00> : vector<2x8x8xf32>
    %308 = tpu.matmul %305, %306, %cst_95 {dimension_numbers = #tpu.dot_dimension_numbers<[2], [2], [1], [1], [0, 0, 0, 1, 1, 1], [0], [0]>} : vector<2x8x8xf32>, vector<2x8x8xf32>, vector<2x8x8xf32> -> vector<2x8x8xf32>
    "tpu.trace_stop"() : () -> ()
    %cst_96 = arith.constant 0.353553385 : f32
    %309 = vector.broadcast %cst_96 : f32 to vector<2x8x8xf32>
    %310 = arith.mulf %308, %309 : vector<2x8x8xf32>
    %311 = arith.addf %310, %291 : vector<2x8x8xf32>
    %cst_97 = arith.constant dense<0xFF800000> : vector<2x8xf32>
    %312 = vector.multi_reduction <maximumf>, %311, %cst_97 [2] : vector<2x8x8xf32> to vector<2x8xf32>
    %313 = vector.shape_cast %312 : vector<2x8xf32> to vector<2x8x1xf32>
    %314 = vector.broadcast %313 : vector<2x8x1xf32> to vector<2x8x8xf32>
    %315 = arith.subf %311, %314 : vector<2x8x8xf32>
    %316 = math.exp %315 : vector<2x8x8xf32>
    %cst_98 = arith.constant dense<0.000000e+00> : vector<2x8xf32>
    %317 = vector.multi_reduction <add>, %316, %cst_98 [2] : vector<2x8x8xf32> to vector<2x8xf32>
    %318 = vector.shape_cast %317 : vector<2x8xf32> to vector<2x8x1xf32>
    %319 = tpu.reciprocal %318 {approx = true} : vector<2x8x1xf32> -> vector<2x8x1xf32>
    %320 = vector.broadcast %319 : vector<2x8x1xf32> to vector<2x8x8xf32>
    %321 = arith.mulf %316, %320 : vector<2x8x8xf32>
    "tpu.trace_start"() <{level = 10 : i32, message = "bqk,bkd->bqd"}> : () -> ()
    %cst_99 = arith.constant dense<0.000000e+00> : vector<2x8x8xf32>
    %322 = tpu.matmul %321, %307, %cst_99 {dimension_numbers = #tpu.dot_dimension_numbers<[2], [1], [1], [2], [0, 0, 0, 1, 1, 2], [0], [0]>} : vector<2x8x8xf32>, vector<2x8x8xf32>, vector<2x8x8xf32> -> vector<2x8x8xf32>
    "tpu.trace_stop"() : () -> ()
    %323 = vector.extract_strided_slice %300 {offsets = [0, 0, 8], sizes = [2, 8, 8], strides = [1, 1, 1]} : vector<2x8x32xf32> to vector<2x8x8xf32>
    %324 = vector.extract_strided_slice %302 {offsets = [0, 0, 8], sizes = [2, 8, 8], strides = [1, 1, 1]} : vector<2x8x32xf32> to vector<2x8x8xf32>
    %325 = vector.extract_strided_slice %304 {offsets = [0, 0, 8], sizes = [2, 8, 8], strides = [1, 1, 1]} : vector<2x8x32xf32> to vector<2x8x8xf32>
    "tpu.trace_start"() <{level = 10 : i32, message = "bqd,bkd->bqk"}> : () -> ()
    %cst_100 = arith.constant dense<0.000000e+00> : vector<2x8x8xf32>
    %326 = tpu.matmul %323, %324, %cst_100 {dimension_numbers = #tpu.dot_dimension_numbers<[2], [2], [1], [1], [0, 0, 0, 1, 1, 1], [0], [0]>} : vector<2x8x8xf32>, vector<2x8x8xf32>, vector<2x8x8xf32> -> vector<2x8x8xf32>
    "tpu.trace_stop"() : () -> ()
    %cst_101 = arith.constant 0.353553385 : f32
    %327 = vector.broadcast %cst_101 : f32 to vector<2x8x8xf32>
    %328 = arith.mulf %326, %327 : vector<2x8x8xf32>
    %329 = arith.addf %328, %291 : vector<2x8x8xf32>
    %cst_102 = arith.constant dense<0xFF800000> : vector<2x8xf32>
    %330 = vector.multi_reduction <maximumf>, %329, %cst_102 [2] : vector<2x8x8xf32> to vector<2x8xf32>
    %331 = vector.shape_cast %330 : vector<2x8xf32> to vector<2x8x1xf32>
    %332 = vector.broadcast %331 : vector<2x8x1xf32> to vector<2x8x8xf32>
    %333 = arith.subf %329, %332 : vector<2x8x8xf32>
    %334 = math.exp %333 : vector<2x8x8xf32>
    %cst_103 = arith.constant dense<0.000000e+00> : vector<2x8xf32>
    %335 = vector.multi_reduction <add>, %334, %cst_103 [2] : vector<2x8x8xf32> to vector<2x8xf32>
    %336 = vector.shape_cast %335 : vector<2x8xf32> to vector<2x8x1xf32>
    %337 = tpu.reciprocal %336 {approx = true} : vector<2x8x1xf32> -> vector<2x8x1xf32>
    %338 = vector.broadcast %337 : vector<2x8x1xf32> to vector<2x8x8xf32>
    %339 = arith.mulf %334, %338 : vector<2x8x8xf32>
    "tpu.trace_start"() <{level = 10 : i32, message = "bqk,bkd->bqd"}> : () -> ()
    %cst_104 = arith.constant dense<0.000000e+00> : vector<2x8x8xf32>
    %340 = tpu.matmul %339, %325, %cst_104 {dimension_numbers = #tpu.dot_dimension_numbers<[2], [1], [1], [2], [0, 0, 0, 1, 1, 2], [0], [0]>} : vector<2x8x8xf32>, vector<2x8x8xf32>, vector<2x8x8xf32> -> vector<2x8x8xf32>
    "tpu.trace_stop"() : () -> ()
    %341 = vector.extract_strided_slice %300 {offsets = [0, 0, 16], sizes = [2, 8, 8], strides = [1, 1, 1]} : vector<2x8x32xf32> to vector<2x8x8xf32>
    %342 = vector.extract_strided_slice %302 {offsets = [0, 0, 16], sizes = [2, 8, 8], strides = [1, 1, 1]} : vector<2x8x32xf32> to vector<2x8x8xf32>
    %343 = vector.extract_strided_slice %304 {offsets = [0, 0, 16], sizes = [2, 8, 8], strides = [1, 1, 1]} : vector<2x8x32xf32> to vector<2x8x8xf32>
    "tpu.trace_start"() <{level = 10 : i32, message = "bqd,bkd->bqk"}> : () -> ()
    %cst_105 = arith.constant dense<0.000000e+00> : vector<2x8x8xf32>
    %344 = tpu.matmul %341, %342, %cst_105 {dimension_numbers = #tpu.dot_dimension_numbers<[2], [2], [1], [1], [0, 0, 0, 1, 1, 1], [0], [0]>} : vector<2x8x8xf32>, vector<2x8x8xf32>, vector<2x8x8xf32> -> vector<2x8x8xf32>
    "tpu.trace_stop"() : () -> ()
    %cst_106 = arith.constant 0.353553385 : f32
    %345 = vector.broadcast %cst_106 : f32 to vector<2x8x8xf32>
    %346 = arith.mulf %344, %345 : vector<2x8x8xf32>
    %347 = arith.addf %346, %291 : vector<2x8x8xf32>
    %cst_107 = arith.constant dense<0xFF800000> : vector<2x8xf32>
    %348 = vector.multi_reduction <maximumf>, %347, %cst_107 [2] : vector<2x8x8xf32> to vector<2x8xf32>
    %349 = vector.shape_cast %348 : vector<2x8xf32> to vector<2x8x1xf32>
    %350 = vector.broadcast %349 : vector<2x8x1xf32> to vector<2x8x8xf32>
    %351 = arith.subf %347, %350 : vector<2x8x8xf32>
    %352 = math.exp %351 : vector<2x8x8xf32>
    %cst_108 = arith.constant dense<0.000000e+00> : vector<2x8xf32>
    %353 = vector.multi_reduction <add>, %352, %cst_108 [2] : vector<2x8x8xf32> to vector<2x8xf32>
    %354 = vector.shape_cast %353 : vector<2x8xf32> to vector<2x8x1xf32>
    %355 = tpu.reciprocal %354 {approx = true} : vector<2x8x1xf32> -> vector<2x8x1xf32>
    %356 = vector.broadcast %355 : vector<2x8x1xf32> to vector<2x8x8xf32>
    %357 = arith.mulf %352, %356 : vector<2x8x8xf32>
    "tpu.trace_start"() <{level = 10 : i32, message = "bqk,bkd->bqd"}> : () -> ()
    %cst_109 = arith.constant dense<0.000000e+00> : vector<2x8x8xf32>
    %358 = tpu.matmul %357, %343, %cst_109 {dimension_numbers = #tpu.dot_dimension_numbers<[2], [1], [1], [2], [0, 0, 0, 1, 1, 2], [0], [0]>} : vector<2x8x8xf32>, vector<2x8x8xf32>, vector<2x8x8xf32> -> vector<2x8x8xf32>
    "tpu.trace_stop"() : () -> ()
    %359 = vector.extract_strided_slice %300 {offsets = [0, 0, 24], sizes = [2, 8, 8], strides = [1, 1, 1]} : vector<2x8x32xf32> to vector<2x8x8xf32>
    %360 = vector.extract_strided_slice %302 {offsets = [0, 0, 24], sizes = [2, 8, 8], strides = [1, 1, 1]} : vector<2x8x32xf32> to vector<2x8x8xf32>
    %361 = vector.extract_strided_slice %304 {offsets = [0, 0, 24], sizes = [2, 8, 8], strides = [1, 1, 1]} : vector<2x8x32xf32> to vector<2x8x8xf32>
    "tpu.trace_start"() <{level = 10 : i32, message = "bqd,bkd->bqk"}> : () -> ()
    %cst_110 = arith.constant dense<0.000000e+00> : vector<2x8x8xf32>
    %362 = tpu.matmul %359, %360, %cst_110 {dimension_numbers = #tpu.dot_dimension_numbers<[2], [2], [1], [1], [0, 0, 0, 1, 1, 1], [0], [0]>} : vector<2x8x8xf32>, vector<2x8x8xf32>, vector<2x8x8xf32> -> vector<2x8x8xf32>
    "tpu.trace_stop"() : () -> ()
    %cst_111 = arith.constant 0.353553385 : f32
    %363 = vector.broadcast %cst_111 : f32 to vector<2x8x8xf32>
    %364 = arith.mulf %362, %363 : vector<2x8x8xf32>
    %365 = arith.addf %364, %291 : vector<2x8x8xf32>
    %cst_112 = arith.constant dense<0xFF800000> : vector<2x8xf32>
    %366 = vector.multi_reduction <maximumf>, %365, %cst_112 [2] : vector<2x8x8xf32> to vector<2x8xf32>
    %367 = vector.shape_cast %366 : vector<2x8xf32> to vector<2x8x1xf32>
    %368 = vector.broadcast %367 : vector<2x8x1xf32> to vector<2x8x8xf32>
    %369 = arith.subf %365, %368 : vector<2x8x8xf32>
    %370 = math.exp %369 : vector<2x8x8xf32>
    %cst_113 = arith.constant dense<0.000000e+00> : vector<2x8xf32>
    %371 = vector.multi_reduction <add>, %370, %cst_113 [2] : vector<2x8x8xf32> to vector<2x8xf32>
    %372 = vector.shape_cast %371 : vector<2x8xf32> to vector<2x8x1xf32>
    %373 = tpu.reciprocal %372 {approx = true} : vector<2x8x1xf32> -> vector<2x8x1xf32>
    %374 = vector.broadcast %373 : vector<2x8x1xf32> to vector<2x8x8xf32>
    %375 = arith.mulf %370, %374 : vector<2x8x8xf32>
    "tpu.trace_start"() <{level = 10 : i32, message = "bqk,bkd->bqd"}> : () -> ()
    %cst_114 = arith.constant dense<0.000000e+00> : vector<2x8x8xf32>
    %376 = tpu.matmul %375, %361, %cst_114 {dimension_numbers = #tpu.dot_dimension_numbers<[2], [1], [1], [2], [0, 0, 0, 1, 1, 2], [0], [0]>} : vector<2x8x8xf32>, vector<2x8x8xf32>, vector<2x8x8xf32> -> vector<2x8x8xf32>
    "tpu.trace_stop"() : () -> ()
    %377 = tpu.concatenate %322, %340, %358, %376 in 2 : vector<2x8x8xf32>, vector<2x8x8xf32>, vector<2x8x8xf32>, vector<2x8x8xf32> -> vector<2x8x32xf32>
    %378 = vector.shape_cast %377 : vector<2x8x32xf32> to vector<16x32xf32>
    %379 = vector.extract_strided_slice %280 {offsets = [0, 0, 0], sizes = [1, 32, 32], strides = [1, 1, 1]} : vector<2x32x32xf32> to vector<1x32x32xf32>
    %380 = vector.shape_cast %379 : vector<1x32x32xf32> to vector<32x32xf32>
    %cst_115 = arith.constant dense<0.000000e+00> : vector<16x32xf32>
    %381 = tpu.matmul %378, %380, %cst_115 {dimension_numbers = #tpu.dot_dimension_numbers<[1], [0], [0], [1], [0, 0, 1, 1], [], []>} : vector<16x32xf32>, vector<32x32xf32>, vector<16x32xf32> -> vector<16x32xf32>
    %382 = vector.extract_strided_slice %281 {offsets = [0, 0, 0], sizes = [1, 1, 32], strides = [1, 1, 1]} : vector<2x1x32xf32> to vector<1x1x32xf32>
    %383 = vector.shape_cast %382 : vector<1x1x32xf32> to vector<1x32xf32>
    %384 = vector.broadcast %383 : vector<1x32xf32> to vector<16x32xf32>
    %385 = arith.addf %381, %384 : vector<16x32xf32>
    %386 = vector.extract_strided_slice %286 {offsets = [0, 0, 0, 0], sizes = [1, 1, 1, 32], strides = [1, 1, 1, 1]} : vector<2x4x1x32xf32> to vector<1x1x1x32xf32>
    %387 = vector.shape_cast %386 : vector<1x1x1x32xf32> to vector<1x32xf32>
    %388 = vector.extract_strided_slice %286 {offsets = [0, 1, 0, 0], sizes = [1, 1, 1, 32], strides = [1, 1, 1, 1]} : vector<2x4x1x32xf32> to vector<1x1x1x32xf32>
    %389 = vector.shape_cast %388 : vector<1x1x1x32xf32> to vector<1x32xf32>
    %390 = vector.extract_strided_slice %286 {offsets = [0, 2, 0, 0], sizes = [1, 1, 1, 32], strides = [1, 1, 1, 1]} : vector<2x4x1x32xf32> to vector<1x1x1x32xf32>
    %391 = vector.shape_cast %390 : vector<1x1x1x32xf32> to vector<1x32xf32>
    %392 = vector.extract_strided_slice %286 {offsets = [0, 3, 0, 0], sizes = [1, 1, 1, 32], strides = [1, 1, 1, 1]} : vector<2x4x1x32xf32> to vector<1x1x1x32xf32>
    %393 = vector.shape_cast %392 : vector<1x1x1x32xf32> to vector<1x32xf32>
    %394 = arith.addf %277, %385 : vector<16x32xf32>
    %cst_116 = arith.constant dense<0.000000e+00> : vector<16xf32>
    %395 = vector.multi_reduction <add>, %394, %cst_116 [1] : vector<16x32xf32> to vector<16xf32>
    %396 = vector.shape_cast %395 : vector<16xf32> to vector<16x1xf32>
    %cst_117 = arith.constant 3.200000e+01 : f32
    %397 = vector.broadcast %cst_117 : f32 to vector<16x1xf32>
    %398 = arith.divf %396, %397 : vector<16x1xf32>
    %399 = vector.broadcast %398 : vector<16x1xf32> to vector<16x32xf32>
    %400 = arith.subf %394, %399 : vector<16x32xf32>
    %401 = arith.mulf %400, %400 : vector<16x32xf32>
    %cst_118 = arith.constant dense<0.000000e+00> : vector<16xf32>
    %402 = vector.multi_reduction <add>, %401, %cst_118 [1] : vector<16x32xf32> to vector<16xf32>
    %403 = vector.shape_cast %402 : vector<16xf32> to vector<16x1xf32>
    %cst_119 = arith.constant 0.0322580636 : f32
    %404 = vector.broadcast %cst_119 : f32 to vector<16x1xf32>
    %405 = arith.mulf %403, %404 : vector<16x1xf32>
    %406 = math.sqrt %405 : vector<16x1xf32>
    %cst_120 = arith.constant 9.99999997E-7 : f32
    %407 = vector.broadcast %cst_120 : f32 to vector<16x1xf32>
    %408 = arith.addf %406, %407 : vector<16x1xf32>
    %409 = tpu.reciprocal %408 {approx = true} : vector<16x1xf32> -> vector<16x1xf32>
    %410 = vector.broadcast %409 : vector<16x1xf32> to vector<16x32xf32>
    %411 = arith.mulf %400, %410 : vector<16x32xf32>
    %412 = vector.broadcast %387 : vector<1x32xf32> to vector<16x32xf32>
    %413 = arith.mulf %412, %411 : vector<16x32xf32>
    %414 = vector.broadcast %389 : vector<1x32xf32> to vector<16x32xf32>
    %415 = arith.addf %413, %414 : vector<16x32xf32>
    %416 = vector.extract_strided_slice %282 {offsets = [0, 0, 0], sizes = [1, 32, 64], strides = [1, 1, 1]} : vector<2x32x64xf32> to vector<1x32x64xf32>
    %417 = vector.shape_cast %416 : vector<1x32x64xf32> to vector<32x64xf32>
    %cst_121 = arith.constant dense<0.000000e+00> : vector<16x64xf32>
    %418 = tpu.matmul %415, %417, %cst_121 {dimension_numbers = #tpu.dot_dimension_numbers<[1], [0], [0], [1], [0, 0, 1, 1], [], []>} : vector<16x32xf32>, vector<32x64xf32>, vector<16x64xf32> -> vector<16x64xf32>
    %419 = vector.extract_strided_slice %283 {offsets = [0, 0, 0], sizes = [1, 1, 64], strides = [1, 1, 1]} : vector<2x1x64xf32> to vector<1x1x64xf32>
    %420 = vector.shape_cast %419 : vector<1x1x64xf32> to vector<1x64xf32>
    %421 = vector.broadcast %420 : vector<1x64xf32> to vector<16x64xf32>
    %422 = arith.addf %418, %421 : vector<16x64xf32>
    %cst_122 = arith.constant 0.000000e+00 : f32
    %423 = vector.broadcast %cst_122 : f32 to vector<16x64xf32>
    %424 = arith.maximumf %422, %423 : vector<16x64xf32>
    %425 = vector.extract_strided_slice %284 {offsets = [0, 0, 0], sizes = [1, 64, 32], strides = [1, 1, 1]} : vector<2x64x32xf32> to vector<1x64x32xf32>
    %426 = vector.shape_cast %425 : vector<1x64x32xf32> to vector<64x32xf32>
    %cst_123 = arith.constant dense<0.000000e+00> : vector<16x32xf32>
    %427 = tpu.matmul %424, %426, %cst_123 {dimension_numbers = #tpu.dot_dimension_numbers<[1], [0], [0], [1], [0, 0, 1, 1], [], []>} : vector<16x64xf32>, vector<64x32xf32>, vector<16x32xf32> -> vector<16x32xf32>
    %428 = vector.extract_strided_slice %285 {offsets = [0, 0, 0], sizes = [1, 1, 32], strides = [1, 1, 1]} : vector<2x1x32xf32> to vector<1x1x32xf32>
    %429 = vector.shape_cast %428 : vector<1x1x32xf32> to vector<1x32xf32>
    %430 = vector.broadcast %429 : vector<1x32xf32> to vector<16x32xf32>
    %431 = arith.addf %427, %430 : vector<16x32xf32>
    %432 = arith.addf %415, %431 : vector<16x32xf32>
    %cst_124 = arith.constant dense<0.000000e+00> : vector<16xf32>
    %433 = vector.multi_reduction <add>, %432, %cst_124 [1] : vector<16x32xf32> to vector<16xf32>
    %434 = vector.shape_cast %433 : vector<16xf32> to vector<16x1xf32>
    %cst_125 = arith.constant 3.200000e+01 : f32
    %435 = vector.broadcast %cst_125 : f32 to vector<16x1xf32>
    %436 = arith.divf %434, %435 : vector<16x1xf32>
    %437 = vector.broadcast %436 : vector<16x1xf32> to vector<16x32xf32>
    %438 = arith.subf %432, %437 : vector<16x32xf32>
    %439 = arith.mulf %438, %438 : vector<16x32xf32>
    %cst_126 = arith.constant dense<0.000000e+00> : vector<16xf32>
    %440 = vector.multi_reduction <add>, %439, %cst_126 [1] : vector<16x32xf32> to vector<16xf32>
    %441 = vector.shape_cast %440 : vector<16xf32> to vector<16x1xf32>
    %cst_127 = arith.constant 0.0322580636 : f32
    %442 = vector.broadcast %cst_127 : f32 to vector<16x1xf32>
    %443 = arith.mulf %441, %442 : vector<16x1xf32>
    %444 = math.sqrt %443 : vector<16x1xf32>
    %cst_128 = arith.constant 9.99999997E-7 : f32
    %445 = vector.broadcast %cst_128 : f32 to vector<16x1xf32>
    %446 = arith.addf %444, %445 : vector<16x1xf32>
    %447 = tpu.reciprocal %446 {approx = true} : vector<16x1xf32> -> vector<16x1xf32>
    %448 = vector.broadcast %447 : vector<16x1xf32> to vector<16x32xf32>
    %449 = arith.mulf %438, %448 : vector<16x32xf32>
    %450 = vector.broadcast %391 : vector<1x32xf32> to vector<16x32xf32>
    %451 = arith.mulf %450, %449 : vector<16x32xf32>
    %452 = vector.broadcast %393 : vector<1x32xf32> to vector<16x32xf32>
    %453 = arith.addf %451, %452 : vector<16x32xf32>
    %454 = vector.extract_strided_slice %278 {offsets = [1, 0, 0], sizes = [1, 32, 96], strides = [1, 1, 1]} : vector<2x32x96xf32> to vector<1x32x96xf32>
    %455 = vector.shape_cast %454 : vector<1x32x96xf32> to vector<32x96xf32>
    %cst_129 = arith.constant dense<0.000000e+00> : vector<16x96xf32>
    %456 = tpu.matmul %453, %455, %cst_129 {dimension_numbers = #tpu.dot_dimension_numbers<[1], [0], [0], [1], [0, 0, 1, 1], [], []>} : vector<16x32xf32>, vector<32x96xf32>, vector<16x96xf32> -> vector<16x96xf32>
    %457 = vector.extract_strided_slice %279 {offsets = [1, 0, 0], sizes = [1, 1, 96], strides = [1, 1, 1]} : vector<2x1x96xf32> to vector<1x1x96xf32>
    %458 = vector.shape_cast %457 : vector<1x1x96xf32> to vector<1x96xf32>
    %459 = vector.broadcast %458 : vector<1x96xf32> to vector<16x96xf32>
    %460 = arith.addf %456, %459 : vector<16x96xf32>
    %461 = vector.extract_strided_slice %460 {offsets = [0, 0], sizes = [16, 32], strides = [1, 1]} : vector<16x96xf32> to vector<16x32xf32>
    %462 = vector.shape_cast %461 : vector<16x32xf32> to vector<2x8x32xf32>
    %463 = vector.extract_strided_slice %460 {offsets = [0, 32], sizes = [16, 32], strides = [1, 1]} : vector<16x96xf32> to vector<16x32xf32>
    %464 = vector.shape_cast %463 : vector<16x32xf32> to vector<2x8x32xf32>
    %465 = vector.extract_strided_slice %460 {offsets = [0, 64], sizes = [16, 32], strides = [1, 1]} : vector<16x96xf32> to vector<16x32xf32>
    %466 = vector.shape_cast %465 : vector<16x32xf32> to vector<2x8x32xf32>
    %467 = vector.extract_strided_slice %462 {offsets = [0, 0, 0], sizes = [2, 8, 8], strides = [1, 1, 1]} : vector<2x8x32xf32> to vector<2x8x8xf32>
    %468 = vector.extract_strided_slice %464 {offsets = [0, 0, 0], sizes = [2, 8, 8], strides = [1, 1, 1]} : vector<2x8x32xf32> to vector<2x8x8xf32>
    %469 = vector.extract_strided_slice %466 {offsets = [0, 0, 0], sizes = [2, 8, 8], strides = [1, 1, 1]} : vector<2x8x32xf32> to vector<2x8x8xf32>
    "tpu.trace_start"() <{level = 10 : i32, message = "bqd,bkd->bqk"}> : () -> ()
    %cst_130 = arith.constant dense<0.000000e+00> : vector<2x8x8xf32>
    %470 = tpu.matmul %467, %468, %cst_130 {dimension_numbers = #tpu.dot_dimension_numbers<[2], [2], [1], [1], [0, 0, 0, 1, 1, 1], [0], [0]>} : vector<2x8x8xf32>, vector<2x8x8xf32>, vector<2x8x8xf32> -> vector<2x8x8xf32>
    "tpu.trace_stop"() : () -> ()
    %cst_131 = arith.constant 0.353553385 : f32
    %471 = vector.broadcast %cst_131 : f32 to vector<2x8x8xf32>
    %472 = arith.mulf %470, %471 : vector<2x8x8xf32>
    %473 = arith.addf %472, %291 : vector<2x8x8xf32>
    %cst_132 = arith.constant dense<0xFF800000> : vector<2x8xf32>
    %474 = vector.multi_reduction <maximumf>, %473, %cst_132 [2] : vector<2x8x8xf32> to vector<2x8xf32>
    %475 = vector.shape_cast %474 : vector<2x8xf32> to vector<2x8x1xf32>
    %476 = vector.broadcast %475 : vector<2x8x1xf32> to vector<2x8x8xf32>
    %477 = arith.subf %473, %476 : vector<2x8x8xf32>
    %478 = math.exp %477 : vector<2x8x8xf32>
    %cst_133 = arith.constant dense<0.000000e+00> : vector<2x8xf32>
    %479 = vector.multi_reduction <add>, %478, %cst_133 [2] : vector<2x8x8xf32> to vector<2x8xf32>
    %480 = vector.shape_cast %479 : vector<2x8xf32> to vector<2x8x1xf32>
    %481 = tpu.reciprocal %480 {approx = true} : vector<2x8x1xf32> -> vector<2x8x1xf32>
    %482 = vector.broadcast %481 : vector<2x8x1xf32> to vector<2x8x8xf32>
    %483 = arith.mulf %478, %482 : vector<2x8x8xf32>
    "tpu.trace_start"() <{level = 10 : i32, message = "bqk,bkd->bqd"}> : () -> ()
    %cst_134 = arith.constant dense<0.000000e+00> : vector<2x8x8xf32>
    %484 = tpu.matmul %483, %469, %cst_134 {dimension_numbers = #tpu.dot_dimension_numbers<[2], [1], [1], [2], [0, 0, 0, 1, 1, 2], [0], [0]>} : vector<2x8x8xf32>, vector<2x8x8xf32>, vector<2x8x8xf32> -> vector<2x8x8xf32>
    "tpu.trace_stop"() : () -> ()
    %485 = vector.extract_strided_slice %462 {offsets = [0, 0, 8], sizes = [2, 8, 8], strides = [1, 1, 1]} : vector<2x8x32xf32> to vector<2x8x8xf32>
    %486 = vector.extract_strided_slice %464 {offsets = [0, 0, 8], sizes = [2, 8, 8], strides = [1, 1, 1]} : vector<2x8x32xf32> to vector<2x8x8xf32>
    %487 = vector.extract_strided_slice %466 {offsets = [0, 0, 8], sizes = [2, 8, 8], strides = [1, 1, 1]} : vector<2x8x32xf32> to vector<2x8x8xf32>
    "tpu.trace_start"() <{level = 10 : i32, message = "bqd,bkd->bqk"}> : () -> ()
    %cst_135 = arith.constant dense<0.000000e+00> : vector<2x8x8xf32>
    %488 = tpu.matmul %485, %486, %cst_135 {dimension_numbers = #tpu.dot_dimension_numbers<[2], [2], [1], [1], [0, 0, 0, 1, 1, 1], [0], [0]>} : vector<2x8x8xf32>, vector<2x8x8xf32>, vector<2x8x8xf32> -> vector<2x8x8xf32>
    "tpu.trace_stop"() : () -> ()
    %cst_136 = arith.constant 0.353553385 : f32
    %489 = vector.broadcast %cst_136 : f32 to vector<2x8x8xf32>
    %490 = arith.mulf %488, %489 : vector<2x8x8xf32>
    %491 = arith.addf %490, %291 : vector<2x8x8xf32>
    %cst_137 = arith.constant dense<0xFF800000> : vector<2x8xf32>
    %492 = vector.multi_reduction <maximumf>, %491, %cst_137 [2] : vector<2x8x8xf32> to vector<2x8xf32>
    %493 = vector.shape_cast %492 : vector<2x8xf32> to vector<2x8x1xf32>
    %494 = vector.broadcast %493 : vector<2x8x1xf32> to vector<2x8x8xf32>
    %495 = arith.subf %491, %494 : vector<2x8x8xf32>
    %496 = math.exp %495 : vector<2x8x8xf32>
    %cst_138 = arith.constant dense<0.000000e+00> : vector<2x8xf32>
    %497 = vector.multi_reduction <add>, %496, %cst_138 [2] : vector<2x8x8xf32> to vector<2x8xf32>
    %498 = vector.shape_cast %497 : vector<2x8xf32> to vector<2x8x1xf32>
    %499 = tpu.reciprocal %498 {approx = true} : vector<2x8x1xf32> -> vector<2x8x1xf32>
    %500 = vector.broadcast %499 : vector<2x8x1xf32> to vector<2x8x8xf32>
    %501 = arith.mulf %496, %500 : vector<2x8x8xf32>
    "tpu.trace_start"() <{level = 10 : i32, message = "bqk,bkd->bqd"}> : () -> ()
    %cst_139 = arith.constant dense<0.000000e+00> : vector<2x8x8xf32>
    %502 = tpu.matmul %501, %487, %cst_139 {dimension_numbers = #tpu.dot_dimension_numbers<[2], [1], [1], [2], [0, 0, 0, 1, 1, 2], [0], [0]>} : vector<2x8x8xf32>, vector<2x8x8xf32>, vector<2x8x8xf32> -> vector<2x8x8xf32>
    "tpu.trace_stop"() : () -> ()
    %503 = vector.extract_strided_slice %462 {offsets = [0, 0, 16], sizes = [2, 8, 8], strides = [1, 1, 1]} : vector<2x8x32xf32> to vector<2x8x8xf32>
    %504 = vector.extract_strided_slice %464 {offsets = [0, 0, 16], sizes = [2, 8, 8], strides = [1, 1, 1]} : vector<2x8x32xf32> to vector<2x8x8xf32>
    %505 = vector.extract_strided_slice %466 {offsets = [0, 0, 16], sizes = [2, 8, 8], strides = [1, 1, 1]} : vector<2x8x32xf32> to vector<2x8x8xf32>
    "tpu.trace_start"() <{level = 10 : i32, message = "bqd,bkd->bqk"}> : () -> ()
    %cst_140 = arith.constant dense<0.000000e+00> : vector<2x8x8xf32>
    %506 = tpu.matmul %503, %504, %cst_140 {dimension_numbers = #tpu.dot_dimension_numbers<[2], [2], [1], [1], [0, 0, 0, 1, 1, 1], [0], [0]>} : vector<2x8x8xf32>, vector<2x8x8xf32>, vector<2x8x8xf32> -> vector<2x8x8xf32>
    "tpu.trace_stop"() : () -> ()
    %cst_141 = arith.constant 0.353553385 : f32
    %507 = vector.broadcast %cst_141 : f32 to vector<2x8x8xf32>
    %508 = arith.mulf %506, %507 : vector<2x8x8xf32>
    %509 = arith.addf %508, %291 : vector<2x8x8xf32>
    %cst_142 = arith.constant dense<0xFF800000> : vector<2x8xf32>
    %510 = vector.multi_reduction <maximumf>, %509, %cst_142 [2] : vector<2x8x8xf32> to vector<2x8xf32>
    %511 = vector.shape_cast %510 : vector<2x8xf32> to vector<2x8x1xf32>
    %512 = vector.broadcast %511 : vector<2x8x1xf32> to vector<2x8x8xf32>
    %513 = arith.subf %509, %512 : vector<2x8x8xf32>
    %514 = math.exp %513 : vector<2x8x8xf32>
    %cst_143 = arith.constant dense<0.000000e+00> : vector<2x8xf32>
    %515 = vector.multi_reduction <add>, %514, %cst_143 [2] : vector<2x8x8xf32> to vector<2x8xf32>
    %516 = vector.shape_cast %515 : vector<2x8xf32> to vector<2x8x1xf32>
    %517 = tpu.reciprocal %516 {approx = true} : vector<2x8x1xf32> -> vector<2x8x1xf32>
    %518 = vector.broadcast %517 : vector<2x8x1xf32> to vector<2x8x8xf32>
    %519 = arith.mulf %514, %518 : vector<2x8x8xf32>
    "tpu.trace_start"() <{level = 10 : i32, message = "bqk,bkd->bqd"}> : () -> ()
    %cst_144 = arith.constant dense<0.000000e+00> : vector<2x8x8xf32>
    %520 = tpu.matmul %519, %505, %cst_144 {dimension_numbers = #tpu.dot_dimension_numbers<[2], [1], [1], [2], [0, 0, 0, 1, 1, 2], [0], [0]>} : vector<2x8x8xf32>, vector<2x8x8xf32>, vector<2x8x8xf32> -> vector<2x8x8xf32>
    "tpu.trace_stop"() : () -> ()
    %521 = vector.extract_strided_slice %462 {offsets = [0, 0, 24], sizes = [2, 8, 8], strides = [1, 1, 1]} : vector<2x8x32xf32> to vector<2x8x8xf32>
    %522 = vector.extract_strided_slice %464 {offsets = [0, 0, 24], sizes = [2, 8, 8], strides = [1, 1, 1]} : vector<2x8x32xf32> to vector<2x8x8xf32>
    %523 = vector.extract_strided_slice %466 {offsets = [0, 0, 24], sizes = [2, 8, 8], strides = [1, 1, 1]} : vector<2x8x32xf32> to vector<2x8x8xf32>
    "tpu.trace_start"() <{level = 10 : i32, message = "bqd,bkd->bqk"}> : () -> ()
    %cst_145 = arith.constant dense<0.000000e+00> : vector<2x8x8xf32>
    %524 = tpu.matmul %521, %522, %cst_145 {dimension_numbers = #tpu.dot_dimension_numbers<[2], [2], [1], [1], [0, 0, 0, 1, 1, 1], [0], [0]>} : vector<2x8x8xf32>, vector<2x8x8xf32>, vector<2x8x8xf32> -> vector<2x8x8xf32>
    "tpu.trace_stop"() : () -> ()
    %cst_146 = arith.constant 0.353553385 : f32
    %525 = vector.broadcast %cst_146 : f32 to vector<2x8x8xf32>
    %526 = arith.mulf %524, %525 : vector<2x8x8xf32>
    %527 = arith.addf %526, %291 : vector<2x8x8xf32>
    %cst_147 = arith.constant dense<0xFF800000> : vector<2x8xf32>
    %528 = vector.multi_reduction <maximumf>, %527, %cst_147 [2] : vector<2x8x8xf32> to vector<2x8xf32>
    %529 = vector.shape_cast %528 : vector<2x8xf32> to vector<2x8x1xf32>
    %530 = vector.broadcast %529 : vector<2x8x1xf32> to vector<2x8x8xf32>
    %531 = arith.subf %527, %530 : vector<2x8x8xf32>
    %532 = math.exp %531 : vector<2x8x8xf32>
    %cst_148 = arith.constant dense<0.000000e+00> : vector<2x8xf32>
    %533 = vector.multi_reduction <add>, %532, %cst_148 [2] : vector<2x8x8xf32> to vector<2x8xf32>
    %534 = vector.shape_cast %533 : vector<2x8xf32> to vector<2x8x1xf32>
    %535 = tpu.reciprocal %534 {approx = true} : vector<2x8x1xf32> -> vector<2x8x1xf32>
    %536 = vector.broadcast %535 : vector<2x8x1xf32> to vector<2x8x8xf32>
    %537 = arith.mulf %532, %536 : vector<2x8x8xf32>
    "tpu.trace_start"() <{level = 10 : i32, message = "bqk,bkd->bqd"}> : () -> ()
    %cst_149 = arith.constant dense<0.000000e+00> : vector<2x8x8xf32>
    %538 = tpu.matmul %537, %523, %cst_149 {dimension_numbers = #tpu.dot_dimension_numbers<[2], [1], [1], [2], [0, 0, 0, 1, 1, 2], [0], [0]>} : vector<2x8x8xf32>, vector<2x8x8xf32>, vector<2x8x8xf32> -> vector<2x8x8xf32>
    "tpu.trace_stop"() : () -> ()
    %539 = tpu.concatenate %484, %502, %520, %538 in 2 : vector<2x8x8xf32>, vector<2x8x8xf32>, vector<2x8x8xf32>, vector<2x8x8xf32> -> vector<2x8x32xf32>
    %540 = vector.shape_cast %539 : vector<2x8x32xf32> to vector<16x32xf32>
    %541 = vector.extract_strided_slice %280 {offsets = [1, 0, 0], sizes = [1, 32, 32], strides = [1, 1, 1]} : vector<2x32x32xf32> to vector<1x32x32xf32>
    %542 = vector.shape_cast %541 : vector<1x32x32xf32> to vector<32x32xf32>
    %cst_150 = arith.constant dense<0.000000e+00> : vector<16x32xf32>
    %543 = tpu.matmul %540, %542, %cst_150 {dimension_numbers = #tpu.dot_dimension_numbers<[1], [0], [0], [1], [0, 0, 1, 1], [], []>} : vector<16x32xf32>, vector<32x32xf32>, vector<16x32xf32> -> vector<16x32xf32>
    %544 = vector.extract_strided_slice %281 {offsets = [1, 0, 0], sizes = [1, 1, 32], strides = [1, 1, 1]} : vector<2x1x32xf32> to vector<1x1x32xf32>
    %545 = vector.shape_cast %544 : vector<1x1x32xf32> to vector<1x32xf32>
    %546 = vector.broadcast %545 : vector<1x32xf32> to vector<16x32xf32>
    %547 = arith.addf %543, %546 : vector<16x32xf32>
    %548 = vector.extract_strided_slice %286 {offsets = [1, 0, 0, 0], sizes = [1, 1, 1, 32], strides = [1, 1, 1, 1]} : vector<2x4x1x32xf32> to vector<1x1x1x32xf32>
    %549 = vector.shape_cast %548 : vector<1x1x1x32xf32> to vector<1x32xf32>
    %550 = vector.extract_strided_slice %286 {offsets = [1, 1, 0, 0], sizes = [1, 1, 1, 32], strides = [1, 1, 1, 1]} : vector<2x4x1x32xf32> to vector<1x1x1x32xf32>
    %551 = vector.shape_cast %550 : vector<1x1x1x32xf32> to vector<1x32xf32>
    %552 = vector.extract_strided_slice %286 {offsets = [1, 2, 0, 0], sizes = [1, 1, 1, 32], strides = [1, 1, 1, 1]} : vector<2x4x1x32xf32> to vector<1x1x1x32xf32>
    %553 = vector.shape_cast %552 : vector<1x1x1x32xf32> to vector<1x32xf32>
    %554 = vector.extract_strided_slice %286 {offsets = [1, 3, 0, 0], sizes = [1, 1, 1, 32], strides = [1, 1, 1, 1]} : vector<2x4x1x32xf32> to vector<1x1x1x32xf32>
    %555 = vector.shape_cast %554 : vector<1x1x1x32xf32> to vector<1x32xf32>
    %556 = arith.addf %453, %547 : vector<16x32xf32>
    %cst_151 = arith.constant dense<0.000000e+00> : vector<16xf32>
    %557 = vector.multi_reduction <add>, %556, %cst_151 [1] : vector<16x32xf32> to vector<16xf32>
    %558 = vector.shape_cast %557 : vector<16xf32> to vector<16x1xf32>
    %cst_152 = arith.constant 3.200000e+01 : f32
    %559 = vector.broadcast %cst_152 : f32 to vector<16x1xf32>
    %560 = arith.divf %558, %559 : vector<16x1xf32>
    %561 = vector.broadcast %560 : vector<16x1xf32> to vector<16x32xf32>
    %562 = arith.subf %556, %561 : vector<16x32xf32>
    %563 = arith.mulf %562, %562 : vector<16x32xf32>
    %cst_153 = arith.constant dense<0.000000e+00> : vector<16xf32>
    %564 = vector.multi_reduction <add>, %563, %cst_153 [1] : vector<16x32xf32> to vector<16xf32>
    %565 = vector.shape_cast %564 : vector<16xf32> to vector<16x1xf32>
    %cst_154 = arith.constant 0.0322580636 : f32
    %566 = vector.broadcast %cst_154 : f32 to vector<16x1xf32>
    %567 = arith.mulf %565, %566 : vector<16x1xf32>
    %568 = math.sqrt %567 : vector<16x1xf32>
    %cst_155 = arith.constant 9.99999997E-7 : f32
    %569 = vector.broadcast %cst_155 : f32 to vector<16x1xf32>
    %570 = arith.addf %568, %569 : vector<16x1xf32>
    %571 = tpu.reciprocal %570 {approx = true} : vector<16x1xf32> -> vector<16x1xf32>
    %572 = vector.broadcast %571 : vector<16x1xf32> to vector<16x32xf32>
    %573 = arith.mulf %562, %572 : vector<16x32xf32>
    %574 = vector.broadcast %549 : vector<1x32xf32> to vector<16x32xf32>
    %575 = arith.mulf %574, %573 : vector<16x32xf32>
    %576 = vector.broadcast %551 : vector<1x32xf32> to vector<16x32xf32>
    %577 = arith.addf %575, %576 : vector<16x32xf32>
    %578 = vector.extract_strided_slice %282 {offsets = [1, 0, 0], sizes = [1, 32, 64], strides = [1, 1, 1]} : vector<2x32x64xf32> to vector<1x32x64xf32>
    %579 = vector.shape_cast %578 : vector<1x32x64xf32> to vector<32x64xf32>
    %cst_156 = arith.constant dense<0.000000e+00> : vector<16x64xf32>
    %580 = tpu.matmul %577, %579, %cst_156 {dimension_numbers = #tpu.dot_dimension_numbers<[1], [0], [0], [1], [0, 0, 1, 1], [], []>} : vector<16x32xf32>, vector<32x64xf32>, vector<16x64xf32> -> vector<16x64xf32>
    %581 = vector.extract_strided_slice %283 {offsets = [1, 0, 0], sizes = [1, 1, 64], strides = [1, 1, 1]} : vector<2x1x64xf32> to vector<1x1x64xf32>
    %582 = vector.shape_cast %581 : vector<1x1x64xf32> to vector<1x64xf32>
    %583 = vector.broadcast %582 : vector<1x64xf32> to vector<16x64xf32>
    %584 = arith.addf %580, %583 : vector<16x64xf32>
    %cst_157 = arith.constant 0.000000e+00 : f32
    %585 = vector.broadcast %cst_157 : f32 to vector<16x64xf32>
    %586 = arith.maximumf %584, %585 : vector<16x64xf32>
    %587 = vector.extract_strided_slice %284 {offsets = [1, 0, 0], sizes = [1, 64, 32], strides = [1, 1, 1]} : vector<2x64x32xf32> to vector<1x64x32xf32>
    %588 = vector.shape_cast %587 : vector<1x64x32xf32> to vector<64x32xf32>
    %cst_158 = arith.constant dense<0.000000e+00> : vector<16x32xf32>
    %589 = tpu.matmul %586, %588, %cst_158 {dimension_numbers = #tpu.dot_dimension_numbers<[1], [0], [0], [1], [0, 0, 1, 1], [], []>} : vector<16x64xf32>, vector<64x32xf32>, vector<16x32xf32> -> vector<16x32xf32>
    %590 = vector.extract_strided_slice %285 {offsets = [1, 0, 0], sizes = [1, 1, 32], strides = [1, 1, 1]} : vector<2x1x32xf32> to vector<1x1x32xf32>
    %591 = vector.shape_cast %590 : vector<1x1x32xf32> to vector<1x32xf32>
    %592 = vector.broadcast %591 : vector<1x32xf32> to vector<16x32xf32>
    %593 = arith.addf %589, %592 : vector<16x32xf32>
    %594 = arith.addf %577, %593 : vector<16x32xf32>
    %cst_159 = arith.constant dense<0.000000e+00> : vector<16xf32>
    %595 = vector.multi_reduction <add>, %594, %cst_159 [1] : vector<16x32xf32> to vector<16xf32>
    %596 = vector.shape_cast %595 : vector<16xf32> to vector<16x1xf32>
    %cst_160 = arith.constant 3.200000e+01 : f32
    %597 = vector.broadcast %cst_160 : f32 to vector<16x1xf32>
    %598 = arith.divf %596, %597 : vector<16x1xf32>
    %599 = vector.broadcast %598 : vector<16x1xf32> to vector<16x32xf32>
    %600 = arith.subf %594, %599 : vector<16x32xf32>
    %601 = arith.mulf %600, %600 : vector<16x32xf32>
    %cst_161 = arith.constant dense<0.000000e+00> : vector<16xf32>
    %602 = vector.multi_reduction <add>, %601, %cst_161 [1] : vector<16x32xf32> to vector<16xf32>
    %603 = vector.shape_cast %602 : vector<16xf32> to vector<16x1xf32>
    %cst_162 = arith.constant 0.0322580636 : f32
    %604 = vector.broadcast %cst_162 : f32 to vector<16x1xf32>
    %605 = arith.mulf %603, %604 : vector<16x1xf32>
    %606 = math.sqrt %605 : vector<16x1xf32>
    %cst_163 = arith.constant 9.99999997E-7 : f32
    %607 = vector.broadcast %cst_163 : f32 to vector<16x1xf32>
    %608 = arith.addf %606, %607 : vector<16x1xf32>
    %609 = tpu.reciprocal %608 {approx = true} : vector<16x1xf32> -> vector<16x1xf32>
    %610 = vector.broadcast %609 : vector<16x1xf32> to vector<16x32xf32>
    %611 = arith.mulf %600, %610 : vector<16x32xf32>
    %612 = vector.broadcast %553 : vector<1x32xf32> to vector<16x32xf32>
    %613 = arith.mulf %612, %611 : vector<16x32xf32>
    %614 = vector.broadcast %555 : vector<1x32xf32> to vector<16x32xf32>
    %615 = arith.addf %613, %614 : vector<16x32xf32>
    %616 = vector.shape_cast %615 : vector<16x32xf32> to vector<2x8x32xf32>
    %c0_164 = arith.constant 0 : index
    %c0_165 = arith.constant 0 : index
    %c0_166 = arith.constant 0 : index
    %617 = vector.load %arg22[%c0_164, %c0_165, %c0_166] : memref<2x8x32xf32, #tpu.memory_space<vmem>>, vector<2x8x32xf32>
    tpu.vector_store %arg22[%c0_164, %c0_165, %c0_166], %616 {strides = array<i32>} : memref<2x8x32xf32, #tpu.memory_space<vmem>>, vector<2x8x32xf32>,
    %c0_167 = arith.constant 0 : index
    %c0_168 = arith.constant 0 : index
    %618 = vector.load %arg15[%c0_167, %c0_168] : memref<32x64xf32, #tpu.memory_space<vmem>>, vector<32x64xf32>
    %cst_169 = arith.constant dense<0.000000e+00> : vector<16x64xf32>
    %619 = tpu.matmul %615, %618, %cst_169 {dimension_numbers = #tpu.dot_dimension_numbers<[1], [0], [0], [1], [0, 0, 1, 1], [], []>} : vector<16x32xf32>, vector<32x64xf32>, vector<16x64xf32> -> vector<16x64xf32>
    %c0_170 = arith.constant 0 : index
    %c0_171 = arith.constant 0 : index
    %620 = vector.load %arg16[%c0_170, %c0_171] : memref<1x64xf32, #tpu.memory_space<vmem>>, vector<1x64xf32>
    %621 = vector.broadcast %620 : vector<1x64xf32> to vector<16x64xf32>
    %622 = arith.addf %619, %621 : vector<16x64xf32>
    %cst_172 = arith.constant 0.000000e+00 : f32
    %623 = vector.broadcast %cst_172 : f32 to vector<16x64xf32>
    %624 = arith.maximumf %622, %623 : vector<16x64xf32>
    %c0_173 = arith.constant 0 : index
    %c0_174 = arith.constant 0 : index
    %625 = vector.load %arg17[%c0_173, %c0_174] : memref<64x1xf32, #tpu.memory_space<vmem>>, vector<64x1xf32>
    %cst_175 = arith.constant dense<0.000000e+00> : vector<16x1xf32>
    %626 = tpu.matmul %624, %625, %cst_175 {dimension_numbers = #tpu.dot_dimension_numbers<[1], [0], [0], [1], [0, 0, 1, 1], [], []>} : vector<16x64xf32>, vector<64x1xf32>, vector<16x1xf32> -> vector<16x1xf32>
    %c0_176 = arith.constant 0 : index
    %c0_177 = arith.constant 0 : index
    %627 = vector.load %arg18[%c0_176, %c0_177] : memref<1x1xf32, #tpu.memory_space<vmem>>, vector<1x1xf32>
    %628 = vector.broadcast %627 : vector<1x1xf32> to vector<16x1xf32>
    %629 = arith.addf %626, %628 : vector<16x1xf32>
    %630 = vector.shape_cast %629 : vector<16x1xf32> to vector<2x8x1xf32>
    %cst_178 = arith.constant -1.000000e+09 : f32
    %631 = vector.broadcast %cst_178 : f32 to vector<2x8xf32>
    %632 = arith.mulf %1, %631 : vector<2x8xf32>
    %633 = vector.shape_cast %632 : vector<2x8xf32> to vector<2x8x1xf32>
    %634 = arith.addf %630, %633 : vector<2x8x1xf32>
    %cst_179 = arith.constant dense<0xFF800000> : vector<2x1xf32>
    %635 = vector.multi_reduction <maximumf>, %634, %cst_179 [1] : vector<2x8x1xf32> to vector<2x1xf32>
    %636 = vector.shape_cast %635 : vector<2x1xf32> to vector<2x1x1xf32>
    %637 = vector.broadcast %636 : vector<2x1x1xf32> to vector<2x8x1xf32>
    %638 = arith.subf %634, %637 : vector<2x8x1xf32>
    %639 = math.exp %638 : vector<2x8x1xf32>
    %cst_180 = arith.constant dense<0.000000e+00> : vector<2x1xf32>
    %640 = vector.multi_reduction <add>, %639, %cst_180 [1] : vector<2x8x1xf32> to vector<2x1xf32>
    %641 = vector.shape_cast %640 : vector<2x1xf32> to vector<2x1x1xf32>
    %642 = tpu.reciprocal %641 {approx = true} : vector<2x1x1xf32> -> vector<2x1x1xf32>
    %643 = vector.broadcast %642 : vector<2x1x1xf32> to vector<2x8x1xf32>
    %644 = arith.mulf %639, %643 : vector<2x8x1xf32>
    %645 = vector.shape_cast %615 : vector<16x32xf32> to vector<2x8x32xf32>
    %646 = vector.broadcast %644 : vector<2x8x1xf32> to vector<2x8x32xf32>
    %647 = arith.mulf %646, %645 : vector<2x8x32xf32>
    %cst_181 = arith.constant dense<0.000000e+00> : vector<2x32xf32>
    %648 = vector.multi_reduction <add>, %647, %cst_181 [1] : vector<2x8x32xf32> to vector<2x32xf32>
    %c0_182 = arith.constant 0 : index
    %c0_183 = arith.constant 0 : index
    %649 = vector.load %arg19[%c0_182, %c0_183] : memref<32x64xf32, #tpu.memory_space<vmem>>, vector<32x64xf32>
    %cst_184 = arith.constant dense<0.000000e+00> : vector<2x64xf32>
    %650 = tpu.matmul %648, %649, %cst_184 {dimension_numbers = #tpu.dot_dimension_numbers<[1], [0], [0], [1], [0, 0, 1, 1], [], []>} : vector<2x32xf32>, vector<32x64xf32>, vector<2x64xf32> -> vector<2x64xf32>
    %c0_185 = arith.constant 0 : index
    %c0_186 = arith.constant 0 : index
    %651 = vector.load %arg20[%c0_185, %c0_186] : memref<1x64xf32, #tpu.memory_space<vmem>>, vector<1x64xf32>
    %652 = vector.broadcast %651 : vector<1x64xf32> to vector<2x64xf32>
    %653 = arith.addf %650, %652 : vector<2x64xf32>
    %c0_187 = arith.constant 0 : index
    %c0_188 = arith.constant 0 : index
    %654 = vector.load %arg21[%c0_187, %c0_188] : memref<2x64xf32, #tpu.memory_space<vmem>>, vector<2x64xf32>
    tpu.vector_store %arg21[%c0_187, %c0_188], %653 {strides = array<i32>} : memref<2x64xf32, #tpu.memory_space<vmem>>, vector<2x64xf32>,
    return
  }
}

</mosaic_0001>

<bundles_post_ra>
// kernel: lstm_sa_forward.1
= control target key start
LH: loop header
LB: loop body
LE: loop exit
PB: predicated region body
PF: predicated region fallthrough
CT: control target
= control target key end

     0   :  { %s7767_s0 = inlined_call_operand.vmem [shape: f32[2,8,32], index: 0, kind: input, shape index: {}]   ;;  %s7768_s1 = inlined_call_operand.vmem [shape: f32[2,8], index: 1, kind: input, shape index: {}]   ;;  %s7769_s2 = inlined_call_operand.vmem [shape: f32[32,96], index: 2, kind: input, shape index: {}]   ;;  %s7770_s3 = inlined_call_operand.vmem [shape: f32[32,96], index: 3, kind: input, shape index: {}]   ;;  %s7771_s4 = inlined_call_operand.vmem [shape: f32[1,96], index: 4, kind: input, shape index: {}]   ;;  %s7772_s5 = inlined_call_operand.vmem [shape: f32[1,96], index: 5, kind: input, shape index: {}]   ;;  %s7773_s6 = inlined_call_operand.vmem [shape: f32[2,32,96], index: 6, kind: input, shape index: {}]   ;;  %s7774_s7 = inlined_call_operand.vmem [shape: f32[2,1,96], index: 7, kind: input, shape index: {}]   ;;  %s7775_s8 = inlined_call_operand.vmem [shape: f32[2,32,32], index: 8, kind: input, shape index: {}]   ;;  %s7776_s9 = inlined_call_operand.vmem [shape: f32[2,1,32], index: 9, kind: input, shape index: {}]   ;;  %s7777_s10 = inlined_call_operand.vmem [shape: f32[2,32,64], index: 10, kind: input, shape index: {}]   ;;  %s7778_s11 = inlined_call_operand.vmem [shape: f32[2,1,64], index: 11, kind: input, shape index: {}]   ;;  %s7779_s12 = inlined_call_operand.vmem [shape: f32[2,64,32], index: 12, kind: input, shape index: {}]   ;;  %s7780_s13 = inlined_call_operand.vmem [shape: f32[2,1,32], index: 13, kind: input, shape index: {}]   ;;  %s7781_s14 = inlined_call_operand.vmem [shape: f32[2,4,1,32], index: 14, kind: input, shape index: {}]   ;;  %s7782_s15 = inlined_call_operand.vmem [shape: f32[32,64], index: 15, kind: input, shape index: {}]   ;;  %s7783_s16 = inlined_call_operand.vmem [shape: f32[1,64], index: 16, kind: input, shape index: {}]   ;;  %s7784_s17 = inlined_call_operand.vmem [shape: f32[64,1], index: 17, kind: input, shape index: {}]   ;;  %s7785_s18 = inlined_call_operand.<no memory space> [shape: f32[1,1], index: 18, kind: input, shape index: {}]   ;;  %s7786_s19 = inlined_call_operand.vmem [shape: f32[32,64], index: 19, kind: input, shape index: {}]   ;;  %s7787_s20 = inlined_call_operand.vmem [shape: f32[1,64], index: 20, kind: input, shape index: {}]   ;;  %s7788_s21 = inlined_call_operand.hbm [shape: f32[2,64], index: 21, kind: output, shape index: {0}]   ;;  %s7789_s22 = inlined_call_operand.hbm [shape: f32[2,8,32], index: 22, kind: output, shape index: {1}]  }
   0x1   :  { %7812 = sst [smem:[#allocation10_spill]] %s7767_s0  ;;  %v28_v0 = vstv %s7785_s18 }
   0x2   :  { %7813 = sst [smem:[#allocation11_spill]] %s7768_s1  ;;  %29 = vst [vmem:[#allocation3] sm:$0x1] %v28_v0 }
   0x3   :  { %7814 = sst [smem:[#allocation12_spill]] %s7769_s2 }
   0x4   :  { %7815 = sst [smem:[#allocation13_spill]] %s7770_s3 }
   0x5   :  { %7816 = sst [smem:[#allocation14_spill]] %s7771_s4 }
   0x6   :  { %7817 = sst [smem:[#allocation15_spill]] %s7772_s5 }
   0x7   :  { %7818 = sst [smem:[#allocation16_spill]] %s7773_s6 }
   0x8   :  { %30 = vsyncpa [#allocation5], 0  ;;  %s7819_s4 = sld [smem:[#allocation12_spill]]  ;;  %s7820_s24 = sld [smem:[#allocation13_spill]]  ;;  %v6637_v4 = vmov 0.0|0.0   ;;  %vm6638_vm0 = vmmov 0  }
   0x9   :  { %6207 = vmatprep.subr.bf16.mxu1 %v6637_v4  ;;  %v6639_v9 = vmov 0.0   ;;  %vm93_vm1 = vcmask 261120  }
   0xa   :  { %5814 = vmatprep.mubr.msk.f32.mxu1 %vm6638_vm0, %v6639_v9 }
   0xe   :  { %v77_v1 = vld [vmem:[%s7819_s4] sm:$0xff]  ;;  %v78_v2 = vld [vmem:[%s7819_s4 + $0x8] sm:$0xff]  ;;  %v79_v7 = vld [vmem:[%s7819_s4 + $0x10] sm:$0xff] }
   0xf   :  { %v81_v3 = vld [vmem:[%s7820_s24] sm:$0xff]  ;;  %v6199_v5 = vpack.c.bf16 %v78_v2, %v77_v1  ;;  %v82_v6 = vld [vmem:[%s7820_s24 + $0x8] sm:$0xff]  ;;  %v80_v8 = vld [vmem:[%s7819_s4 + $0x18] sm:$0xff]  ;;  %s7821_s4 = sld [smem:[#allocation10_spill]] }
  0x10   :  { %v6798_v10 = vpack.c.bf16 %v82_v6, %v81_v3  ;;  %v6203_v11 = vpack.c.bf16 %v80_v8, %v79_v7  ;;  %v83_v12 = vld [vmem:[%s7820_s24 + $0x10] sm:$0xff]  ;;  %v84_v13 = vld [vmem:[%s7820_s24 + $0x18] sm:$0xff] }
  0x11   :  { %6200 = vmatprep.subr.bf16.mxu0 %v6199_v5 }
  0x15   :  { %v74_v14 = vld [vmem:[%s7821_s4] sm:$0xff] }
  0x16   :  { %5803 = vmatprep.mubr.msk.f32.mxu0 %vm93_vm1, %v74_v14 }
  0x17   :  { %31 = vsyncpa [#allocation7], 0  ;;  %6209 = vmatpush3.bf16.msra.mxu1 %v6798_v10  ;;  %6202 = vmatpush3.bf16.msra.mxu0 %v6199_v5  ;;  %v6811_v15 = vpack.c.bf16 %v84_v13, %v83_v12  ;;  %v75_v16 = vld [vmem:[%s7821_s4 + $0x8] sm:$0xff]  ;;  %s7822_s18 = sld [smem:[#allocation15_spill]]  ;;  %s6640_s25 = smov 64   ;;  %vm320_vm2 = vcmask 1041409  }
  0x18   :  { %6210 = vmatprep.subr.bf16.mxu1 %v6637_v4  ;;  %6204 = vmatprep.subr.bf16.mxu0 %v6203_v11  ;;  %s7823_s27 = sld [smem:[#allocation14_spill]]  ;;  %s6641_s3 = smov 96   ;;  %vm461_vm3 = vcmask 254977   ;;  %vm316_vm4 = vcmask 253952   ;;  %vm754_vm5 = vcmask 257027   ;;  %vm607_vm6 = vcmask 256002  }
  0x19   :  { %s7824_s30 = sld [smem:[#allocation16_spill]]  ;;  %vm1048_vm7 = vcmask 259077   ;;  %vm901_vm8 = vcmask 258052   ;;  %vm1195_vm9 = vcmask 260102   ;;  %vm1342_vm10 = vcmask 261127   ;;  %s6643_s28 = smov 88  }
  0x1a   :  { %vm1527_vm11 = vcmask 64512   ;;  %s6644_s29 = smov 120   ;;  %s6645_s0 = smov 56   ;;  %vm2885_vm12 = vcmask 130048   ;;  %vm2888_vm13 = vcmask 195584  }
  0x1b   :  { %6212 = vmatpush3.bf16.msra.mxu1 %v6811_v15  ;;  %6206 = vmatpush3.bf16.msra.mxu0 %v6203_v11  ;;  %s7810_s23 = smov 80   ;;  %s7808_s4 = smov 112  }
  0x1c   :  { %6213 = vmatprep.subr.bf16.mxu0 %v6637_v4  ;;  %6219 = vmatprep.subr.bf16.mxu1 %v6637_v4  ;;  %s7804_s1 = smov 48   ;;  %s7802_s5 = smov 72  }
  0x1d   :  { %v6837_v17 = vld [vmem:[%s7822_s18] ss:$0 sm:$0xff]  ;;  %s7800_s24 = smov 104   ;;  %s7798_s6 = smov 40  }
  0x1e   :  { %5815 = vmatmul.mubr.f32.vlgmr.msra.gmra.mrb[0].mxu1 %v6639_v9  ;;  %5804 = vmatmul.mubr.msk.f32.vlgmr.msra.gmra.mrb[0].mxu0 %vm93_vm1, %v75_v16  ;;  %v5493_v24 = vld [vmem:[%s7823_s27] ss:$0 sm:$0xff]  ;;  %s7825_s27 = sld [smem:[#allocation11_spill]]  ;;  %s7796_s18 = smov 8  }
  0x1f   :  { %6215 = vmatpush3.bf16.msra.mxu0 %v6798_v10  ;;  %5825 = vmatprep.mubr.msk.f32.mxu0 %vm6638_vm0, %v6639_v9  ;;  %s7794_s26 = smov 16   ;;  %s7806_s2 = smov 24  }
  0x20   :  { %6216 = vmatprep.subr.bf16.mxu0 %v6637_v4  ;;  %6221 = vmatpush3.bf16.msra.mxu1 %v6798_v10 }
  0x21   :  { %6222 = vmatprep.subr.bf16.mxu1 %v6637_v4  ;;  %5836 = vmatprep.mubr.msk.f32.mxu1 %vm6638_vm0, %v6639_v9 }
  0x23   :  { %6218 = vmatpush3.bf16.msra.mxu0 %v6811_v15 }
  0x24   :  { %6224 = vmatpush3.bf16.msra.mxu1 %v6811_v15  ;;  %6225 = vmatprep.subr.bf16.mxu0 %v6637_v4 }
  0x25   :  { %6231 = vmatprep.subr.bf16.mxu1 %v6637_v4 }
  0xf1   :  { %v250_v18 = vpop.f32.mrb[0].mxu1  ;;  %v5805_v19 = vpop.f32.mrb[0].mxu0 }
  0xf2   :  { %v251_v20 = vadd.f32 %v6837_v17, %v250_v18  ;;  %v5816_v21 = vpop.f32.mrb[1].mxu1  ;;  %v166_v22 = vpop.f32.mrb[1].mxu0  ;;  %v6845_v25 = vadd.f32 %v5805_v19, %v5493_v24 }
  0xf3   :  { %v6847_v26 = vadd.f32 %v5493_v24, %v166_v22 }
  0xf4   :  { %v255_v23 = vrot.slane %v251_v20, 1 }
  0xf5   :  { %v258_v29 = vadd.f32 %v251_v20, %v6847_v26 }
  0xf6   :  { %274 = vrot.lane.b32.xlu0 %v255_v23, %s6640_s25  ;;  %v259_v27 = vadd.f32 %v255_v23, %v6845_v25 }
  0xf7   :  { %v5497_v30 = vmul.f32 -1.442695, %v258_v29 }
  0xf8   :  { %v5498_v28 = vmul.f32 -1.442695, %v259_v27 }
  0xfa   :  { %272 = vrot.lane.b32.xlu0 %v251_v20, %s6640_s25  ;;  %6389 = vpow2.f32 %v5498_v28 }
  0xfb   :  { %6391 = vpow2.f32 %v5497_v30 }
 0x104   :  { %v6390_v31 = vpop.eup %6389 }
 0x105   :  { %v267_v32 = vadd.f32 1.0, %v6390_v31  ;;  %v6392_v33 = vpop.eup %6391 }
 0x106   :  { %v266_v34 = vadd.f32 1.0, %v6392_v33 }
 0x107   :  { %6393 = vrcp.f32 %v267_v32 }
 0x108   :  { %6395 = vrcp.f32 %v266_v34 }
 0x111   :  { %v6394_v35 = vpop.eup %6393 }
 0x112   :  { %v6396_v38 = vpop.eup %6395  ;;  %v293_v47 = vsub.f32 1.0, %v6394_v35  ;;  %v305_v49 = vmul.f32 0.0, %v6394_v35 }
 0x113   :  { %v292_v52 = vsub.f32 1.0, %v6396_v38  ;;  %v304_v54 = vmul.f32 0.0, %v6396_v38 }
 0x168   :  { %v275_v36 = vpop.permute.xlu0 %274 }
 0x169   :  { %v279_v37 = vmul.f32 %v6394_v35, %v275_v36 }
 0x16b   :  { %284 = vrot.lane.b32.xlu1 %v279_v37, %s6640_s25 }
 0x16c   :  { %v273_v39 = vpop.permute.xlu0 %272 }
 0x16d   :  { %v278_v40 = vmul.f32 %v6396_v38, %v273_v39 }
 0x16f   :  { %282 = vrot.lane.b32.xlu1 %v278_v40, %s6640_s25 }
 0x1dd   :  { %v285_v41 = vpop.permute.xlu1 %284 }
 0x1de   :  { %v289_v42 = vadd.f32 %v285_v41, %v6845_v25 }
 0x1e0   :  { %6397 = vtanh.f32 %v289_v42 }
 0x1e1   :  { %v283_v43 = vpop.permute.xlu1 %282 }
 0x1e2   :  { %v288_v44 = vadd.f32 %v283_v43, %v6847_v26 }
 0x1e4   :  { %6399 = vtanh.f32 %v288_v44 }
 0x1ea   :  { %v6398_v45 = vpop.eup %6397 }
 0x1eb   :  { %298 = vrot.lane.b32.xlu0 %v6398_v45, %s6641_s3 }
 0x1ee   :  { %v6400_v46 = vpop.eup %6399 }
 0x1ef   :  { %296 = vrot.lane.b32.xlu1 %v6400_v46, %s6641_s3 }
 0x25d   :  { %v299_v48 = vpop.permute.xlu0 %298 }
 0x25e   :  { %v303_v50 = vmul.f32 %v299_v48, %v293_v47 }
 0x260   :  { %v6857_v51 = vadd.f32 %v305_v49, %v303_v50 }
 0x261   :  { %v297_v53 = vpop.permute.xlu1 %296 }
 0x262   :  { %v302_v55 = vmul.f32 %v297_v53, %v292_v52  ;;  %v319_v56 = vrot.slane %v6857_v51, 7 }
 0x264   :  { %v6860_v57 = vadd.f32 %v304_v54, %v302_v55 }
 0x266   :  { %v321_v58 = vsel %vm320_vm2, %v319_v56, %v6860_v57  ;;  %v446_v30 = vrot.slane %v6860_v57, 7 }
 0x267   :  { %322 = vrot.lane.b32.xlu0 %v321_v58, %s6641_s3 }
 0x2d9   :  { %v323_v59 = vpop.permute.xlu0 %322 }
 0x2da   :  { %5826 = vmatmul.mubr.msk.f32.vlgmr.msra.gmra.mrb[2].mxu0 %vm93_vm1, %v323_v59 }
 0x2db   :  { %6227 = vmatpush3.bf16.msra.mxu0 %v6798_v10  ;;  %5847 = vmatprep.mubr.msk.f32.mxu0 %vm6638_vm0, %v6639_v9 }
 0x2dc   :  { %6228 = vmatprep.subr.bf16.mxu0 %v6637_v4 }
 0x2df   :  { %6230 = vmatpush3.bf16.msra.mxu0 %v6811_v15 }
 0x2e0   :  { %6237 = vmatprep.subr.bf16.mxu0 %v6637_v4 }
 0x3ad   :  { %v392_v60 = vpop.f32.mrb[2].mxu0 }
 0x3ae   :  { %v393_v61 = vadd.f32 %v6837_v17, %v392_v60  ;;  %v5827_v62 = vpop.f32.mrb[3].mxu0 }
 0x3b0   :  { %416 = vrot.lane.b32.xlu0 %v393_v61, %s6640_s25  ;;  %v397_v63 = vrot.slane %v393_v61, 7  ;;  %v401_v0 = vadd.f32 %v393_v61, %v6845_v25 }
 0x3b2   :  { %414 = vrot.lane.b32.xlu1 %v397_v63, %s6640_s25  ;;  %v400_v1 = vadd.f32 %v397_v63, %v6847_v26  ;;  %v5501_v2 = vmul.f32 -1.442695, %v401_v0 }
 0x3b4   :  { %v5500_v3 = vmul.f32 -1.442695, %v400_v1  ;;  %6401 = vpow2.f32 %v5501_v2 }
 0x3b6   :  { %6403 = vpow2.f32 %v5500_v3 }
 0x3be   :  { %v6402_v5 = vpop.eup %6401 }
 0x3bf   :  { %v409_v7 = vadd.f32 1.0, %v6402_v5 }
 0x3c0   :  { %v6404_v6 = vpop.eup %6403 }
 0x3c1   :  { %v408_v8 = vadd.f32 1.0, %v6404_v6  ;;  %6405 = vrcp.f32 %v409_v7 }
 0x3c3   :  { %6407 = vrcp.f32 %v408_v8 }
 0x3cb   :  { %v6406_v11 = vpop.eup %6405 }
 0x3cc   :  { %v435_v28 = vsub.f32 1.0, %v6406_v11  ;;  %v450_v35 = vmul.f32 %v6406_v11, %v319_v56 }
 0x3cd   :  { %v6408_v14 = vpop.eup %6407 }
 0x3ce   :  { %v434_v29 = vsub.f32 1.0, %v6408_v14  ;;  %v449_v33 = vmul.f32 %v6408_v14, %v446_v30 }
 0x422   :  { %v417_v12 = vpop.permute.xlu0 %416 }
 0x423   :  { %v421_v13 = vmul.f32 %v6406_v11, %v417_v12 }
 0x424   :  { %v415_v16 = vpop.permute.xlu1 %414 }
 0x425   :  { %v420_v18 = vmul.f32 %v6408_v14, %v415_v16  ;;  %426 = vrot.lane.b32.xlu0 %v421_v13, %s6640_s25 }
 0x427   :  { %424 = vrot.lane.b32.xlu1 %v420_v18, %s6640_s25 }
 0x497   :  { %v427_v19 = vpop.permute.xlu0 %426 }
 0x498   :  { %v431_v20 = vadd.f32 %v427_v19, %v6845_v25 }
 0x499   :  { %v425_v21 = vpop.permute.xlu1 %424 }
 0x49a   :  { %6409 = vtanh.f32 %v431_v20  ;;  %v430_v22 = vadd.f32 %v425_v21, %v6847_v26 }
 0x49c   :  { %6411 = vtanh.f32 %v430_v22 }
 0x4a4   :  { %v6410_v23 = vpop.eup %6409 }
 0x4a5   :  { %440 = vrot.lane.b32.xlu0 %v6410_v23, %s6641_s3 }
 0x4a6   :  { %v6412_v24 = vpop.eup %6411 }
 0x4a7   :  { %438 = vrot.lane.b32.xlu1 %v6412_v24, %s6641_s3 }
 0x517   :  { %v441_v27 = vpop.permute.xlu0 %440 }
 0x518   :  { %v445_v32 = vmul.f32 %v441_v27, %v435_v28 }
 0x519   :  { %v439_v31 = vpop.permute.xlu1 %438 }
 0x51a   :  { %v444_v34 = vmul.f32 %v439_v31, %v434_v29  ;;  %v6886_v37 = vadd.f32 %v450_v35, %v445_v32 }
 0x51c   :  { %v6884_v36 = vadd.f32 %v449_v33, %v444_v34  ;;  %v592_v6 = vrot.slane %v6886_v37, 7 }
 0x51e   :  { %v464_v38 = vrot.slane %v6884_v36, 1  ;;  %v591_v11 = vrot.slane %v6884_v36, 7 }
 0x520   :  { %v465_v39 = vsel %vm320_vm2, %v6886_v37, %v464_v38 }
 0x521   :  { %466 = vrot.lane.b32.xlu1 %v465_v39, %s6641_s3 }
 0x593   :  { %v467_v40 = vpop.permute.xlu1 %466 }
 0x594   :  { %5837 = vmatmul.mubr.msk.f32.vlgmr.msra.gmra.mrb[2].mxu1 %vm93_vm1, %v467_v40 }
 0x595   :  { %6233 = vmatpush3.bf16.msra.mxu1 %v6798_v10  ;;  %5858 = vmatprep.mubr.msk.f32.mxu1 %vm6638_vm0, %v6639_v9 }
 0x596   :  { %6234 = vmatprep.subr.bf16.mxu1 %v6637_v4 }
 0x599   :  { %6236 = vmatpush3.bf16.msra.mxu1 %v6811_v15 }
 0x59a   :  { %6243 = vmatprep.subr.bf16.mxu1 %v6637_v4 }
 0x667   :  { %v536_v41 = vpop.f32.mrb[2].mxu1 }
 0x668   :  { %v537_v42 = vadd.f32 %v6837_v17, %v536_v41  ;;  %v5838_v43 = vpop.f32.mrb[3].mxu1 }
 0x66a   :  { %v541_v44 = vrot.slane %v537_v42, 6  ;;  %v542_v45 = vrot.slane %v537_v42, 7 }
 0x66c   :  { %561 = vrot.lane.b32.xlu1 %v542_v45, %s6640_s25  ;;  %559 = vrot.lane.b32.xlu0 %v541_v44, %s6640_s25  ;;  %v545_v46 = vadd.f32 %v541_v44, %v6847_v26  ;;  %v546_v47 = vadd.f32 %v542_v45, %v6845_v25 }
 0x66e   :  { %v5503_v48 = vmul.f32 -1.442695, %v545_v46  ;;  %v5504_v49 = vmul.f32 -1.442695, %v546_v47 }
 0x670   :  { %6413 = vpow2.f32 %v5503_v48 }
 0x671   :  { %6415 = vpow2.f32 %v5504_v49 }
 0x67a   :  { %v6414_v50 = vpop.eup %6413 }
 0x67b   :  { %v6416_v52 = vpop.eup %6415  ;;  %v553_v53 = vadd.f32 1.0, %v6414_v50 }
 0x67c   :  { %v554_v54 = vadd.f32 1.0, %v6416_v52 }
 0x67d   :  { %6417 = vrcp.f32 %v553_v53 }
 0x67e   :  { %6419 = vrcp.f32 %v554_v54 }
 0x687   :  { %v6418_v55 = vpop.eup %6417 }
 0x688   :  { %v6420_v56 = vpop.eup %6419  ;;  %v579_v8 = vsub.f32 1.0, %v6418_v55  ;;  %v595_v16 = vmul.f32 %v6418_v55, %v591_v11 }
 0x689   :  { %v580_v5 = vsub.f32 1.0, %v6420_v56  ;;  %v596_v12 = vmul.f32 %v6420_v56, %v592_v6 }
 0x6de   :  { %v562_v58 = vpop.permute.xlu1 %561  ;;  %v560_v59 = vpop.permute.xlu0 %559 }
 0x6df   :  { %v566_v60 = vmul.f32 %v6420_v56, %v562_v58  ;;  %v565_v61 = vmul.f32 %v6418_v55, %v560_v59 }
 0x6e1   :  { %571 = vrot.lane.b32.xlu1 %v566_v60, %s6640_s25  ;;  %569 = vrot.lane.b32.xlu0 %v565_v61, %s6640_s25 }
 0x753   :  { %v572_v62 = vpop.permute.xlu1 %571  ;;  %v570_v63 = vpop.permute.xlu0 %569 }
 0x754   :  { %v576_v0 = vadd.f32 %v572_v62, %v6845_v25  ;;  %v575_v1 = vadd.f32 %v570_v63, %v6847_v26 }
 0x756   :  { %6421 = vtanh.f32 %v576_v0 }
 0x757   :  { %6423 = vtanh.f32 %v575_v1 }
 0x760   :  { %v6422_v2 = vpop.eup %6421 }
 0x761   :  { %v6424_v3 = vpop.eup %6423  ;;  %585 = vrot.lane.b32.xlu1 %v6422_v2, %s6641_s3 }
 0x762   :  { %583 = vrot.lane.b32.xlu0 %v6424_v3, %s6641_s3 }
 0x7d3   :  { %v586_v7 = vpop.permute.xlu1 %585 }
 0x7d4   :  { %v590_v13 = vmul.f32 %v586_v7, %v580_v5  ;;  %v584_v14 = vpop.permute.xlu0 %583 }
 0x7d5   :  { %v589_v18 = vmul.f32 %v584_v14, %v579_v8 }
 0x7d6   :  { %v6912_v19 = vadd.f32 %v596_v12, %v590_v13 }
 0x7d7   :  { %v6914_v20 = vadd.f32 %v595_v16, %v589_v18 }
 0x7d8   :  { %v611_v21 = vrot.slane %v6912_v19, 1  ;;  %v739_v56 = vrot.slane %v6912_v19, 7 }
 0x7d9   :  { %v610_v22 = vrot.slane %v6914_v20, 2  ;;  %v738_v60 = vrot.slane %v6914_v20, 7 }
 0x7db   :  { %v612_v23 = vsel %vm320_vm2, %v611_v21, %v610_v22 }
 0x7dc   :  { %613 = vrot.lane.b32.xlu0 %v612_v23, %s6641_s3 }
 0x84e   :  { %v614_v24 = vpop.permute.xlu0 %613 }
 0x84f   :  { %5848 = vmatmul.mubr.msk.f32.vlgmr.msra.gmra.mrb[4].mxu0 %vm93_vm1, %v614_v24 }
 0x850   :  { %6239 = vmatpush3.bf16.msra.mxu0 %v6798_v10  ;;  %5869 = vmatprep.mubr.msk.f32.mxu0 %vm6638_vm0, %v6639_v9 }
 0x851   :  { %6240 = vmatprep.subr.bf16.mxu0 %v6637_v4 }
 0x854   :  { %6242 = vmatpush3.bf16.msra.mxu0 %v6811_v15 }
 0x855   :  { %6249 = vmatprep.subr.bf16.mxu0 %v6637_v4 }
 0x922   :  { %v683_v27 = vpop.f32.mrb[4].mxu0 }
 0x923   :  { %v684_v28 = vadd.f32 %v6837_v17, %v683_v27  ;;  %v5849_v29 = vpop.f32.mrb[5].mxu0 }
 0x925   :  { %v688_v30 = vrot.slane %v684_v28, 5  ;;  %v689_v31 = vrot.slane %v684_v28, 6 }
 0x927   :  { %708 = vrot.lane.b32.xlu0 %v689_v31, %s6640_s25  ;;  %706 = vrot.lane.b32.xlu1 %v688_v30, %s6640_s25  ;;  %v692_v32 = vadd.f32 %v688_v30, %v6847_v26  ;;  %v693_v33 = vadd.f32 %v689_v31, %v6845_v25 }
 0x929   :  { %v5506_v34 = vmul.f32 -1.442695, %v692_v32  ;;  %v5507_v35 = vmul.f32 -1.442695, %v693_v33 }
 0x92b   :  { %6425 = vpow2.f32 %v5506_v34 }
 0x92c   :  { %6427 = vpow2.f32 %v5507_v35 }
 0x935   :  { %v6426_v38 = vpop.eup %6425 }
 0x936   :  { %v6428_v39 = vpop.eup %6427  ;;  %v700_v40 = vadd.f32 1.0, %v6426_v38 }
 0x937   :  { %v701_v41 = vadd.f32 1.0, %v6428_v39 }
 0x938   :  { %6429 = vrcp.f32 %v700_v40 }
 0x939   :  { %6431 = vrcp.f32 %v701_v41 }
 0x942   :  { %v6430_v42 = vpop.eup %6429 }
 0x943   :  { %v6432_v43 = vpop.eup %6431  ;;  %v726_v59 = vsub.f32 1.0, %v6430_v42  ;;  %v742_v0 = vmul.f32 %v6430_v42, %v738_v60 }
 0x944   :  { %v727_v55 = vsub.f32 1.0, %v6432_v43  ;;  %v743_v61 = vmul.f32 %v6432_v43, %v739_v56 }
 0x999   :  { %v709_v44 = vpop.permute.xlu0 %708  ;;  %v707_v45 = vpop.permute.xlu1 %706 }
 0x99a   :  { %v713_v46 = vmul.f32 %v6432_v43, %v709_v44  ;;  %v712_v47 = vmul.f32 %v6430_v42, %v707_v45 }
 0x99c   :  { %718 = vrot.lane.b32.xlu0 %v713_v46, %s6640_s25  ;;  %716 = vrot.lane.b32.xlu1 %v712_v47, %s6640_s25 }
 0xa0e   :  { %v719_v48 = vpop.permute.xlu0 %718  ;;  %v717_v49 = vpop.permute.xlu1 %716 }
 0xa0f   :  { %v723_v50 = vadd.f32 %v719_v48, %v6845_v25  ;;  %v722_v52 = vadd.f32 %v717_v49, %v6847_v26 }
 0xa11   :  { %6433 = vtanh.f32 %v723_v50 }
 0xa12   :  { %6435 = vtanh.f32 %v722_v52 }
 0xa1b   :  { %v6434_v53 = vpop.eup %6433 }
 0xa1c   :  { %v6436_v54 = vpop.eup %6435  ;;  %732 = vrot.lane.b32.xlu0 %v6434_v53, %s6641_s3 }
 0xa1d   :  { %730 = vrot.lane.b32.xlu1 %v6436_v54, %s6641_s3 }
 0xa8e   :  { %v733_v58 = vpop.permute.xlu0 %732 }
 0xa8f   :  { %v737_v62 = vmul.f32 %v733_v58, %v727_v55  ;;  %v731_v63 = vpop.permute.xlu1 %730 }
 0xa90   :  { %v736_v1 = vmul.f32 %v731_v63, %v726_v59 }
 0xa91   :  { %v6940_v2 = vadd.f32 %v743_v61, %v737_v62 }
 0xa92   :  { %v6942_v3 = vadd.f32 %v742_v0, %v736_v1 }
 0xa93   :  { %v758_v5 = vrot.slane %v6940_v2, 2  ;;  %v886_v45 = vrot.slane %v6940_v2, 7 }
 0xa94   :  { %v757_v6 = vrot.slane %v6942_v3, 3  ;;  %v885_v48 = vrot.slane %v6942_v3, 7 }
 0xa96   :  { %v759_v7 = vsel %vm320_vm2, %v758_v5, %v757_v6 }
 0xa97   :  { %760 = vrot.lane.b32.xlu1 %v759_v7, %s6641_s3 }
 0xb09   :  { %v761_v8 = vpop.permute.xlu1 %760 }
 0xb0a   :  { %5859 = vmatmul.mubr.msk.f32.vlgmr.msra.gmra.mrb[4].mxu1 %vm93_vm1, %v761_v8 }
 0xb0b   :  { %6245 = vmatpush3.bf16.msra.mxu1 %v6798_v10  ;;  %5880 = vmatprep.mubr.msk.f32.mxu1 %vm6638_vm0, %v6639_v9 }
 0xb0c   :  { %6246 = vmatprep.subr.bf16.mxu1 %v6637_v4 }
 0xb0f   :  { %6248 = vmatpush3.bf16.msra.mxu1 %v6811_v15 }
 0xbdd   :  { %v830_v11 = vpop.f32.mrb[4].mxu1 }
 0xbde   :  { %v831_v12 = vadd.f32 %v6837_v17, %v830_v11  ;;  %v5860_v13 = vpop.f32.mrb[5].mxu1 }
 0xbe0   :  { %v835_v14 = vrot.slane %v831_v12, 4  ;;  %v836_v16 = vrot.slane %v831_v12, 5 }
 0xbe2   :  { %855 = vrot.lane.b32.xlu1 %v836_v16, %s6640_s25  ;;  %853 = vrot.lane.b32.xlu0 %v835_v14, %s6640_s25  ;;  %v839_v18 = vadd.f32 %v835_v14, %v6847_v26  ;;  %v840_v21 = vadd.f32 %v836_v16, %v6845_v25 }
 0xbe4   :  { %v5509_v22 = vmul.f32 -1.442695, %v839_v18  ;;  %v5510_v23 = vmul.f32 -1.442695, %v840_v21 }
 0xbe6   :  { %6437 = vpow2.f32 %v5509_v22 }
 0xbe7   :  { %6439 = vpow2.f32 %v5510_v23 }
 0xbf0   :  { %v6438_v24 = vpop.eup %6437 }
 0xbf1   :  { %v6440_v27 = vpop.eup %6439  ;;  %v847_v28 = vadd.f32 1.0, %v6438_v24 }
 0xbf2   :  { %v848_v29 = vadd.f32 1.0, %v6440_v27 }
 0xbf3   :  { %6441 = vrcp.f32 %v847_v28 }
 0xbf4   :  { %6443 = vrcp.f32 %v848_v29 }
 0xbfd   :  { %v6442_v30 = vpop.eup %6441 }
 0xbfe   :  { %v6444_v31 = vpop.eup %6443  ;;  %v873_v47 = vsub.f32 1.0, %v6442_v30  ;;  %v889_v53 = vmul.f32 %v6442_v30, %v885_v48 }
 0xbff   :  { %v874_v44 = vsub.f32 1.0, %v6444_v31  ;;  %v890_v49 = vmul.f32 %v6444_v31, %v886_v45 }
 0xc54   :  { %v856_v32 = vpop.permute.xlu1 %855  ;;  %v854_v33 = vpop.permute.xlu0 %853 }
 0xc55   :  { %v860_v34 = vmul.f32 %v6444_v31, %v856_v32  ;;  %v859_v35 = vmul.f32 %v6442_v30, %v854_v33 }
 0xc57   :  { %865 = vrot.lane.b32.xlu1 %v860_v34, %s6640_s25  ;;  %863 = vrot.lane.b32.xlu0 %v859_v35, %s6640_s25 }
 0xcc9   :  { %v866_v38 = vpop.permute.xlu1 %865  ;;  %v864_v39 = vpop.permute.xlu0 %863 }
 0xcca   :  { %v870_v40 = vadd.f32 %v866_v38, %v6845_v25  ;;  %v869_v41 = vadd.f32 %v864_v39, %v6847_v26 }
 0xccc   :  { %6445 = vtanh.f32 %v870_v40 }
 0xccd   :  { %6447 = vtanh.f32 %v869_v41 }
 0xcd6   :  { %v6446_v42 = vpop.eup %6445 }
 0xcd7   :  { %v6448_v43 = vpop.eup %6447  ;;  %879 = vrot.lane.b32.xlu1 %v6446_v42, %s6641_s3 }
 0xcd8   :  { %877 = vrot.lane.b32.xlu0 %v6448_v43, %s6641_s3 }
 0xd49   :  { %v880_v46 = vpop.permute.xlu1 %879 }
 0xd4a   :  { %v884_v50 = vmul.f32 %v880_v46, %v874_v44  ;;  %v878_v52 = vpop.permute.xlu0 %877 }
 0xd4b   :  { %v883_v54 = vmul.f32 %v878_v52, %v873_v47 }
 0xd4c   :  { %v6967_v55 = vadd.f32 %v890_v49, %v884_v50 }
 0xd4d   :  { %v6969_v56 = vadd.f32 %v889_v53, %v883_v54 }
 0xd4e   :  { %v905_v58 = vrot.slane %v6967_v55, 3  ;;  %v1033_v33 = vrot.slane %v6967_v55, 7 }
 0xd4f   :  { %v904_v59 = vrot.slane %v6969_v56, 4  ;;  %v1032_v38 = vrot.slane %v6969_v56, 7 }
 0xd51   :  { %v906_v60 = vsel %vm320_vm2, %v905_v58, %v904_v59 }
 0xd52   :  { %907 = vrot.lane.b32.xlu0 %v906_v60, %s6641_s3 }
 0xdc4   :  { %v908_v61 = vpop.permute.xlu0 %907 }
 0xdc5   :  { %5870 = vmatmul.mubr.msk.f32.vlgmr.msra.gmra.mrb[6].mxu0 %vm93_vm1, %v908_v61 }
 0xdc6   :  { %6251 = vmatpush3.bf16.msra.mxu0 %v6798_v10  ;;  %5891 = vmatprep.mubr.msk.f32.mxu0 %vm6638_vm0, %v6639_v9 }
 0xdc7   :  { %6252 = vmatprep.subr.bf16.mxu0 %v6637_v4 }
 0xdca   :  { %6254 = vmatpush3.bf16.msra.mxu0 %v6811_v15 }
 0xdcb   :  { %5905 = vmatprep.subr.mxu0 %v6639_v9 }
 0xe98   :  { %v977_v62 = vpop.f32.mrb[6].mxu0 }
 0xe99   :  { %v978_v63 = vadd.f32 %v6837_v17, %v977_v62  ;;  %v5871_v0 = vpop.f32.mrb[7].mxu0 }
 0xe9b   :  { %v982_v1 = vrot.slane %v978_v63, 3  ;;  %v983_v5 = vrot.slane %v978_v63, 4 }
 0xe9d   :  { %1002 = vrot.lane.b32.xlu0 %v983_v5, %s6640_s25  ;;  %1000 = vrot.lane.b32.xlu1 %v982_v1, %s6640_s25  ;;  %v986_v10 = vadd.f32 %v982_v1, %v6847_v26  ;;  %v987_v6 = vadd.f32 %v983_v5, %v6845_v25 }
 0xe9f   :  { %v5512_v7 = vmul.f32 -1.442695, %v986_v10  ;;  %v5513_v8 = vmul.f32 -1.442695, %v987_v6 }
 0xea1   :  { %6449 = vpow2.f32 %v5512_v7 }
 0xea2   :  { %6451 = vpow2.f32 %v5513_v8 }
 0xeab   :  { %v6450_v15 = vpop.eup %6449 }
 0xeac   :  { %v6452_v11 = vpop.eup %6451  ;;  %v994_v12 = vadd.f32 1.0, %v6450_v15 }
 0xead   :  { %v995_v13 = vadd.f32 1.0, %v6452_v11 }
 0xeae   :  { %6453 = vrcp.f32 %v994_v12 }
 0xeaf   :  { %6455 = vrcp.f32 %v995_v13 }
 0xeb8   :  { %v6454_v14 = vpop.eup %6453 }
 0xeb9   :  { %v6456_v16 = vpop.eup %6455  ;;  %v1020_v35 = vsub.f32 1.0, %v6454_v14  ;;  %v1036_v42 = vmul.f32 %v6454_v14, %v1032_v38 }
 0xeba   :  { %v1021_v32 = vsub.f32 1.0, %v6456_v16  ;;  %v1037_v39 = vmul.f32 %v6456_v16, %v1033_v33 }
 0xf0f   :  { %v1003_v18 = vpop.permute.xlu0 %1002  ;;  %v1001_v21 = vpop.permute.xlu1 %1000 }
 0xf10   :  { %v1007_v22 = vmul.f32 %v6456_v16, %v1003_v18  ;;  %v1006_v23 = vmul.f32 %v6454_v14, %v1001_v21 }
 0xf12   :  { %1012 = vrot.lane.b32.xlu0 %v1007_v22, %s6640_s25  ;;  %1010 = vrot.lane.b32.xlu1 %v1006_v23, %s6640_s25 }
 0xf84   :  { %v1013_v24 = vpop.permute.xlu0 %1012  ;;  %v1011_v27 = vpop.permute.xlu1 %1010 }
 0xf85   :  { %v1017_v28 = vadd.f32 %v1013_v24, %v6845_v25  ;;  %v1016_v29 = vadd.f32 %v1011_v27, %v6847_v26 }
 0xf87   :  { %6457 = vtanh.f32 %v1017_v28 }
 0xf88   :  { %6459 = vtanh.f32 %v1016_v29 }
 0xf91   :  { %v6458_v30 = vpop.eup %6457 }
 0xf92   :  { %v6460_v31 = vpop.eup %6459  ;;  %1026 = vrot.lane.b32.xlu0 %v6458_v30, %s6641_s3 }
 0xf93   :  { %1024 = vrot.lane.b32.xlu1 %v6460_v31, %s6641_s3 }
0x1004   :  { %v1027_v34 = vpop.permute.xlu0 %1026 }
0x1005   :  { %v1031_v40 = vmul.f32 %v1027_v34, %v1021_v32  ;;  %v1025_v41 = vpop.permute.xlu1 %1024 }
0x1006   :  { %v1030_v43 = vmul.f32 %v1025_v41, %v1020_v35 }
0x1007   :  { %v6995_v44 = vadd.f32 %v1037_v39, %v1031_v40 }
0x1008   :  { %v6997_v45 = vadd.f32 %v1036_v42, %v1030_v43 }
0x1009   :  { %v1052_v46 = vrot.slane %v6995_v44, 4  ;;  %v1180_v23 = vrot.slane %v6995_v44, 7 }
0x100a   :  { %v1051_v47 = vrot.slane %v6997_v45, 5  ;;  %v1179_v28 = vrot.slane %v6997_v45, 7 }
0x100c   :  { %v1053_v48 = vsel %vm320_vm2, %v1052_v46, %v1051_v47 }
0x100d   :  { %1054 = vrot.lane.b32.xlu1 %v1053_v48, %s6641_s3 }
0x107f   :  { %v1055_v49 = vpop.permute.xlu1 %1054 }
0x1080   :  { %5881 = vmatmul.mubr.msk.f32.vlgmr.msra.gmra.mrb[6].mxu1 %vm93_vm1, %v1055_v49 }
0x1153   :  { %v1124_v50 = vpop.f32.mrb[6].mxu1 }
0x1154   :  { %v1125_v52 = vadd.f32 %v6837_v17, %v1124_v50  ;;  %v5882_v53 = vpop.f32.mrb[7].mxu1 }
0x1156   :  { %v1129_v54 = vrot.slane %v1125_v52, 2  ;;  %v1130_v58 = vrot.slane %v1125_v52, 3 }
0x1158   :  { %1149 = vrot.lane.b32.xlu1 %v1130_v58, %s6640_s25  ;;  %1147 = vrot.lane.b32.xlu0 %v1129_v54, %s6640_s25  ;;  %v1133_v59 = vadd.f32 %v1129_v54, %v6847_v26  ;;  %v1134_v60 = vadd.f32 %v1130_v58, %v6845_v25 }
0x115a   :  { %v5515_v61 = vmul.f32 -1.442695, %v1133_v59  ;;  %v5516_v62 = vmul.f32 -1.442695, %v1134_v60 }
0x115c   :  { %6461 = vpow2.f32 %v5515_v61 }
0x115d   :  { %6463 = vpow2.f32 %v5516_v62 }
0x1166   :  { %v6462_v63 = vpop.eup %6461 }
0x1167   :  { %v6464_v0 = vpop.eup %6463  ;;  %v1141_v1 = vadd.f32 1.0, %v6462_v63 }
0x1168   :  { %v1142_v5 = vadd.f32 1.0, %v6464_v0 }
0x1169   :  { %6465 = vrcp.f32 %v1141_v1 }
0x116a   :  { %6467 = vrcp.f32 %v1142_v5 }
0x1173   :  { %v6466_v10 = vpop.eup %6465 }
0x1174   :  { %v6468_v6 = vpop.eup %6467  ;;  %v1167_v27 = vsub.f32 1.0, %v6466_v10  ;;  %v1183_v32 = vmul.f32 %v6466_v10, %v1179_v28 }
0x1175   :  { %v1168_v22 = vsub.f32 1.0, %v6468_v6  ;;  %v1184_v29 = vmul.f32 %v6468_v6, %v1180_v23 }
0x11ca   :  { %v1150_v7 = vpop.permute.xlu1 %1149  ;;  %v1148_v8 = vpop.permute.xlu0 %1147 }
0x11cb   :  { %v1154_v15 = vmul.f32 %v6468_v6, %v1150_v7  ;;  %v1153_v11 = vmul.f32 %v6466_v10, %v1148_v8 }
0x11cd   :  { %1159 = vrot.lane.b32.xlu1 %v1154_v15, %s6640_s25  ;;  %1157 = vrot.lane.b32.xlu0 %v1153_v11, %s6640_s25 }
0x123f   :  { %v1160_v12 = vpop.permute.xlu1 %1159  ;;  %v1158_v13 = vpop.permute.xlu0 %1157 }
0x1240   :  { %v1164_v14 = vadd.f32 %v1160_v12, %v6845_v25  ;;  %v1163_v16 = vadd.f32 %v1158_v13, %v6847_v26 }
0x1242   :  { %6469 = vtanh.f32 %v1164_v14 }
0x1243   :  { %6471 = vtanh.f32 %v1163_v16 }
0x124c   :  { %v6470_v18 = vpop.eup %6469 }
0x124d   :  { %v6472_v21 = vpop.eup %6471  ;;  %1173 = vrot.lane.b32.xlu1 %v6470_v18, %s6641_s3 }
0x124e   :  { %1171 = vrot.lane.b32.xlu0 %v6472_v21, %s6641_s3 }
0x12bf   :  { %v1174_v24 = vpop.permute.xlu1 %1173 }
0x12c0   :  { %v1178_v30 = vmul.f32 %v1174_v24, %v1168_v22  ;;  %v1172_v31 = vpop.permute.xlu0 %1171 }
0x12c1   :  { %v1177_v33 = vmul.f32 %v1172_v31, %v1167_v27 }
0x12c2   :  { %v7017_v34 = vadd.f32 %v1184_v29, %v1178_v30 }
0x12c3   :  { %v7019_v35 = vadd.f32 %v1183_v32, %v1177_v33 }
0x12c4   :  { %v1199_v38 = vrot.slane %v7017_v34, 5 }
0x12c5   :  { %v1198_v39 = vrot.slane %v7019_v35, 6 }
0x12c7   :  { %v1200_v40 = vsel %vm320_vm2, %v1199_v38, %v1198_v39 }
0x12c8   :  { %1201 = vrot.lane.b32.xlu0 %v1200_v40, %s6641_s3 }
0x133a   :  { %v1202_v41 = vpop.permute.xlu0 %1201 }
0x133b   :  { %5892 = vmatmul.mubr.msk.f32.vlgmr.msra.gmra.mrb[8].mxu0 %vm93_vm1, %v1202_v41  ;;  %v5520_v41 = vld [vmem:[%s7774_s7] ss:$0 sm:$0xff] }
0x133c   :  { %5907 = vmatprep.mubr.msk.f32.mxu0 %vm6638_vm0, %v6639_v9 }
0x140e   :  { %v1271_v42 = vpop.f32.mrb[8].mxu0 }
0x140f   :  { %v1272_v43 = vadd.f32 %v6837_v17, %v1271_v42  ;;  %v5893_v46 = vpop.f32.mrb[9].mxu0 }
0x1411   :  { %v1276_v47 = vrot.slane %v1272_v43, 1  ;;  %v1277_v48 = vrot.slane %v1272_v43, 2 }
0x1413   :  { %1296 = vrot.lane.b32.xlu0 %v1277_v48, %s6640_s25  ;;  %1294 = vrot.lane.b32.xlu1 %v1276_v47, %s6640_s25  ;;  %v1280_v49 = vadd.f32 %v1276_v47, %v6847_v26  ;;  %v1281_v50 = vadd.f32 %v1277_v48, %v6845_v25 }
0x1415   :  { %v5518_v52 = vmul.f32 -1.442695, %v1280_v49  ;;  %v5519_v53 = vmul.f32 -1.442695, %v1281_v50  ;;  %v6642_v50 = vmov 1966171168  }
0x1417   :  { %6473 = vpow2.f32 %v5518_v52  ;;  %v1406_v52 = vunpack.c.l.s4 %v6642_v50 }
0x1418   :  { %6475 = vpow2.f32 %v5519_v53  ;;  %v1408_v53 = vlaneseq }
0x1421   :  { %v6474_v54 = vpop.eup %6473 }
0x1422   :  { %v6476_v58 = vpop.eup %6475  ;;  %v1288_v59 = vadd.f32 1.0, %v6474_v54  ;;  %v1407_v54 = vunpack.c.0.s8 %v1406_v52 }
0x1423   :  { %v1289_v60 = vadd.f32 1.0, %v6476_v58  ;;  %v7131_v58 = vshrl.u32 %v1408_v53, 7 }
0x1424   :  { %6477 = vrcp.f32 %v1288_v59  ;;  %v76_v59 = vld [vmem:[%s7825_s27] sm:$0x3]  ;;  %s7834_s27 = smov 24  }
0x1425   :  { %6479 = vrcp.f32 %v1289_v60  ;;  %v7136_v60 = vmul.f32 -1e+09, %v76_v59 }
0x142e   :  { %v6478_v17 = vpop.eup %6477 }
0x142f   :  { %v6480_v61 = vpop.eup %6479 }
0x1485   :  { %v1297_v62 = vpop.permute.xlu0 %1296  ;;  %v1295_v63 = vpop.permute.xlu1 %1294 }
0x1486   :  { %v1301_v0 = vmul.f32 %v6480_v61, %v1297_v62  ;;  %v1300_v1 = vmul.f32 %v6478_v17, %v1295_v63 }
0x1488   :  { %1306 = vrot.lane.b32.xlu0 %v1301_v0, %s6640_s25  ;;  %1304 = vrot.lane.b32.xlu1 %v1300_v1, %s6640_s25  ;;  %v7141_v0 = vsub.s32 0, %v7131_v58 }
0x14fa   :  { %v1307_v5 = vpop.permute.xlu0 %1306  ;;  %v1305_v10 = vpop.permute.xlu1 %1304 }
0x14fb   :  { %v1311_v6 = vadd.f32 %v1307_v5, %v6845_v25  ;;  %v1310_v7 = vadd.f32 %v1305_v10, %v6847_v26  ;;  %v1347_v25 = vld [vmem:[%s7824_s30] sm:$0xff]  ;;  %v1348_v26 = vld [vmem:[%s7824_s30 + $0x8] sm:$0xff] }
0x14fd   :  { %6481 = vtanh.f32 %v1311_v6 }
0x14fe   :  { %6483 = vtanh.f32 %v1310_v7 }
0x1507   :  { %v6482_v8 = vpop.eup %6481 }
0x1508   :  { %v6484_v15 = vpop.eup %6483  ;;  %1320 = vrot.lane.b32.xlu0 %v6482_v8, %s6641_s3 }
0x1509   :  { %1318 = vrot.lane.b32.xlu1 %v6484_v15, %s6641_s3 }
0x150c   :  { %455 = vrot.lane.b32.xlu0 %v6884_v36, %s6641_s3  ;;  %v1350_v36 = vld [vmem:[%s7824_s30 + $0x18] sm:$0xff] }
0x150d   :  { %310 = vrot.lane.b32.xlu1 %v6860_v57, %s6641_s3  ;;  %v1349_v57 = vld [vmem:[%s7824_s30 + $0x10] sm:$0xff] }
0x1510   :  { %748 = vrot.lane.b32.xlu0 %v6942_v3, %s6641_s3 }
0x1511   :  { %601 = vrot.lane.b32.xlu1 %v6914_v20, %s6641_s3  ;;  %v1314_v20 = vsub.f32 1.0, %v6478_v17 }
0x1514   :  { %1042 = vrot.lane.b32.xlu0 %v6997_v45, %s6641_s3  ;;  %v1327_v45 = vrot.slane %v7017_v34, 7 }
0x1515   :  { %895 = vrot.lane.b32.xlu1 %v6969_v56, %s6641_s3 }
0x1516   :  { %v1331_v16 = vmul.f32 %v6480_v61, %v1327_v45 }
0x1518   :  { %457 = vrot.lane.b32.xlu0 %v6886_v37, %s6641_s3  ;;  %v6259_v37 = vpack.c.bf16 %v1350_v36, %v1349_v57 }
0x1519   :  { %1189 = vrot.lane.b32.xlu1 %v7019_v35, %s6641_s3 }
0x151c   :  { %750 = vrot.lane.b32.xlu0 %v6940_v2, %s6641_s3  ;;  %v1326_v2 = vrot.slane %v7019_v35, 7 }
0x151d   :  { %312 = vrot.lane.b32.xlu1 %v6857_v51, %s6641_s3  ;;  %v6255_v51 = vpack.c.bf16 %v1348_v26, %v1347_v25 }
0x151e   :  { %v1330_v56 = vmul.f32 %v6478_v17, %v1326_v2  ;;  %v1410_v17 = vsub.s32 %v1407_v54, %v7131_v58 }
0x151f   :  { %6256 = vmatprep.subr.bf16.mxu1 %v6255_v51 }
0x1520   :  { %1044 = vrot.lane.b32.xlu0 %v6995_v44, %s6641_s3  ;;  %6258 = vmatpush3.bf16.msra.mxu1 %v6255_v51 }
0x1521   :  { %603 = vrot.lane.b32.xlu1 %v6912_v19, %s6641_s3  ;;  %6260 = vmatprep.subr.bf16.mxu1 %v6259_v37 }
0x1524   :  { %6262 = vmatpush3.bf16.msra.mxu1 %v6259_v37 }
0x1525   :  { %897 = vrot.lane.b32.xlu1 %v6967_v55, %s6641_s3  ;;  %v1315_v55 = vsub.f32 1.0, %v6480_v61  ;;  %5910 = vmatprep.subr.mxu1 %v6639_v9  ;;  %v1411_v61 = vrot.slane %v7136_v60, %v1410_v17 }
0x1527   :  { %v1412_v62 = vcombine.high %v1411_v61, %v1411_v61  ;;  %v1419_v1 = vrot.slane %v1411_v61, %v1410_v17 }
0x1529   :  { %1191 = vrot.lane.b32.xlu1 %v7017_v34, %s6641_s3  ;;  %v1426_v63 = vrot.slane %v1412_v62, %v1410_v17  ;;  %v7147_v6 = vrot.slane %v1419_v1, %v7141_v0 }
0x152b   :  { %v7144_v5 = vrot.slane %v1426_v63, %v7141_v0 }
0x157a   :  { %v1321_v19 = vpop.permute.xlu0 %1320 }
0x157b   :  { %v1319_v3 = vpop.permute.xlu1 %1318  ;;  %v1325_v11 = vmul.f32 %v1321_v19, %v1315_v55 }
0x157c   :  { %v1324_v44 = vmul.f32 %v1319_v3, %v1314_v20 }
0x157d   :  { %v1333_v18 = vadd.f32 %v1331_v16, %v1325_v11 }
0x157e   :  { %v1332_v12 = vadd.f32 %v1330_v56, %v1324_v44  ;;  %v456_v13 = vpop.permute.xlu0 %455 }
0x157f   :  { %462 = vst.msk [vmem:[#allocation2] sm:$0x2] %vm461_vm3, %v456_v13  ;;  %v311_v14 = vpop.permute.xlu1 %310 }
0x1580   :  { %317 = vst.msk [vmem:[#allocation2] sm:$0x1] %vm316_vm4, %v311_v14  ;;  %1336 = vrot.lane.b32.xlu0 %v1332_v12, %s6641_s3 }
0x1582   :  { %v749_v21 = vpop.permute.xlu0 %748 }
0x1583   :  { %755 = vst.msk [vmem:[#allocation2] sm:$0x8] %vm754_vm5, %v749_v21  ;;  %v602_v22 = vpop.permute.xlu1 %601 }
0x1584   :  { %608 = vst.msk [vmem:[#allocation2] sm:$0x4] %vm607_vm6, %v602_v22  ;;  %1338 = vrot.lane.b32.xlu0 %v1333_v18, %s6641_s3 }
0x1586   :  { %v1043_v23 = vpop.permute.xlu0 %1042 }
0x1587   :  { %1049 = vst.msk [vmem:[#allocation2] sm:$0x20] %vm1048_vm7, %v1043_v23  ;;  %v896_v24 = vpop.permute.xlu1 %895 }
0x1588   :  { %902 = vst.msk [vmem:[#allocation2] sm:$0x10] %vm901_vm8, %v896_v24 }
0x158a   :  { %v458_v27 = vpop.permute.xlu0 %457 }
0x158b   :  { %463 = vst.msk [vmem:[#allocation2 + $0x8] sm:$0x2] %vm461_vm3, %v458_v27  ;;  %v1190_v28 = vpop.permute.xlu1 %1189 }
0x158c   :  { %1196 = vst.msk [vmem:[#allocation2] sm:$0x40] %vm1195_vm9, %v1190_v28 }
0x158e   :  { %v751_v29 = vpop.permute.xlu0 %750 }
0x158f   :  { %756 = vst.msk [vmem:[#allocation2 + $0x8] sm:$0x8] %vm754_vm5, %v751_v29  ;;  %v313_v30 = vpop.permute.xlu1 %312  ;;  %vm3132_vm5 = vcmask 523264  }
0x1590   :  { %318 = vst.msk [vmem:[#allocation2 + $0x8] sm:$0x1] %vm316_vm4, %v313_v30 }
0x1592   :  { %v1045_v31 = vpop.permute.xlu0 %1044 }
0x1593   :  { %1050 = vst.msk [vmem:[#allocation2 + $0x8] sm:$0x20] %vm1048_vm7, %v1045_v31  ;;  %v604_v32 = vpop.permute.xlu1 %603 }
0x1594   :  { %609 = vst.msk [vmem:[#allocation2 + $0x8] sm:$0x4] %vm607_vm6, %v604_v32 }
0x1597   :  { %v898_v33 = vpop.permute.xlu1 %897 }
0x1598   :  { %903 = vst.msk [vmem:[#allocation2 + $0x8] sm:$0x10] %vm901_vm8, %v898_v33 }
0x159b   :  { %v1192_v34 = vpop.permute.xlu1 %1191 }
0x159c   :  { %1197 = vst.msk [vmem:[#allocation2 + $0x8] sm:$0x40] %vm1195_vm9, %v1192_v34 }
0x15f2   :  { %v1337_v35 = vpop.permute.xlu0 %1336 }
0x15f3   :  { %1343 = vst.msk [vmem:[#allocation2] sm:$0x80] %vm1342_vm10, %v1337_v35 }
0x15f6   :  { %v1339_v38 = vpop.permute.xlu0 %1338 }
0x15f7   :  { %1344 = vst.msk [vmem:[#allocation2 + $0x8] sm:$0x80] %vm1342_vm10, %v1339_v38 }
0x15fa   :  { %v7098_v39 = vld [vmem:[#allocation2] sm:$0xff] }
0x15fb   :  { %5902 = vmatprep.mubr.msk.f32.mxu1 %vm93_vm1, %v7098_v39 }
0x15fe   :  { %v7102_v40 = vld [vmem:[#allocation2 + $0x8] sm:$0xff] }
0x15ff   :  { %5903 = vmatmul.mubr.msk.f32.vlgmr.msra.gmra.mrb[8].mxu1 %vm93_vm1, %v7102_v40 }
0x1600   :  { %5912 = vmatprep.mubr.msk.f32.mxu1 %vm6638_vm0, %v6639_v9 }
0x16d2   :  { %v5904_v42 = vpop.f32.mrb[8].mxu1 }
0x16d3   :  { %v7111_v43 = vadd.f32 %v5904_v42, %v5520_v41  ;;  %v1515_v46 = vpop.f32.mrb[9].mxu1 }
0x16d4   :  { %v7113_v47 = vadd.f32 %v5520_v41, %v1515_v46 }
0x16d5   :  { %1603 = vrot.lane.b32.xlu0 %v7111_v43, %s6641_s3 }
0x16d6   :  { %1525 = vrot.lane.b32.xlu1 %v7113_v47, %s6641_s3 }
0x1747   :  { %v1604_v48 = vpop.permute.xlu0 %1603 }
0x1748   :  { %5911 = vmatpush3.xpose.msk.msra.mxu1 %vm1527_vm11, %v1604_v48  ;;  %v1526_v49 = vpop.permute.xlu1 %1525 }
0x1749   :  { %5906 = vmatpush3.xpose.msk.msra.mxu0 %vm1527_vm11, %v1526_v49  ;;  %5920 = vmatprep.subr.mxu1 %v6639_v9 }
0x174a   :  { %5915 = vmatprep.subr.mxu0 %v6639_v9 }
0x174b   :  { %5913 = vmatmul.mubr.msk.f32.vlgmr.msra.gmra.mrb[10].mxu1 %vm1527_vm11, %v7111_v43 }
0x174c   :  { %5908 = vmatmul.mubr.msk.f32.vlgmr.msra.gmra.mrb[10].mxu0 %vm1527_vm11, %v7113_v47  ;;  %5922 = vmatprep.mubr.msk.f32.mxu1 %vm6638_vm0, %v6639_v9 }
0x174d   :  { %5917 = vmatprep.mubr.msk.f32.mxu0 %vm6638_vm0, %v6639_v9 }
0x181e   :  { %v1675_v10 = vpop.f32.mrb[10].mxu1 }
0x181f   :  { %v1680_v7 = vmul.f32 0.35355338, %v1675_v10  ;;  %v1598_v8 = vpop.f32.mrb[10].mxu0  ;;  %v5914_v15 = vpop.f32.mrb[11].mxu1 }
0x1820   :  { %v1679_v25 = vmul.f32 0.35355338, %v1598_v8  ;;  %v5909_v26 = vpop.f32.mrb[11].mxu0 }
0x1821   :  { %v1682_v51 = vadd.f32 %v1680_v7, %v7144_v5 }
0x1822   :  { %v1681_v57 = vadd.f32 %v1679_v25, %v7147_v6 }
0x1823   :  { %v1686_v36 = vsel %vm1527_vm11, %v1682_v51, -inf }
0x1824   :  { %1687 = vmax.xlane.f32.xlu0 %v1686_v36  ;;  %v1683_v37 = vsel %vm1527_vm11, %v1681_v57, -inf }
0x1825   :  { %1684 = vmax.xlane.f32.xlu1 %v1683_v37 }
0x1836   :  { %1781 = vrot.lane.b32.xlu1 %v7111_v43, %s6640_s25 }
0x183a   :  { %1705 = vrot.lane.b32.xlu0 %v7113_v47, %s6640_s25  ;;  %1859 = vrot.lane.b32.xlu1 %v7113_v47, %s6643_s28 }
0x18b1   :  { %v1688_v19 = vpop.xlane.xlu0 %1687 }
0x18b2   :  { %v1690_v20 = vsub.f32 %v1682_v51, %v1688_v19  ;;  %v1685_v2 = vpop.xlane.xlu1 %1684 }
0x18b3   :  { %v1689_v3 = vsub.f32 %v1681_v57, %v1685_v2 }
0x18b4   :  { %v1693_v55 = vmul.f32 1.442695, %v1690_v20 }
0x18b5   :  { %v1691_v56 = vmul.f32 1.442695, %v1689_v3  ;;  %v1706_v44 = vpop.permute.xlu0 %1705 }
0x18b6   :  { %6485 = vpow2.f32 %v1693_v55  ;;  %5916 = vmatpush3.msra.mxu0 %v1706_v44  ;;  %v1782_v45 = vpop.permute.xlu1 %1781 }
0x18b7   :  { %6487 = vpow2.f32 %v1691_v56  ;;  %5921 = vmatpush3.msra.mxu1 %v1782_v45  ;;  %5925 = vmatprep.subr.mxu0 %v6639_v9 }
0x18b8   :  { %5930 = vmatprep.subr.mxu1 %v6639_v9 }
0x18ba   :  { %v1860_v16 = vpop.permute.xlu1 %1859 }
0x18c0   :  { %v6486_v11 = vpop.eup %6485 }
0x18c1   :  { %v6488_v12 = vpop.eup %6487  ;;  %v1698_v13 = vsel %vm1527_vm11, %v6486_v11, 0.0 }
0x18c2   :  { %1699 = vadd.xlane.f32.xlu1 %v1698_v13  ;;  %v1695_v14 = vsel %vm1527_vm11, %v6488_v12, 0.0 }
0x18c3   :  { %1696 = vadd.xlane.f32.xlu0 %v1695_v14 }
0x18d3   :  { %1857 = vrot.lane.b32.xlu1 %v7113_v47, %s6644_s29 }
0x18d9   :  { %1937 = vrot.lane.b32.xlu0 %v7111_v43, %s6643_s28 }
0x18dd   :  { %1935 = vrot.lane.b32.xlu0 %v7111_v43, %s6644_s29 }
0x194f   :  { %v1700_v18 = vpop.xlane.xlu1 %1699 }
0x1950   :  { %6489 = vrcp.f32 %v1700_v18  ;;  %v1697_v21 = vpop.xlane.xlu0 %1696 }
0x1951   :  { %6491 = vrcp.f32 %v1697_v21 }
0x1953   :  { %v1858_v30 = vpop.permute.xlu1 %1857 }
0x1954   :  { %v1938_v23 = vpop.permute.xlu0 %1937 }
0x1958   :  { %v1936_v29 = vpop.permute.xlu0 %1935 }
0x195a   :  { %v6490_v22 = vpop.eup %6489 }
0x195b   :  { %v6492_v24 = vpop.eup %6491  ;;  %v1704_v27 = vmul.f32 %v6490_v22, %v6486_v11 }
0x195c   :  { %v1703_v28 = vmul.f32 %v6492_v24, %v6488_v12 }
0x195d   :  { %5923 = vmatmul.mubr.msk.f32.vlgmr.msra.gmra.mrb[12].mxu1 %vm1527_vm11, %v1704_v27 }
0x195e   :  { %5931 = vmatpush3.xpose.msk.msra.mxu1 %vm1527_vm11, %v1938_v23  ;;  %5918 = vmatmul.mubr.msk.f32.vlgmr.msra.gmra.mrb[12].mxu0 %vm1527_vm11, %v1703_v28 }
0x195f   :  { %5926 = vmatpush3.xpose.msk.msra.mxu0 %vm1527_vm11, %v1860_v16  ;;  %5932 = vmatprep.mubr.msk.f32.mxu1 %vm6638_vm0, %v6639_v9 }
0x1960   :  { %5927 = vmatprep.mubr.msk.f32.mxu0 %vm6638_vm0, %v6639_v9  ;;  %5935 = vmatprep.subr.mxu0 %v6639_v9 }
0x1961   :  { %5933 = vmatmul.mubr.msk.f32.vlgmr.msra.gmra.mrb[14].mxu1 %vm1527_vm11, %v1936_v29  ;;  %5940 = vmatprep.subr.mxu1 %v6639_v9 }
0x1962   :  { %5928 = vmatmul.mubr.msk.f32.vlgmr.msra.gmra.mrb[14].mxu0 %vm1527_vm11, %v1858_v30  ;;  %5942 = vmatprep.mubr.msk.f32.mxu1 %vm6638_vm0, %v6639_v9 }
0x1963   :  { %5937 = vmatprep.mubr.msk.f32.mxu0 %vm6638_vm0, %v6639_v9 }
0x1a30   :  { %v7185_v31 = vpop.f32.mrb[12].mxu1 }
0x1a31   :  { %v7187_v32 = vpop.f32.mrb[12].mxu0  ;;  %v5924_v33 = vpop.f32.mrb[13].mxu1 }
0x1a32   :  { %v5919_v34 = vpop.f32.mrb[13].mxu0 }
0x1a34   :  { %v2009_v35 = vpop.f32.mrb[14].mxu1 }
0x1a35   :  { %v2014_v38 = vmul.f32 0.35355338, %v2009_v35  ;;  %v1931_v41 = vpop.f32.mrb[14].mxu0  ;;  %v5934_v42 = vpop.f32.mrb[15].mxu1 }
0x1a36   :  { %v2013_v46 = vmul.f32 0.35355338, %v1931_v41  ;;  %v5929_v48 = vpop.f32.mrb[15].mxu0 }
0x1a37   :  { %v2016_v49 = vadd.f32 %v2014_v38, %v7144_v5 }
0x1a38   :  { %v2015_v50 = vadd.f32 %v2013_v46, %v7147_v6 }
0x1a39   :  { %v2020_v52 = vsel %vm1527_vm11, %v2016_v49, -inf }
0x1a3a   :  { %2021 = vmax.xlane.f32.xlu0 %v2020_v52  ;;  %v2017_v53 = vsel %vm1527_vm11, %v2015_v50, -inf }
0x1a3b   :  { %2018 = vmax.xlane.f32.xlu1 %v2017_v53 }
0x1a4c   :  { %2115 = vrot.lane.b32.xlu1 %v7111_v43, %s6645_s0 }
0x1a50   :  { %2039 = vrot.lane.b32.xlu0 %v7113_v47, %s6645_s0  ;;  %2193 = vrot.lane.b32.xlu1 %v7113_v47, %s7810_s23 }
0x1ac7   :  { %v2022_v54 = vpop.xlane.xlu0 %2021 }
0x1ac8   :  { %v2024_v59 = vsub.f32 %v2016_v49, %v2022_v54  ;;  %v2019_v17 = vpop.xlane.xlu1 %2018 }
0x1ac9   :  { %v2023_v61 = vsub.f32 %v2015_v50, %v2019_v17 }
0x1aca   :  { %v2027_v62 = vmul.f32 1.442695, %v2024_v59 }
0x1acb   :  { %v2025_v63 = vmul.f32 1.442695, %v2023_v61  ;;  %v2040_v1 = vpop.permute.xlu0 %2039 }
0x1acc   :  { %6493 = vpow2.f32 %v2027_v62  ;;  %5936 = vmatpush3.msra.mxu0 %v2040_v1  ;;  %v2116_v10 = vpop.permute.xlu1 %2115 }
0x1acd   :  { %6495 = vpow2.f32 %v2025_v63  ;;  %5941 = vmatpush3.msra.mxu1 %v2116_v10  ;;  %5945 = vmatprep.subr.mxu0 %v6639_v9 }
0x1ace   :  { %5950 = vmatprep.subr.mxu1 %v6639_v9 }
0x1ad0   :  { %v2194_v26 = vpop.permute.xlu1 %2193 }
0x1ad6   :  { %v6494_v7 = vpop.eup %6493 }
0x1ad7   :  { %v6496_v8 = vpop.eup %6495  ;;  %v2032_v15 = vsel %vm1527_vm11, %v6494_v7, 0.0 }
0x1ad8   :  { %2033 = vadd.xlane.f32.xlu1 %v2032_v15  ;;  %v2029_v25 = vsel %vm1527_vm11, %v6496_v8, 0.0 }
0x1ad9   :  { %2030 = vadd.xlane.f32.xlu0 %v2029_v25 }
0x1ae9   :  { %2191 = vrot.lane.b32.xlu1 %v7113_v47, %s7808_s4 }
0x1aef   :  { %2271 = vrot.lane.b32.xlu0 %v7111_v43, %s7810_s23 }
0x1af3   :  { %2269 = vrot.lane.b32.xlu0 %v7111_v43, %s7808_s4 }
0x1b65   :  { %v2034_v51 = vpop.xlane.xlu1 %2033 }
0x1b66   :  { %6497 = vrcp.f32 %v2034_v51  ;;  %v2031_v57 = vpop.xlane.xlu0 %2030 }
0x1b67   :  { %6499 = vrcp.f32 %v2031_v57 }
0x1b69   :  { %v2192_v55 = vpop.permute.xlu1 %2191 }
0x1b6a   :  { %v2272_v37 = vpop.permute.xlu0 %2271 }
0x1b6e   :  { %v2270_v3 = vpop.permute.xlu0 %2269 }
0x1b70   :  { %v6498_v36 = vpop.eup %6497 }
0x1b71   :  { %v6500_v19 = vpop.eup %6499  ;;  %v2038_v20 = vmul.f32 %v6498_v36, %v6494_v7 }
0x1b72   :  { %v2037_v2 = vmul.f32 %v6500_v19, %v6496_v8 }
0x1b73   :  { %5943 = vmatmul.mubr.msk.f32.vlgmr.msra.gmra.mrb[16].mxu1 %vm1527_vm11, %v2038_v20 }
0x1b74   :  { %5951 = vmatpush3.xpose.msk.msra.mxu1 %vm1527_vm11, %v2272_v37  ;;  %5938 = vmatmul.mubr.msk.f32.vlgmr.msra.gmra.mrb[16].mxu0 %vm1527_vm11, %v2037_v2 }
0x1b75   :  { %5946 = vmatpush3.xpose.msk.msra.mxu0 %vm1527_vm11, %v2194_v26  ;;  %5952 = vmatprep.mubr.msk.f32.mxu1 %vm6638_vm0, %v6639_v9 }
0x1b76   :  { %5947 = vmatprep.mubr.msk.f32.mxu0 %vm6638_vm0, %v6639_v9  ;;  %5955 = vmatprep.subr.mxu0 %v6639_v9 }
0x1b77   :  { %5953 = vmatmul.mubr.msk.f32.vlgmr.msra.gmra.mrb[18].mxu1 %vm1527_vm11, %v2270_v3  ;;  %5960 = vmatprep.subr.mxu1 %v6639_v9 }
0x1b78   :  { %5948 = vmatmul.mubr.msk.f32.vlgmr.msra.gmra.mrb[18].mxu0 %vm1527_vm11, %v2192_v55  ;;  %5962 = vmatprep.mubr.msk.f32.mxu1 %vm6638_vm0, %v6639_v9 }
0x1b79   :  { %5957 = vmatprep.mubr.msk.f32.mxu0 %vm6638_vm0, %v6639_v9 }
0x1c46   :  { %v7225_v56 = vpop.f32.mrb[16].mxu1 }
0x1c47   :  { %v7227_v44 = vpop.f32.mrb[16].mxu0  ;;  %v5944_v45 = vpop.f32.mrb[17].mxu1 }
0x1c48   :  { %v5939_v11 = vpop.f32.mrb[17].mxu0 }
0x1c4a   :  { %v2343_v12 = vpop.f32.mrb[18].mxu1 }
0x1c4b   :  { %v2348_v13 = vmul.f32 0.35355338, %v2343_v12  ;;  %v2265_v14 = vpop.f32.mrb[18].mxu0  ;;  %v5954_v16 = vpop.f32.mrb[19].mxu1 }
0x1c4c   :  { %v2347_v18 = vmul.f32 0.35355338, %v2265_v14  ;;  %v5949_v21 = vpop.f32.mrb[19].mxu0 }
0x1c4d   :  { %v2350_v22 = vadd.f32 %v2348_v13, %v7144_v5 }
0x1c4e   :  { %v2349_v23 = vadd.f32 %v2347_v18, %v7147_v6 }
0x1c4f   :  { %v2354_v24 = vsel %vm1527_vm11, %v2350_v22, -inf }
0x1c50   :  { %2355 = vmax.xlane.f32.xlu0 %v2354_v24  ;;  %v2351_v27 = vsel %vm1527_vm11, %v2349_v23, -inf }
0x1c51   :  { %2352 = vmax.xlane.f32.xlu1 %v2351_v27 }
0x1c62   :  { %2449 = vrot.lane.b32.xlu1 %v7111_v43, %s7804_s1 }
0x1c66   :  { %2373 = vrot.lane.b32.xlu0 %v7113_v47, %s7804_s1  ;;  %2527 = vrot.lane.b32.xlu1 %v7113_v47, %s7802_s5  ;;  %s7832_s1 = smov 8  }
0x1cdd   :  { %v2356_v28 = vpop.xlane.xlu0 %2355 }
0x1cde   :  { %v2358_v29 = vsub.f32 %v2350_v22, %v2356_v28  ;;  %v2353_v30 = vpop.xlane.xlu1 %2352 }
0x1cdf   :  { %v2357_v33 = vsub.f32 %v2349_v23, %v2353_v30  ;;  %v1358_v30 = vld [vmem:[%s7775_s8 + $0x8] sm:$0xff] }
0x1ce0   :  { %v2361_v34 = vmul.f32 1.442695, %v2358_v29 }
0x1ce1   :  { %v2359_v35 = vmul.f32 1.442695, %v2357_v33  ;;  %v2374_v38 = vpop.permute.xlu0 %2373  ;;  %v1359_v33 = vld [vmem:[%s7775_s8 + $0x10] sm:$0xff] }
0x1ce2   :  { %6501 = vpow2.f32 %v2361_v34  ;;  %5956 = vmatpush3.msra.mxu0 %v2374_v38  ;;  %v2450_v41 = vpop.permute.xlu1 %2449 }
0x1ce3   :  { %6503 = vpow2.f32 %v2359_v35  ;;  %5961 = vmatpush3.msra.mxu1 %v2450_v41  ;;  %5965 = vmatprep.subr.mxu0 %v6639_v9  ;;  %v1360_v35 = vld [vmem:[%s7775_s8 + $0x18] sm:$0xff] }
0x1ce4   :  { %5970 = vmatprep.subr.mxu1 %v6639_v9  ;;  %v6267_v38 = vpack.c.bf16 %v1360_v35, %v1359_v33 }
0x1ce6   :  { %v2528_v50 = vpop.permute.xlu1 %2527 }
0x1cec   :  { %v6502_v42 = vpop.eup %6501 }
0x1ced   :  { %v6504_v46 = vpop.eup %6503  ;;  %v2366_v48 = vsel %vm1527_vm11, %v6502_v42, 0.0 }
0x1cee   :  { %2367 = vadd.xlane.f32.xlu1 %v2366_v48  ;;  %v2363_v49 = vsel %vm1527_vm11, %v6504_v46, 0.0 }
0x1cef   :  { %2364 = vadd.xlane.f32.xlu0 %v2363_v49 }
0x1cff   :  { %2525 = vrot.lane.b32.xlu1 %v7113_v47, %s7800_s24 }
0x1d05   :  { %2605 = vrot.lane.b32.xlu0 %v7111_v43, %s7802_s5 }
0x1d09   :  { %2603 = vrot.lane.b32.xlu0 %v7111_v43, %s7800_s24 }
0x1d7b   :  { %v2368_v52 = vpop.xlane.xlu1 %2367 }
0x1d7c   :  { %6505 = vrcp.f32 %v2368_v52  ;;  %v2365_v53 = vpop.xlane.xlu0 %2364 }
0x1d7d   :  { %6507 = vrcp.f32 %v2365_v53 }
0x1d7f   :  { %v2526_v1 = vpop.permute.xlu1 %2525 }
0x1d80   :  { %v2606_v59 = vpop.permute.xlu0 %2605 }
0x1d84   :  { %v2604_v63 = vpop.permute.xlu0 %2603 }
0x1d86   :  { %v6506_v54 = vpop.eup %6505 }
0x1d87   :  { %v6508_v17 = vpop.eup %6507  ;;  %v2372_v61 = vmul.f32 %v6506_v54, %v6502_v42 }
0x1d88   :  { %v2371_v62 = vmul.f32 %v6508_v17, %v6504_v46 }
0x1d89   :  { %5963 = vmatmul.mubr.msk.f32.vlgmr.msra.gmra.mrb[20].mxu1 %vm1527_vm11, %v2372_v61 }
0x1d8a   :  { %5971 = vmatpush3.xpose.msk.msra.mxu1 %vm1527_vm11, %v2606_v59  ;;  %5958 = vmatmul.mubr.msk.f32.vlgmr.msra.gmra.mrb[20].mxu0 %vm1527_vm11, %v2371_v62 }
0x1d8b   :  { %5966 = vmatpush3.xpose.msk.msra.mxu0 %vm1527_vm11, %v2528_v50  ;;  %5972 = vmatprep.mubr.msk.f32.mxu1 %vm6638_vm0, %v6639_v9 }
0x1d8c   :  { %5967 = vmatprep.mubr.msk.f32.mxu0 %vm6638_vm0, %v6639_v9  ;;  %5980 = vmatprep.subr.mxu1 %v6639_v9 }
0x1d8d   :  { %5973 = vmatmul.mubr.msk.f32.vlgmr.msra.gmra.mrb[22].mxu1 %vm1527_vm11, %v2604_v63  ;;  %5975 = vmatprep.subr.mxu0 %v6639_v9 }
0x1d8e   :  { %5968 = vmatmul.mubr.msk.f32.vlgmr.msra.gmra.mrb[22].mxu0 %vm1527_vm11, %v2526_v1  ;;  %5982 = vmatprep.mubr.msk.f32.mxu1 %vm6638_vm0, %v6639_v9 }
0x1d8f   :  { %5977 = vmatprep.mubr.msk.f32.mxu0 %vm6638_vm0, %v6639_v9 }
0x1e5c   :  { %v2521_v10 = vpop.f32.mrb[20].mxu1 }
0x1e5d   :  { %v2445_v7 = vpop.f32.mrb[20].mxu0  ;;  %v5964_v8 = vpop.f32.mrb[21].mxu1 }
0x1e5e   :  { %v5959_v15 = vpop.f32.mrb[21].mxu0 }
0x1e60   :  { %v2677_v25 = vpop.f32.mrb[22].mxu1 }
0x1e61   :  { %v2682_v26 = vmul.f32 0.35355338, %v2677_v25  ;;  %v2599_v51 = vpop.f32.mrb[22].mxu0  ;;  %v5974_v57 = vpop.f32.mrb[23].mxu1 }
0x1e62   :  { %v2681_v36 = vmul.f32 0.35355338, %v2599_v51  ;;  %v5969_v37 = vpop.f32.mrb[23].mxu0 }
0x1e63   :  { %v2684_v19 = vadd.f32 %v2682_v26, %v7144_v5 }
0x1e64   :  { %v2683_v20 = vadd.f32 %v2681_v36, %v7147_v6 }
0x1e65   :  { %v2688_v2 = vsel %vm1527_vm11, %v2684_v19, -inf }
0x1e66   :  { %2689 = vmax.xlane.f32.xlu0 %v2688_v2  ;;  %v2685_v3 = vsel %vm1527_vm11, %v2683_v20, -inf }
0x1e67   :  { %2686 = vmax.xlane.f32.xlu1 %v2685_v3 }
0x1ef3   :  { %v2690_v55 = vpop.xlane.xlu0 %2689 }
0x1ef4   :  { %v2692_v45 = vsub.f32 %v2684_v19, %v2690_v55  ;;  %v2687_v11 = vpop.xlane.xlu1 %2686 }
0x1ef5   :  { %v2691_v12 = vsub.f32 %v2683_v20, %v2687_v11 }
0x1ef6   :  { %v2695_v13 = vmul.f32 1.442695, %v2692_v45 }
0x1ef7   :  { %v2693_v14 = vmul.f32 1.442695, %v2691_v12  ;;  %v1368_v12 = vld [vmem:[%s7777_s10 + $0x8] sm:$0xff] }
0x1ef8   :  { %6509 = vpow2.f32 %v2695_v13  ;;  %v1369_v13 = vld [vmem:[%s7777_s10 + $0x10] sm:$0xff] }
0x1ef9   :  { %6511 = vpow2.f32 %v2693_v14 }
0x1f02   :  { %v6510_v16 = vpop.eup %6509 }
0x1f03   :  { %v6512_v18 = vpop.eup %6511  ;;  %v2700_v21 = vsel %vm1527_vm11, %v6510_v16, 0.0 }
0x1f04   :  { %2701 = vadd.xlane.f32.xlu1 %v2700_v21  ;;  %v2697_v22 = vsel %vm1527_vm11, %v6512_v18, 0.0  ;;  %v1377_v21 = vld [vmem:[%s7779_s12] sm:$0xff] }
0x1f05   :  { %2698 = vadd.xlane.f32.xlu0 %v2697_v22  ;;  %v1378_v22 = vld [vmem:[%s7779_s12 + $0x8] sm:$0xff] }
0x1f15   :  { %2783 = vrot.lane.b32.xlu1 %v7111_v43, %s7798_s6 }
0x1f19   :  { %2861 = vrot.lane.b32.xlu1 %v7227_v44, %s7796_s18 }
0x1f1b   :  { %2707 = vrot.lane.b32.xlu0 %v7113_v47, %s7798_s6 }
0x1f1d   :  { %2869 = vrot.lane.b32.xlu1 %v2445_v7, %s7794_s26 }
0x1f1f   :  { %2863 = vrot.lane.b32.xlu0 %v7225_v56, %s7796_s18  ;;  %v1357_v56 = vld [vmem:[%s7775_s8] sm:$0xff] }
0x1f20   :  { %v6263_v34 = vpack.c.bf16 %v1358_v30, %v1357_v56 }
0x1f23   :  { %2871 = vrot.lane.b32.xlu0 %v2521_v10, %s7794_s26 }
0x1f91   :  { %v2702_v23 = vpop.xlane.xlu1 %2701 }
0x1f92   :  { %6513 = vrcp.f32 %v2702_v23  ;;  %v2699_v24 = vpop.xlane.xlu0 %2698  ;;  %v1379_v23 = vld [vmem:[%s7779_s12 + $0x10] sm:$0xff] }
0x1f93   :  { %6515 = vrcp.f32 %v2699_v24  ;;  %v6279_v24 = vpack.c.bf16 %v1378_v22, %v1377_v21 }
0x1f95   :  { %v2784_v43 = vpop.permute.xlu1 %2783 }
0x1f96   :  { %v2708_v27 = vpop.permute.xlu0 %2707  ;;  %5981 = vmatpush3.msra.mxu1 %v2784_v43  ;;  %v1380_v43 = vld [vmem:[%s7779_s12 + $0x18] sm:$0xff] }
0x1f97   :  { %5976 = vmatpush3.msra.mxu0 %v2708_v27  ;;  %v6283_v27 = vpack.c.bf16 %v1380_v43, %v1379_v23 }
0x1f98   :  { %6264 = vmatprep.subr.bf16.mxu0 %v6263_v34 }
0x1f99   :  { %v2862_v50 = vpop.permute.xlu1 %2861 }
0x1f9a   :  { %v2864_v49 = vpop.permute.xlu0 %2863  ;;  %v2883_v54 = vsel %vm1527_vm11, %v7187_v32, %v2862_v50  ;;  %v5547_v32 = vld [vmem:[%s7776_s9] ss:$0 sm:$0xff] }
0x1f9b   :  { %v2884_v17 = vsel %vm1527_vm11, %v7185_v31, %v2864_v49 }
0x1f9c   :  { %v6514_v44 = vpop.eup %6513 }
0x1f9d   :  { %v6516_v28 = vpop.eup %6515  ;;  %v2706_v29 = vmul.f32 %v6514_v44, %v6510_v16  ;;  %v2870_v53 = vpop.permute.xlu1 %2869  ;;  %v1370_v16 = vld [vmem:[%s7777_s10 + $0x18] sm:$0xff]  ;;  %v1381_v44 = vld [vmem:[%s7779_s12 + $0x20] sm:$0xff] }
0x1f9e   :  { %v2705_v47 = vmul.f32 %v6516_v28, %v6512_v18  ;;  %v2872_v52 = vpop.permute.xlu0 %2871  ;;  %v2886_v61 = vsel %vm2885_vm12, %v2883_v54, %v2870_v53  ;;  %v6275_v18 = vpack.c.bf16 %v1370_v16, %v1369_v13  ;;  %v1382_v28 = vld [vmem:[%s7779_s12 + $0x28] sm:$0xff] }
0x1f9f   :  { %5983 = vmatmul.mubr.msk.f32.vlgmr.msra.gmra.mrb[24].mxu1 %vm1527_vm11, %v2706_v29  ;;  %v2887_v63 = vsel %vm2885_vm12, %v2884_v17, %v2872_v52  ;;  %v6287_v29 = vpack.c.bf16 %v1382_v28, %v1381_v44  ;;  %v5550_v17 = vld [vmem:[%s7781_s14] ss:$0 sm:$0xff] }
0x1fa0   :  { %5978 = vmatmul.mubr.msk.f32.vlgmr.msra.gmra.mrb[24].mxu0 %vm1527_vm11, %v2705_v47  ;;  %v1351_v28 = vld [vmem:[%s7824_s30 + $0x20] sm:$0xff] }
0x1fa1   :  { %6266 = vmatpush3.bf16.msra.mxu0 %v6263_v34 }
0x1fa2   :  { %6268 = vmatprep.subr.bf16.mxu0 %v6267_v38 }
0x1fa5   :  { %6270 = vmatpush3.bf16.msra.mxu0 %v6267_v38 }
0x1fa6   :  { %6280 = vmatprep.subr.bf16.mxu0 %v6279_v24 }
0x2072   :  { %v2855_v41 = vpop.f32.mrb[24].mxu1 }
0x2073   :  { %2879 = vrot.lane.b32.xlu0 %v2855_v41, %s7806_s2  ;;  %v2779_v42 = vpop.f32.mrb[24].mxu0  ;;  %v5984_v46 = vpop.f32.mrb[25].mxu1 }
0x2074   :  { %2877 = vrot.lane.b32.xlu1 %v2779_v42, %s7806_s2  ;;  %v5979_v48 = vpop.f32.mrb[25].mxu0  ;;  %s7833_s2 = smov 16  }
0x20e5   :  { %v2880_v59 = vpop.permute.xlu0 %2879 }
0x20e6   :  { %v2878_v62 = vpop.permute.xlu1 %2877  ;;  %v2890_v10 = vsel %vm2888_vm13, %v2887_v63, %v2880_v59 }
0x20e7   :  { %v2889_v1 = vsel %vm2888_vm13, %v2886_v61, %v2878_v62 }
0x20e8   :  { %5993 = vmatprep.mubr.msk.f32.mxu0 %vm93_vm1, %v2889_v1  ;;  %v5551_v1 = vld [vmem:[%s7781_s14 + $0x1] ss:$0 sm:$0xff] }
0x20e9   :  { %5994 = vmatmul.mubr.msk.f32.vlgmr.msra.gmra.mrb[26].mxu0 %vm93_vm1, %v2890_v10 }
0x20ea   :  { %6282 = vmatpush3.bf16.msra.mxu0 %v6279_v24 }
0x20eb   :  { %6284 = vmatprep.subr.bf16.mxu0 %v6283_v27 }
0x20ee   :  { %6286 = vmatpush3.bf16.msra.mxu0 %v6283_v27 }
0x20ef   :  { %6288 = vmatprep.subr.bf16.mxu0 %v6287_v29 }
0x20f2   :  { %6290 = vmatpush3.bf16.msra.mxu0 %v6287_v29  ;;  %v1352_v29 = vld [vmem:[%s7824_s30 + $0x28] sm:$0xff] }
0x21bc   :  { %v5995_v7 = vpop.f32.mrb[26].mxu0 }
0x21bd   :  { %v2975_v8 = vadd.f32 %v5995_v7, %v5547_v32  ;;  %v2969_v31 = vpop.f32.mrb[27].mxu0 }
0x21be   :  { %v2970_v15 = vadd.f32 %v5547_v32, %v2969_v31  ;;  %v1383_v31 = vld [vmem:[%s7779_s12 + $0x30] sm:$0xff] }
0x21bf   :  { %v2979_v25 = vadd.f32 %v2975_v8, %v7102_v40 }
0x21c0   :  { %v2978_v26 = vadd.f32 %v2970_v15, %v7098_v39  ;;  %v1367_v39 = vld [vmem:[%s7777_s10] sm:$0xff]  ;;  %v1384_v15 = vld [vmem:[%s7779_s12 + $0x38] sm:$0xff] }
0x21c1   :  { %v2983_v51 = vsel %vm93_vm1, %v2979_v25, 0.0  ;;  %v6271_v14 = vpack.c.bf16 %v1368_v12, %v1367_v39 }
0x21c2   :  { %2984 = vadd.xlane.f32.xlu0 %v2983_v51  ;;  %v2980_v57 = vsel %vm93_vm1, %v2978_v26, 0.0 }
0x21c3   :  { %2981 = vadd.xlane.f32.xlu1 %v2980_v57  ;;  %6272 = vmatprep.subr.bf16.mxu1 %v6271_v14 }
0x21c4   :  { %6274 = vmatpush3.bf16.msra.mxu1 %v6271_v14 }
0x21c5   :  { %6276 = vmatprep.subr.bf16.mxu1 %v6275_v18 }
0x21c8   :  { %6278 = vmatpush3.bf16.msra.mxu1 %v6275_v18 }
0x224f   :  { %v2985_v36 = vpop.xlane.xlu0 %2984 }
0x2250   :  { %v2988_v37 = vmul.f32 0.03125, %v2985_v36  ;;  %v2982_v19 = vpop.xlane.xlu1 %2981 }
0x2251   :  { %v2987_v20 = vmul.f32 0.03125, %v2982_v19 }
0x2252   :  { %v2990_v2 = vsub.f32 %v2979_v25, %v2988_v37  ;;  %v6291_v25 = vpack.c.bf16 %v1384_v15, %v1383_v31 }
0x2253   :  { %v2989_v3 = vsub.f32 %v2978_v26, %v2987_v20  ;;  %v5552_v26 = vld [vmem:[%s7778_s11] ss:$0 sm:$0xff] }
0x2254   :  { %v2992_v55 = vmul.f32 %v2990_v2, %v2990_v2  ;;  %6292 = vmatprep.subr.bf16.mxu0 %v6291_v25 }
0x2255   :  { %v2991_v45 = vmul.f32 %v2989_v3, %v2989_v3  ;;  %6294 = vmatpush3.bf16.msra.mxu0 %v6291_v25 }
0x2256   :  { %v2996_v11 = vsel %vm93_vm1, %v2992_v55, 0.0  ;;  %6047 = vmatprep.subr.mxu0 %v6639_v9 }
0x2257   :  { %2997 = vadd.xlane.f32.xlu1 %v2996_v11  ;;  %v2993_v40 = vsel %vm93_vm1, %v2991_v45, 0.0 }
0x2258   :  { %2994 = vadd.xlane.f32.xlu0 %v2993_v40 }
0x22e4   :  { %v2998_v47 = vpop.xlane.xlu1 %2997 }
0x22e5   :  { %v3000_v56 = vmul.f32 0.032258064, %v2998_v47  ;;  %v2995_v30 = vpop.xlane.xlu0 %2994  ;;  %v1353_v47 = vld [vmem:[%s7824_s30 + $0x30] sm:$0xff] }
0x22e6   :  { %v2999_v33 = vmul.f32 0.032258064, %v2995_v30  ;;  %v1354_v30 = vld [vmem:[%s7824_s30 + $0x38] sm:$0xff] }
0x22e7   :  { %6517 = vrsqrt.f32 %v3000_v56  ;;  %vm3010_vm14 = vcmp.eq.f32.partialorder %v3000_v56, inf  ;;  %v3013_v41 = vand.u32 2147483648, %v3000_v56  ;;  %vm3012_vm15 = vcmp.eq.f32.partialorder %v3000_v56, 0.0 }
0x22e8   :  { %6519 = vrsqrt.f32 %v2999_v33  ;;  %vm3003_vm3 = vcmp.eq.f32.partialorder %v2999_v33, inf  ;;  %v3006_v48 = vand.u32 2147483648, %v2999_v33  ;;  %vm3005_vm4 = vcmp.eq.f32.partialorder %v2999_v33, 0.0 }
0x22f1   :  { %v6518_v34 = vpop.eup %6517 }
0x22f2   :  { %v6520_v35 = vpop.eup %6519  ;;  %v3009_v38 = vmul.f32 %v6518_v34, %v3000_v56 }
0x22f3   :  { %v3002_v42 = vmul.f32 %v6520_v35, %v2999_v33 }
0x22f4   :  { %v3011_v46 = vsel %vm3010_vm14, %v3000_v56, %v3009_v38  ;;  %v6295_v56 = vpack.c.bf16 %v1352_v29, %v1351_v28 }
0x22f5   :  { %v3014_v49 = vsel %vm3012_vm15, %v3013_v41, %v3011_v46  ;;  %v3004_v50 = vsel %vm3003_vm3, %v2999_v33, %v3002_v42  ;;  %v6299_v33 = vpack.c.bf16 %v1354_v30, %v1353_v47 }
0x22f6   :  { %v3016_v52 = vadd.f32 1e-06, %v3014_v49  ;;  %v3007_v53 = vsel %vm3005_vm4, %v3006_v48, %v3004_v50  ;;  %6296 = vmatprep.subr.bf16.mxu1 %v6295_v56  ;;  %vm5310_vm4 = vcmask 7168  }
0x22f7   :  { %v3015_v54 = vadd.f32 1e-06, %v3007_v53 }
0x22f8   :  { %6521 = vrcp.f32 %v3016_v52 }
0x22f9   :  { %6523 = vrcp.f32 %v3015_v54 }
0x2302   :  { %v6522_v59 = vpop.eup %6521 }
0x2303   :  { %v6524_v61 = vpop.eup %6523  ;;  %v3020_v62 = vmul.f32 %v6522_v59, %v2990_v2  ;;  %v5555_v2 = vld [vmem:[%s7780_s13] ss:$0 sm:$0xff] }
0x2304   :  { %v3019_v63 = vmul.f32 %v6524_v61, %v2989_v3 }
0x2305   :  { %v3028_v10 = vmul.f32 %v5550_v17, %v3020_v62 }
0x2306   :  { %v3027_v32 = vmul.f32 %v5550_v17, %v3019_v63 }
0x2307   :  { %v3036_v8 = vadd.f32 %v5551_v1, %v3028_v10 }
0x2308   :  { %v3035_v7 = vadd.f32 %v5551_v1, %v3027_v32  ;;  %v5558_v1 = vld [vmem:[%s7781_s14 + $0x2] ss:$0 sm:$0xff] }
0x230a   :  { %6004 = vmatprep.mubr.msk.f32.mxu1 %vm93_vm1, %v3035_v7 }
0x230b   :  { %6005 = vmatmul.mubr.msk.f32.vlgmr.msra.gmra.mrb[26].mxu1 %vm93_vm1, %v3036_v8 }
0x230c   :  { %6298 = vmatpush3.bf16.msra.mxu1 %v6295_v56 }
0x230d   :  { %6300 = vmatprep.subr.bf16.mxu1 %v6299_v33 }
0x2310   :  { %6302 = vmatpush3.bf16.msra.mxu1 %v6299_v33 }
0x2311   :  { %6037 = vmatprep.subr.mxu1 %v6639_v9 }
0x23de   :  { %v6006_v51 = vpop.f32.mrb[26].mxu1 }
0x23df   :  { %v3121_v57 = vadd.f32 %v6006_v51, %v5552_v26  ;;  %v3115_v36 = vpop.f32.mrb[27].mxu1  ;;  %v5560_v51 = vld [vmem:[%s7774_s7 + $0x1] ss:$0 sm:$0xff]  ;;  %s7826_s7 = smov 80  }
0x23e0   :  { %v3116_v37 = vadd.f32 %v5552_v26, %v3115_v36 }
0x23e1   :  { %v3125_v20 = vmax.f32 %v3121_v57, 0.0 }
0x23e2   :  { %v3124_v19 = vmax.f32 %v3116_v37, 0.0 }
0x23e4   :  { %6023 = vmatprep.mubr.msk.f32.mxu0 %vm3132_vm5, %v3124_v19 }
0x23e5   :  { %6024 = vmatmul.mubr.msk.f32.vlgmr.msra.gmra.mrb[28].mxu0 %vm3132_vm5, %v3125_v20 }
0x23e6   :  { %6049 = vmatprep.mubr.msk.f32.mxu0 %vm6638_vm0, %v6639_v9 }
0x24b8   :  { %v6025_v3 = vpop.f32.mrb[28].mxu0 }
0x24b9   :  { %v3211_v55 = vadd.f32 %v6025_v3, %v5555_v2  ;;  %v3205_v45 = vpop.f32.mrb[29].mxu0 }
0x24ba   :  { %v3206_v11 = vadd.f32 %v5555_v2, %v3205_v45 }
0x24bb   :  { %v3215_v40 = vadd.f32 %v3211_v55, %v3036_v8  ;;  %v5559_v8 = vld [vmem:[%s7781_s14 + $0x3] ss:$0 sm:$0xff] }
0x24bc   :  { %v3214_v39 = vadd.f32 %v3206_v11, %v3035_v7 }
0x24bd   :  { %v3219_v12 = vsel %vm93_vm1, %v3215_v40, 0.0 }
0x24be   :  { %3220 = vadd.xlane.f32.xlu1 %v3219_v12  ;;  %v3216_v13 = vsel %vm93_vm1, %v3214_v39, 0.0 }
0x24bf   :  { %3217 = vadd.xlane.f32.xlu0 %v3216_v13 }
0x254b   :  { %v3221_v14 = vpop.xlane.xlu1 %3220 }
0x254c   :  { %v3223_v16 = vmul.f32 0.03125, %v3221_v14  ;;  %v3218_v18 = vpop.xlane.xlu0 %3217 }
0x254d   :  { %v3222_v21 = vmul.f32 0.03125, %v3218_v18 }
0x254e   :  { %v3225_v22 = vsub.f32 %v3215_v40, %v3223_v16 }
0x254f   :  { %v3224_v23 = vsub.f32 %v3214_v39, %v3222_v21 }
0x2550   :  { %v3227_v24 = vmul.f32 %v3225_v22, %v3225_v22 }
0x2551   :  { %v3226_v43 = vmul.f32 %v3224_v23, %v3224_v23 }
0x2552   :  { %v3231_v27 = vsel %vm93_vm1, %v3227_v24, 0.0 }
0x2553   :  { %3232 = vadd.xlane.f32.xlu1 %v3231_v27  ;;  %v3228_v44 = vsel %vm93_vm1, %v3226_v43, 0.0 }
0x2554   :  { %3229 = vadd.xlane.f32.xlu0 %v3228_v44 }
0x25e0   :  { %v3233_v34 = vpop.xlane.xlu1 %3232 }
0x25e1   :  { %v3235_v35 = vmul.f32 0.032258064, %v3233_v34  ;;  %v3230_v38 = vpop.xlane.xlu0 %3229 }
0x25e2   :  { %v3234_v41 = vmul.f32 0.032258064, %v3230_v38 }
0x25e3   :  { %6525 = vrsqrt.f32 %v3235_v35  ;;  %vm3245_vm6 = vcmp.eq.f32.partialorder %v3235_v35, inf  ;;  %v3248_v49 = vand.u32 2147483648, %v3235_v35  ;;  %vm3247_vm7 = vcmp.eq.f32.partialorder %v3235_v35, 0.0 }
0x25e4   :  { %6527 = vrsqrt.f32 %v3234_v41  ;;  %vm3238_vm8 = vcmp.eq.f32.partialorder %v3234_v41, inf  ;;  %v3241_v53 = vand.u32 2147483648, %v3234_v41  ;;  %vm3240_vm9 = vcmp.eq.f32.partialorder %v3234_v41, 0.0 }
0x25ed   :  { %v6526_v42 = vpop.eup %6525 }
0x25ee   :  { %v6528_v46 = vpop.eup %6527  ;;  %v3244_v48 = vmul.f32 %v6526_v42, %v3235_v35 }
0x25ef   :  { %v3237_v50 = vmul.f32 %v6528_v46, %v3234_v41 }
0x25f0   :  { %v3246_v52 = vsel %vm3245_vm6, %v3235_v35, %v3244_v48 }
0x25f1   :  { %v3249_v54 = vsel %vm3247_vm7, %v3248_v49, %v3246_v52  ;;  %v3239_v59 = vsel %vm3238_vm8, %v3234_v41, %v3237_v50 }
0x25f2   :  { %v3251_v17 = vadd.f32 1e-06, %v3249_v54  ;;  %v3242_v61 = vsel %vm3240_vm9, %v3241_v53, %v3239_v59 }
0x25f3   :  { %v3250_v62 = vadd.f32 1e-06, %v3242_v61 }
0x25f4   :  { %6529 = vrcp.f32 %v3251_v17 }
0x25f5   :  { %6531 = vrcp.f32 %v3250_v62 }
0x25fe   :  { %v6530_v63 = vpop.eup %6529 }
0x25ff   :  { %v6532_v10 = vpop.eup %6531  ;;  %v3255_v32 = vmul.f32 %v6530_v63, %v3225_v22 }
0x2600   :  { %v3254_v7 = vmul.f32 %v6532_v10, %v3224_v23 }
0x2601   :  { %v3263_v31 = vmul.f32 %v5558_v1, %v3255_v32 }
0x2602   :  { %v3262_v15 = vmul.f32 %v5558_v1, %v3254_v7 }
0x2603   :  { %v7396_v26 = vadd.f32 %v5559_v8, %v3263_v31 }
0x2604   :  { %v7394_v25 = vadd.f32 %v5559_v8, %v3262_v15 }
0x2606   :  { %6034 = vmatprep.mubr.msk.f32.mxu1 %vm93_vm1, %v7394_v25 }
0x2607   :  { %6035 = vmatmul.mubr.msk.f32.vlgmr.msra.gmra.mrb[28].mxu1 %vm93_vm1, %v7396_v26 }
0x2608   :  { %6039 = vmatprep.mubr.msk.f32.mxu1 %vm6638_vm0, %v6639_v9 }
0x26da   :  { %v6036_v57 = vpop.f32.mrb[28].mxu1 }
0x26db   :  { %v7407_v36 = vadd.f32 %v6036_v57, %v5560_v51  ;;  %v3350_v37 = vpop.f32.mrb[29].mxu1 }
0x26dc   :  { %v7409_v19 = vadd.f32 %v5560_v51, %v3350_v37 }
0x26dd   :  { %3437 = vrot.lane.b32.xlu1 %v7407_v36, %s6641_s3 }
0x26de   :  { %3360 = vrot.lane.b32.xlu0 %v7409_v19, %s6641_s3  ;;  %s7828_s3 = smov 48  }
0x274f   :  { %v3438_v2 = vpop.permute.xlu1 %3437 }
0x2750   :  { %v3361_v20 = vpop.permute.xlu0 %3360 }
0x2751   :  { %6038 = vmatpush3.xpose.msk.msra.mxu1 %vm1527_vm11, %v3361_v20 }
0x2752   :  { %6042 = vmatprep.subr.mxu1 %v6639_v9 }
0x2754   :  { %6040 = vmatmul.mubr.msk.f32.vlgmr.msra.gmra.mrb[30].mxu1 %vm1527_vm11, %v7409_v19 }
0x2755   :  { %6043 = vmatpush3.xpose.msk.msra.mxu1 %vm1527_vm11, %v3438_v2  ;;  %6044 = vmatprep.mubr.msk.f32.mxu1 %vm6638_vm0, %v6639_v9 }
0x2756   :  { %6052 = vmatprep.subr.mxu1 %v6639_v9 }
0x2758   :  { %6045 = vmatmul.mubr.msk.f32.vlgmr.msra.gmra.mrb[32].mxu1 %vm1527_vm11, %v7407_v36 }
0x2759   :  { %6054 = vmatprep.mubr.msk.f32.mxu1 %vm6638_vm0, %v6639_v9 }
0x2827   :  { %v3432_v3 = vpop.f32.mrb[30].mxu1 }
0x2828   :  { %v3513_v55 = vmul.f32 0.35355338, %v3432_v3  ;;  %v6041_v45 = vpop.f32.mrb[31].mxu1 }
0x282a   :  { %v3515_v11 = vadd.f32 %v3513_v55, %v7147_v6 }
0x282b   :  { %v3509_v40 = vpop.f32.mrb[32].mxu1 }
0x282c   :  { %v3514_v39 = vmul.f32 0.35355338, %v3509_v40  ;;  %v6046_v12 = vpop.f32.mrb[33].mxu1  ;;  %v3517_v13 = vsel %vm1527_vm11, %v3515_v11, -inf }
0x282d   :  { %3518 = vmax.xlane.f32.xlu1 %v3517_v13 }
0x282e   :  { %v3516_v14 = vadd.f32 %v3514_v39, %v7144_v5 }
0x2830   :  { %v3520_v16 = vsel %vm1527_vm11, %v3516_v14, -inf }
0x2831   :  { %3521 = vmax.xlane.f32.xlu0 %v3520_v16 }
0x283e   :  { %3615 = vrot.lane.b32.xlu1 %v7407_v36, %s6640_s25 }
0x2842   :  { %3693 = vrot.lane.b32.xlu1 %v7409_v19, %s6643_s28 }
0x2847   :  { %3539 = vrot.lane.b32.xlu0 %v7409_v19, %s6640_s25  ;;  %s7827_s25 = smov 112  }
0x28ba   :  { %v3519_v18 = vpop.xlane.xlu1 %3518 }
0x28bb   :  { %v3523_v21 = vsub.f32 %v3515_v11, %v3519_v18 }
0x28bd   :  { %v3525_v22 = vmul.f32 1.442695, %v3523_v21 }
0x28be   :  { %v3616_v23 = vpop.permute.xlu1 %3615  ;;  %v3522_v24 = vpop.xlane.xlu0 %3521 }
0x28bf   :  { %6533 = vpow2.f32 %v3525_v22  ;;  %v3524_v43 = vsub.f32 %v3516_v14, %v3522_v24  ;;  %6053 = vmatpush3.msra.mxu1 %v3616_v23 }
0x28c0   :  { %6062 = vmatprep.subr.mxu1 %v6639_v9 }
0x28c1   :  { %v3527_v27 = vmul.f32 1.442695, %v3524_v43 }
0x28c2   :  { %v3540_v44 = vpop.permute.xlu0 %3539  ;;  %v3694_v30 = vpop.permute.xlu1 %3693 }
0x28c3   :  { %6535 = vpow2.f32 %v3527_v27  ;;  %6048 = vmatpush3.msra.mxu0 %v3540_v44 }
0x28c4   :  { %6057 = vmatprep.subr.mxu0 %v6639_v9 }
0x28c9   :  { %v6534_v28 = vpop.eup %6533 }
0x28ca   :  { %v3529_v29 = vsel %vm1527_vm11, %v6534_v28, 0.0 }
0x28cb   :  { %3530 = vadd.xlane.f32.xlu0 %v3529_v29 }
0x28cd   :  { %v6536_v47 = vpop.eup %6535 }
0x28ce   :  { %v3532_v56 = vsel %vm1527_vm11, %v6536_v47, 0.0 }
0x28cf   :  { %3533 = vadd.xlane.f32.xlu1 %v3532_v56 }
0x28e0   :  { %3691 = vrot.lane.b32.xlu1 %v7409_v19, %s6644_s29 }
0x28e1   :  { %3771 = vrot.lane.b32.xlu0 %v7407_v36, %s6643_s28  ;;  %s7829_s28 = smov 72  }
0x28e5   :  { %3769 = vrot.lane.b32.xlu0 %v7407_v36, %s6644_s29  ;;  %s7830_s29 = smov 104  }
0x2958   :  { %v3531_v33 = vpop.xlane.xlu0 %3530 }
0x2959   :  { %6537 = vrcp.f32 %v3531_v33 }
0x295c   :  { %v3534_v34 = vpop.xlane.xlu1 %3533  ;;  %v3772_v42 = vpop.permute.xlu0 %3771 }
0x295d   :  { %6539 = vrcp.f32 %v3534_v34 }
0x2960   :  { %v3692_v48 = vpop.permute.xlu1 %3691  ;;  %v3770_v49 = vpop.permute.xlu0 %3769 }
0x2963   :  { %v6538_v35 = vpop.eup %6537 }
0x2964   :  { %v3537_v38 = vmul.f32 %v6538_v35, %v6534_v28 }
0x2966   :  { %6050 = vmatmul.mubr.msk.f32.vlgmr.msra.gmra.mrb[30].mxu0 %vm1527_vm11, %v3537_v38 }
0x2967   :  { %v6540_v41 = vpop.eup %6539  ;;  %6058 = vmatpush3.xpose.msk.msra.mxu0 %vm1527_vm11, %v3694_v30  ;;  %6059 = vmatprep.mubr.msk.f32.mxu0 %vm6638_vm0, %v6639_v9 }
0x2968   :  { %v3538_v46 = vmul.f32 %v6540_v41, %v6536_v47  ;;  %6067 = vmatprep.subr.mxu0 %v6639_v9 }
0x296a   :  { %6055 = vmatmul.mubr.msk.f32.vlgmr.msra.gmra.mrb[34].mxu1 %vm1527_vm11, %v3538_v46  ;;  %6060 = vmatmul.mubr.msk.f32.vlgmr.msra.gmra.mrb[32].mxu0 %vm1527_vm11, %v3692_v48 }
0x296b   :  { %6063 = vmatpush3.xpose.msk.msra.mxu1 %vm1527_vm11, %v3772_v42  ;;  %6064 = vmatprep.mubr.msk.f32.mxu1 %vm6638_vm0, %v6639_v9 }
0x296c   :  { %6072 = vmatprep.subr.mxu1 %v6639_v9  ;;  %6069 = vmatprep.mubr.msk.f32.mxu0 %vm6638_vm0, %v6639_v9 }
0x296e   :  { %6065 = vmatmul.mubr.msk.f32.vlgmr.msra.gmra.mrb[36].mxu1 %vm1527_vm11, %v3770_v49 }
0x296f   :  { %6074 = vmatprep.mubr.msk.f32.mxu1 %vm6638_vm0, %v6639_v9 }
0x2a39   :  { %v7463_v50 = vpop.f32.mrb[30].mxu0 }
0x2a3a   :  { %v6051_v52 = vpop.f32.mrb[31].mxu0 }
0x2a3d   :  { %v7465_v53 = vpop.f32.mrb[34].mxu1  ;;  %v3765_v54 = vpop.f32.mrb[32].mxu0 }
0x2a3e   :  { %v3847_v59 = vmul.f32 0.35355338, %v3765_v54  ;;  %v6056_v17 = vpop.f32.mrb[35].mxu1  ;;  %v6061_v61 = vpop.f32.mrb[33].mxu0 }
0x2a40   :  { %v3849_v62 = vadd.f32 %v3847_v59, %v7147_v6 }
0x2a41   :  { %v3843_v63 = vpop.f32.mrb[36].mxu1 }
0x2a42   :  { %v3848_v1 = vmul.f32 0.35355338, %v3843_v63  ;;  %v6066_v10 = vpop.f32.mrb[37].mxu1  ;;  %v3851_v32 = vsel %vm1527_vm11, %v3849_v62, -inf }
0x2a43   :  { %3852 = vmax.xlane.f32.xlu1 %v3851_v32 }
0x2a44   :  { %v3850_v7 = vadd.f32 %v3848_v1, %v7144_v5 }
0x2a46   :  { %v3854_v8 = vsel %vm1527_vm11, %v3850_v7, -inf }
0x2a47   :  { %3855 = vmax.xlane.f32.xlu0 %v3854_v8 }
0x2a54   :  { %3949 = vrot.lane.b32.xlu1 %v7407_v36, %s6645_s0 }
0x2a58   :  { %4027 = vrot.lane.b32.xlu1 %v7409_v19, %s7826_s7 }
0x2a5d   :  { %3873 = vrot.lane.b32.xlu0 %v7409_v19, %s6645_s0  ;;  %s7831_s0 = smov 40  }
0x2ad0   :  { %v3853_v31 = vpop.xlane.xlu1 %3852 }
0x2ad1   :  { %v3857_v15 = vsub.f32 %v3849_v62, %v3853_v31 }
0x2ad3   :  { %v3859_v51 = vmul.f32 1.442695, %v3857_v15 }
0x2ad4   :  { %v3950_v57 = vpop.permute.xlu1 %3949  ;;  %v3856_v37 = vpop.xlane.xlu0 %3855 }
0x2ad5   :  { %6541 = vpow2.f32 %v3859_v51  ;;  %v3858_v20 = vsub.f32 %v3850_v7, %v3856_v37  ;;  %6073 = vmatpush3.msra.mxu1 %v3950_v57 }
0x2ad6   :  { %6082 = vmatprep.subr.mxu1 %v6639_v9 }
0x2ad7   :  { %v3861_v2 = vmul.f32 1.442695, %v3858_v20 }
0x2ad8   :  { %v3874_v3 = vpop.permute.xlu0 %3873  ;;  %v4028_v39 = vpop.permute.xlu1 %4027 }
0x2ad9   :  { %6543 = vpow2.f32 %v3861_v2  ;;  %6068 = vmatpush3.msra.mxu0 %v3874_v3 }
0x2ada   :  { %6077 = vmatprep.subr.mxu0 %v6639_v9 }
0x2adf   :  { %v6542_v55 = vpop.eup %6541 }
0x2ae0   :  { %v3863_v45 = vsel %vm1527_vm11, %v6542_v55, 0.0 }
0x2ae1   :  { %3864 = vadd.xlane.f32.xlu0 %v3863_v45 }
0x2ae3   :  { %v6544_v11 = vpop.eup %6543 }
0x2ae4   :  { %v3866_v40 = vsel %vm1527_vm11, %v6544_v11, 0.0 }
0x2ae5   :  { %3867 = vadd.xlane.f32.xlu1 %v3866_v40 }
0x2af6   :  { %4025 = vrot.lane.b32.xlu1 %v7409_v19, %s7827_s25 }
0x2af7   :  { %4105 = vrot.lane.b32.xlu0 %v7407_v36, %s7826_s7 }
0x2afb   :  { %4103 = vrot.lane.b32.xlu0 %v7407_v36, %s7827_s25 }
0x2b6e   :  { %v3865_v12 = vpop.xlane.xlu0 %3864 }
0x2b6f   :  { %6545 = vrcp.f32 %v3865_v12 }
0x2b72   :  { %v3868_v13 = vpop.xlane.xlu1 %3867  ;;  %v4106_v21 = vpop.permute.xlu0 %4105 }
0x2b73   :  { %6547 = vrcp.f32 %v3868_v13 }
0x2b76   :  { %v4026_v23 = vpop.permute.xlu1 %4025  ;;  %v4104_v24 = vpop.permute.xlu0 %4103 }
0x2b79   :  { %v6546_v14 = vpop.eup %6545 }
0x2b7a   :  { %v3871_v16 = vmul.f32 %v6546_v14, %v6542_v55 }
0x2b7c   :  { %6070 = vmatmul.mubr.msk.f32.vlgmr.msra.gmra.mrb[34].mxu0 %vm1527_vm11, %v3871_v16 }
0x2b7d   :  { %v6548_v18 = vpop.eup %6547  ;;  %6078 = vmatpush3.xpose.msk.msra.mxu0 %vm1527_vm11, %v4028_v39  ;;  %6079 = vmatprep.mubr.msk.f32.mxu0 %vm6638_vm0, %v6639_v9 }
0x2b7e   :  { %v3872_v22 = vmul.f32 %v6548_v18, %v6544_v11  ;;  %6087 = vmatprep.subr.mxu0 %v6639_v9 }
0x2b80   :  { %6075 = vmatmul.mubr.msk.f32.vlgmr.msra.gmra.mrb[38].mxu1 %vm1527_vm11, %v3872_v22  ;;  %6080 = vmatmul.mubr.msk.f32.vlgmr.msra.gmra.mrb[36].mxu0 %vm1527_vm11, %v4026_v23 }
0x2b81   :  { %6083 = vmatpush3.xpose.msk.msra.mxu1 %vm1527_vm11, %v4106_v21  ;;  %6084 = vmatprep.mubr.msk.f32.mxu1 %vm6638_vm0, %v6639_v9 }
0x2b82   :  { %6092 = vmatprep.subr.mxu1 %v6639_v9  ;;  %6089 = vmatprep.mubr.msk.f32.mxu0 %vm6638_vm0, %v6639_v9 }
0x2b84   :  { %6085 = vmatmul.mubr.msk.f32.vlgmr.msra.gmra.mrb[40].mxu1 %vm1527_vm11, %v4104_v24 }
0x2b85   :  { %6094 = vmatprep.mubr.msk.f32.mxu1 %vm6638_vm0, %v6639_v9 }
0x2c4f   :  { %v7503_v43 = vpop.f32.mrb[34].mxu0 }
0x2c50   :  { %v6071_v27 = vpop.f32.mrb[35].mxu0 }
0x2c53   :  { %v7505_v44 = vpop.f32.mrb[38].mxu1  ;;  %v4099_v28 = vpop.f32.mrb[36].mxu0 }
0x2c54   :  { %v4181_v29 = vmul.f32 0.35355338, %v4099_v28  ;;  %v6076_v47 = vpop.f32.mrb[39].mxu1  ;;  %v6081_v56 = vpop.f32.mrb[37].mxu0 }
0x2c56   :  { %v4183_v30 = vadd.f32 %v4181_v29, %v7147_v6 }
0x2c57   :  { %v4177_v33 = vpop.f32.mrb[40].mxu1 }
0x2c58   :  { %v4182_v34 = vmul.f32 0.35355338, %v4177_v33  ;;  %v6086_v35 = vpop.f32.mrb[41].mxu1  ;;  %v4185_v38 = vsel %vm1527_vm11, %v4183_v30, -inf }
0x2c59   :  { %4186 = vmax.xlane.f32.xlu1 %v4185_v38 }
0x2c5a   :  { %v4184_v41 = vadd.f32 %v4182_v34, %v7144_v5 }
0x2c5c   :  { %v4188_v42 = vsel %vm1527_vm11, %v4184_v41, -inf }
0x2c5d   :  { %4189 = vmax.xlane.f32.xlu0 %v4188_v42 }
0x2c6a   :  { %4283 = vrot.lane.b32.xlu1 %v7407_v36, %s7828_s3 }
0x2c6e   :  { %4361 = vrot.lane.b32.xlu1 %v7409_v19, %s7829_s28 }
0x2c73   :  { %4207 = vrot.lane.b32.xlu0 %v7409_v19, %s7828_s3 }
0x2ce6   :  { %v4187_v46 = vpop.xlane.xlu1 %4186 }
0x2ce7   :  { %v4191_v48 = vsub.f32 %v4183_v30, %v4187_v46  ;;  %v1362_v46 = vld [vmem:[%s7775_s8 + $0x28] sm:$0xff] }
0x2ce9   :  { %v4193_v49 = vmul.f32 1.442695, %v4191_v48 }
0x2cea   :  { %v4284_v52 = vpop.permute.xlu1 %4283  ;;  %v4190_v54 = vpop.xlane.xlu0 %4189 }
0x2ceb   :  { %6549 = vpow2.f32 %v4193_v49  ;;  %v4192_v59 = vsub.f32 %v4184_v41, %v4190_v54  ;;  %6093 = vmatpush3.msra.mxu1 %v4284_v52  ;;  %v1363_v49 = vld [vmem:[%s7775_s8 + $0x30] sm:$0xff]  ;;  %v1364_v52 = vld [vmem:[%s7775_s8 + $0x38] sm:$0xff] }
0x2cec   :  { %6102 = vmatprep.subr.mxu1 %v6639_v9  ;;  %v6307_v54 = vpack.c.bf16 %v1364_v52, %v1363_v49 }
0x2ced   :  { %v4195_v17 = vmul.f32 1.442695, %v4192_v59 }
0x2cee   :  { %v4208_v61 = vpop.permute.xlu0 %4207  ;;  %v4362_v32 = vpop.permute.xlu1 %4361 }
0x2cef   :  { %6551 = vpow2.f32 %v4195_v17  ;;  %6088 = vmatpush3.msra.mxu0 %v4208_v61 }
0x2cf0   :  { %6097 = vmatprep.subr.mxu0 %v6639_v9 }
0x2cf5   :  { %v6550_v62 = vpop.eup %6549 }
0x2cf6   :  { %v4197_v63 = vsel %vm1527_vm11, %v6550_v62, 0.0 }
0x2cf7   :  { %4198 = vadd.xlane.f32.xlu0 %v4197_v63 }
0x2cf9   :  { %v6552_v1 = vpop.eup %6551 }
0x2cfa   :  { %v4200_v10 = vsel %vm1527_vm11, %v6552_v1, 0.0 }
0x2cfb   :  { %4201 = vadd.xlane.f32.xlu1 %v4200_v10 }
0x2d0c   :  { %4359 = vrot.lane.b32.xlu1 %v7409_v19, %s7830_s29 }
0x2d0d   :  { %4439 = vrot.lane.b32.xlu0 %v7407_v36, %s7829_s28 }
0x2d11   :  { %4437 = vrot.lane.b32.xlu0 %v7407_v36, %s7830_s29 }
0x2d84   :  { %v4199_v7 = vpop.xlane.xlu0 %4198 }
0x2d85   :  { %6553 = vrcp.f32 %v4199_v7 }
0x2d88   :  { %v4202_v8 = vpop.xlane.xlu1 %4201  ;;  %v4440_v57 = vpop.permute.xlu0 %4439 }
0x2d89   :  { %6555 = vrcp.f32 %v4202_v8 }
0x2d8c   :  { %v4360_v20 = vpop.permute.xlu1 %4359  ;;  %v4438_v2 = vpop.permute.xlu0 %4437 }
0x2d8f   :  { %v6554_v31 = vpop.eup %6553 }
0x2d90   :  { %v4205_v15 = vmul.f32 %v6554_v31, %v6550_v62 }
0x2d92   :  { %6090 = vmatmul.mubr.msk.f32.vlgmr.msra.gmra.mrb[38].mxu0 %vm1527_vm11, %v4205_v15 }
0x2d93   :  { %v6556_v51 = vpop.eup %6555  ;;  %6098 = vmatpush3.xpose.msk.msra.mxu0 %vm1527_vm11, %v4362_v32  ;;  %6099 = vmatprep.mubr.msk.f32.mxu0 %vm6638_vm0, %v6639_v9 }
0x2d94   :  { %v4206_v37 = vmul.f32 %v6556_v51, %v6552_v1  ;;  %6107 = vmatprep.subr.mxu0 %v6639_v9 }
0x2d96   :  { %6095 = vmatmul.mubr.msk.f32.vlgmr.msra.gmra.mrb[42].mxu1 %vm1527_vm11, %v4206_v37  ;;  %6100 = vmatmul.mubr.msk.f32.vlgmr.msra.gmra.mrb[40].mxu0 %vm1527_vm11, %v4360_v20 }
0x2d97   :  { %6103 = vmatpush3.xpose.msk.msra.mxu1 %vm1527_vm11, %v4440_v57  ;;  %6104 = vmatprep.mubr.msk.f32.mxu1 %vm6638_vm0, %v6639_v9 }
0x2d98   :  { %6112 = vmatprep.subr.mxu1 %v6639_v9  ;;  %6109 = vmatprep.mubr.msk.f32.mxu0 %vm6638_vm0, %v6639_v9 }
0x2d9a   :  { %6105 = vmatmul.mubr.msk.f32.vlgmr.msra.gmra.mrb[44].mxu1 %vm1527_vm11, %v4438_v2 }
0x2d9b   :  { %6114 = vmatprep.mubr.msk.f32.mxu1 %vm6638_vm0, %v6639_v9 }
0x2e65   :  { %v4279_v3 = vpop.f32.mrb[38].mxu0 }
0x2e66   :  { %v6091_v55 = vpop.f32.mrb[39].mxu0 }
0x2e69   :  { %v4355_v45 = vpop.f32.mrb[42].mxu1  ;;  %v4433_v11 = vpop.f32.mrb[40].mxu0 }
0x2e6a   :  { %v4515_v40 = vmul.f32 0.35355338, %v4433_v11  ;;  %v6096_v39 = vpop.f32.mrb[43].mxu1  ;;  %v6101_v12 = vpop.f32.mrb[41].mxu0 }
0x2e6c   :  { %v4517_v13 = vadd.f32 %v4515_v40, %v7147_v6 }
0x2e6d   :  { %v4511_v14 = vpop.f32.mrb[44].mxu1 }
0x2e6e   :  { %v4516_v16 = vmul.f32 0.35355338, %v4511_v14  ;;  %v6106_v18 = vpop.f32.mrb[45].mxu1  ;;  %v4519_v21 = vsel %vm1527_vm11, %v4517_v13, -inf }
0x2e6f   :  { %4520 = vmax.xlane.f32.xlu1 %v4519_v21 }
0x2e70   :  { %v4518_v22 = vadd.f32 %v4516_v16, %v7144_v5 }
0x2e72   :  { %v4522_v23 = vsel %vm1527_vm11, %v4518_v22, -inf }
0x2e73   :  { %4523 = vmax.xlane.f32.xlu0 %v4522_v23 }
0x2efc   :  { %v4521_v24 = vpop.xlane.xlu1 %4520 }
0x2efd   :  { %v4525_v27 = vsub.f32 %v4517_v13, %v4521_v24 }
0x2eff   :  { %v4527_v28 = vmul.f32 1.442695, %v4525_v27  ;;  %v1372_v27 = vld [vmem:[%s7777_s10 + $0x28] sm:$0xff] }
0x2f00   :  { %v4524_v29 = vpop.xlane.xlu0 %4523 }
0x2f01   :  { %6557 = vpow2.f32 %v4527_v28  ;;  %v4526_v47 = vsub.f32 %v4518_v22, %v4524_v29  ;;  %v1373_v28 = vld [vmem:[%s7777_s10 + $0x30] sm:$0xff] }
0x2f03   :  { %v4529_v56 = vmul.f32 1.442695, %v4526_v47  ;;  %v1374_v47 = vld [vmem:[%s7777_s10 + $0x38] sm:$0xff] }
0x2f05   :  { %6559 = vpow2.f32 %v4529_v56  ;;  %v6315_v56 = vpack.c.bf16 %v1374_v47, %v1373_v28 }
0x2f0b   :  { %v6558_v6 = vpop.eup %6557 }
0x2f0c   :  { %v4531_v30 = vsel %vm1527_vm11, %v6558_v6, 0.0 }
0x2f0d   :  { %4532 = vadd.xlane.f32.xlu0 %v4531_v30  ;;  %v1386_v30 = vld [vmem:[%s7779_s12 + $0x48] sm:$0xff] }
0x2f0f   :  { %v6560_v33 = vpop.eup %6559 }
0x2f10   :  { %v4534_v34 = vsel %vm1527_vm11, %v6560_v33, 0.0 }
0x2f11   :  { %4535 = vadd.xlane.f32.xlu1 %v4534_v34 }
0x2f22   :  { %4617 = vrot.lane.b32.xlu1 %v7407_v36, %s7831_s0 }
0x2f23   :  { %4541 = vrot.lane.b32.xlu0 %v7409_v19, %s7831_s0 }
0x2f26   :  { %4695 = vrot.lane.b32.xlu1 %v7503_v43, %s7832_s1 }
0x2f27   :  { %4697 = vrot.lane.b32.xlu0 %v7505_v44, %s7832_s1  ;;  %v1361_v44 = vld [vmem:[%s7775_s8 + $0x20] sm:$0xff] }
0x2f28   :  { %v6303_v48 = vpack.c.bf16 %v1362_v46, %v1361_v44 }
0x2f2a   :  { %4703 = vrot.lane.b32.xlu1 %v4279_v3, %s7833_s2 }
0x2f2b   :  { %4705 = vrot.lane.b32.xlu0 %v4355_v45, %s7833_s2 }
0x2f9a   :  { %v4533_v5 = vpop.xlane.xlu0 %4532 }
0x2f9b   :  { %6561 = vrcp.f32 %v4533_v5  ;;  %v1388_v5 = vld [vmem:[%s7779_s12 + $0x58] sm:$0xff] }
0x2f9e   :  { %v4536_v35 = vpop.xlane.xlu1 %4535  ;;  %v4542_v38 = vpop.permute.xlu0 %4541 }
0x2f9f   :  { %6563 = vrcp.f32 %v4536_v35  ;;  %6108 = vmatpush3.msra.mxu0 %v4542_v38  ;;  %v1389_v38 = vld [vmem:[%s7779_s12 + $0x60] sm:$0xff] }
0x2fa0   :  { %6304 = vmatprep.subr.bf16.mxu0 %v6303_v48 }
0x2fa2   :  { %v4618_v36 = vpop.permute.xlu1 %4617  ;;  %v4698_v1 = vpop.permute.xlu0 %4697 }
0x2fa3   :  { %6113 = vmatpush3.msra.mxu1 %v4618_v36  ;;  %v4718_v51 = vsel %vm1527_vm11, %v7465_v53, %v4698_v1  ;;  %v1390_v36 = vld [vmem:[%s7779_s12 + $0x68] sm:$0xff] }
0x2fa5   :  { %v6562_v41 = vpop.eup %6561 }
0x2fa6   :  { %v4539_v19 = vmul.f32 %v6562_v41, %v6558_v6  ;;  %v4696_v63 = vpop.permute.xlu1 %4695  ;;  %v4706_v7 = vpop.permute.xlu0 %4705  ;;  %v1385_v6 = vld [vmem:[%s7779_s12 + $0x40] sm:$0xff]  ;;  %v6327_v41 = vpack.c.bf16 %v1390_v36, %v1389_v38  ;;  %v5106_v38 = vld [vmem:[%s7782_s15 + $0x10] sm:$0xff] }
0x2fa7   :  { %v4717_v32 = vsel %vm1527_vm11, %v7463_v50, %v4696_v63  ;;  %v4720_v57 = vsel %vm2885_vm12, %v4718_v51, %v4706_v7  ;;  %v5587_v50 = vld [vmem:[%s7776_s9 + $0x1] ss:$0 sm:$0xff]  ;;  %v6319_v34 = vpack.c.bf16 %v1386_v30, %v1385_v6  ;;  %v5590_v7 = vld [vmem:[%s7781_s14 + $0x4] ss:$0 sm:$0xff]  ;;  %v5591_v51 = vld [vmem:[%s7781_s14 + $0x5] ss:$0 sm:$0xff] }
0x2fa8   :  { %6110 = vmatmul.mubr.msk.f32.vlgmr.msra.gmra.mrb[42].mxu0 %vm1527_vm11, %v4539_v19 }
0x2fa9   :  { %v6564_v43 = vpop.eup %6563  ;;  %6306 = vmatpush3.bf16.msra.mxu0 %v6303_v48 }
0x2faa   :  { %v4540_v42 = vmul.f32 %v6564_v43, %v6560_v33  ;;  %6308 = vmatprep.subr.bf16.mxu0 %v6307_v54  ;;  %v4704_v10 = vpop.permute.xlu1 %4703  ;;  %v1387_v33 = vld [vmem:[%s7779_s12 + $0x50] sm:$0xff] }
0x2fab   :  { %v4719_v8 = vsel %vm2885_vm12, %v4717_v32, %v4704_v10  ;;  %v6323_v35 = vpack.c.bf16 %v1388_v5, %v1387_v33  ;;  %v5104_v5 = vld [vmem:[%s7782_s15] sm:$0xff] }
0x2fac   :  { %6115 = vmatmul.mubr.msk.f32.vlgmr.msra.gmra.mrb[46].mxu1 %vm1527_vm11, %v4540_v42 }
0x2fad   :  { %6310 = vmatpush3.bf16.msra.mxu0 %v6307_v54 }
0x2fae   :  { %6320 = vmatprep.subr.bf16.mxu0 %v6319_v34 }
0x307b   :  { %v4613_v59 = vpop.f32.mrb[42].mxu0 }
0x307c   :  { %4711 = vrot.lane.b32.xlu1 %v4613_v59, %s7834_s27  ;;  %v6111_v17 = vpop.f32.mrb[43].mxu0 }
0x307f   :  { %v4689_v61 = vpop.f32.mrb[46].mxu1 }
0x3080   :  { %4713 = vrot.lane.b32.xlu0 %v4689_v61, %s7834_s27  ;;  %v6116_v62 = vpop.f32.mrb[47].mxu1 }
0x30ee   :  { %v4712_v31 = vpop.permute.xlu1 %4711 }
0x30ef   :  { %v4721_v15 = vsel %vm2888_vm13, %v4719_v8, %v4712_v31 }
0x30f0   :  { %6125 = vmatprep.mubr.msk.f32.mxu0 %vm93_vm1, %v4721_v15 }
0x30f2   :  { %v4714_v37 = vpop.permute.xlu0 %4713 }
0x30f3   :  { %v4722_v20 = vsel %vm2888_vm13, %v4720_v57, %v4714_v37 }
0x30f4   :  { %6126 = vmatmul.mubr.msk.f32.vlgmr.msra.gmra.mrb[44].mxu0 %vm93_vm1, %v4722_v20 }
0x30f5   :  { %6322 = vmatpush3.bf16.msra.mxu0 %v6319_v34 }
0x30f6   :  { %6324 = vmatprep.subr.bf16.mxu0 %v6323_v35 }
0x30f9   :  { %6326 = vmatpush3.bf16.msra.mxu0 %v6323_v35  ;;  %v5105_v35 = vld [vmem:[%s7782_s15 + $0x8] sm:$0xff] }
0x30fa   :  { %6328 = vmatprep.subr.bf16.mxu0 %v6327_v41  ;;  %v6335_v36 = vpack.c.bf16 %v5105_v35, %v5104_v5 }
0x30fd   :  { %6330 = vmatpush3.bf16.msra.mxu0 %v6327_v41  ;;  %v5107_v41 = vld [vmem:[%s7782_s15 + $0x18] sm:$0xff] }
0x31c7   :  { %v6127_v2 = vpop.f32.mrb[44].mxu0 }
0x31c8   :  { %v4807_v3 = vadd.f32 %v6127_v2, %v5587_v50  ;;  %v4801_v55 = vpop.f32.mrb[45].mxu0  ;;  %v1391_v2 = vld [vmem:[%s7779_s12 + $0x70] sm:$0xff] }
0x31c9   :  { %v4802_v45 = vadd.f32 %v5587_v50, %v4801_v55 }
0x31ca   :  { %v4811_v11 = vadd.f32 %v4807_v3, %v7396_v26  ;;  %v1392_v3 = vld [vmem:[%s7779_s12 + $0x78] sm:$0xff] }
0x31cb   :  { %v4810_v40 = vadd.f32 %v4802_v45, %v7394_v25  ;;  %v1371_v25 = vld [vmem:[%s7777_s10 + $0x20] sm:$0xff]  ;;  %v6331_v55 = vpack.c.bf16 %v1392_v3, %v1391_v2 }
0x31cc   :  { %v4815_v53 = vsel %vm93_vm1, %v4811_v11, 0.0  ;;  %v6311_v29 = vpack.c.bf16 %v1372_v27, %v1371_v25  ;;  %v5592_v45 = vld [vmem:[%s7778_s11 + $0x1] ss:$0 sm:$0xff] }
0x31cd   :  { %4816 = vadd.xlane.f32.xlu0 %v4815_v53  ;;  %v4812_v39 = vsel %vm93_vm1, %v4810_v40, 0.0  ;;  %6332 = vmatprep.subr.bf16.mxu0 %v6331_v55 }
0x31ce   :  { %4813 = vadd.xlane.f32.xlu1 %v4812_v39  ;;  %6312 = vmatprep.subr.bf16.mxu1 %v6311_v29 }
0x31cf   :  { %6314 = vmatpush3.bf16.msra.mxu1 %v6311_v29  ;;  %6334 = vmatpush3.bf16.msra.mxu0 %v6331_v55  ;;  %v5200_v55 = vld [vmem:[%s7784_s17 + $0x10] sm:$0xff] }
0x31d0   :  { %6316 = vmatprep.subr.bf16.mxu1 %v6315_v56  ;;  %6359 = vmatprep.subr.bf16.mxu0 %v6637_v4 }
0x31d3   :  { %6318 = vmatpush3.bf16.msra.mxu1 %v6315_v56 }
0x31d4   :  { %6336 = vmatprep.subr.bf16.mxu1 %v6335_v36 }
0x325a   :  { %v4817_v12 = vpop.xlane.xlu0 %4816 }
0x325b   :  { %v4819_v13 = vmul.f32 0.03125, %v4817_v12  ;;  %v4814_v14 = vpop.xlane.xlu1 %4813 }
0x325c   :  { %v4818_v16 = vmul.f32 0.03125, %v4814_v14  ;;  %v5595_v14 = vld [vmem:[%s7780_s13 + $0x1] ss:$0 sm:$0xff] }
0x325d   :  { %v4821_v18 = vsub.f32 %v4811_v11, %v4819_v13 }
0x325e   :  { %v4820_v21 = vsub.f32 %v4810_v40, %v4818_v16 }
0x325f   :  { %v4823_v22 = vmul.f32 %v4821_v18, %v4821_v18 }
0x3260   :  { %v4822_v23 = vmul.f32 %v4820_v21, %v4820_v21 }
0x3261   :  { %v4827_v24 = vsel %vm93_vm1, %v4823_v22, 0.0 }
0x3262   :  { %4828 = vadd.xlane.f32.xlu1 %v4827_v24  ;;  %v4824_v26 = vsel %vm93_vm1, %v4822_v23, 0.0 }
0x3263   :  { %4825 = vadd.xlane.f32.xlu0 %v4824_v26 }
0x32ef   :  { %v4829_v19 = vpop.xlane.xlu1 %4828 }
0x32f0   :  { %v4831_v43 = vmul.f32 0.032258064, %v4829_v19  ;;  %v4826_v42 = vpop.xlane.xlu0 %4825  ;;  %v6339_v19 = vpack.c.bf16 %v5107_v41, %v5106_v38 }
0x32f1   :  { %v4830_v44 = vmul.f32 0.032258064, %v4826_v42  ;;  %v5199_v42 = vld [vmem:[%s7784_s17 + $0x8] sm:$0xff] }
0x32f2   :  { %6565 = vrsqrt.f32 %v4831_v43  ;;  %vm4841_vm10 = vcmp.eq.f32.partialorder %v4831_v43, inf  ;;  %v4844_v52 = vand.u32 2147483648, %v4831_v43  ;;  %vm4843_vm11 = vcmp.eq.f32.partialorder %v4831_v43, 0.0 }
0x32f3   :  { %6567 = vrsqrt.f32 %v4830_v44  ;;  %vm4834_vm12 = vcmp.eq.f32.partialorder %v4830_v44, inf  ;;  %v4837_v17 = vand.u32 2147483648, %v4830_v44  ;;  %vm4836_vm13 = vcmp.eq.f32.partialorder %v4830_v44, 0.0 }
0x32fc   :  { %v6566_v46 = vpop.eup %6565 }
0x32fd   :  { %v6568_v48 = vpop.eup %6567  ;;  %v4840_v49 = vmul.f32 %v6566_v46, %v4831_v43 }
0x32fe   :  { %v4833_v54 = vmul.f32 %v6568_v48, %v4830_v44 }
0x32ff   :  { %v4842_v59 = vsel %vm4841_vm10, %v4831_v43, %v4840_v49  ;;  %v5198_v43 = vld [vmem:[%s7784_s17] sm:$0xff] }
0x3300   :  { %v4845_v61 = vsel %vm4843_vm11, %v4844_v52, %v4842_v59  ;;  %v4835_v62 = vsel %vm4834_vm12, %v4830_v44, %v4833_v54  ;;  %v6343_v44 = vpack.c.bf16 %v5199_v42, %v5198_v43 }
0x3301   :  { %v4847_v63 = vadd.f32 1e-06, %v4845_v61  ;;  %v4838_v1 = vsel %vm4836_vm13, %v4837_v17, %v4835_v62 }
0x3302   :  { %v4846_v10 = vadd.f32 1e-06, %v4838_v1 }
0x3303   :  { %6569 = vrcp.f32 %v4847_v63 }
0x3304   :  { %6571 = vrcp.f32 %v4846_v10 }
0x330d   :  { %v6570_v32 = vpop.eup %6569 }
0x330e   :  { %v6572_v8 = vpop.eup %6571  ;;  %v4851_v31 = vmul.f32 %v6570_v32, %v4821_v18 }
0x330f   :  { %v4850_v15 = vmul.f32 %v6572_v8, %v4820_v21 }
0x3310   :  { %v4859_v57 = vmul.f32 %v5590_v7, %v4851_v31 }
0x3311   :  { %v4858_v37 = vmul.f32 %v5590_v7, %v4850_v15 }
0x3312   :  { %v4867_v50 = vadd.f32 %v5591_v51, %v4859_v57 }
0x3313   :  { %v4866_v20 = vadd.f32 %v5591_v51, %v4858_v37  ;;  %v5598_v51 = vld [vmem:[%s7781_s14 + $0x6] ss:$0 sm:$0xff] }
0x3315   :  { %6136 = vmatprep.mubr.msk.f32.mxu1 %vm93_vm1, %v4866_v20 }
0x3316   :  { %6137 = vmatmul.mubr.msk.f32.vlgmr.msra.gmra.mrb[48].mxu1 %vm93_vm1, %v4867_v50 }
0x3317   :  { %6338 = vmatpush3.bf16.msra.mxu1 %v6335_v36 }
0x3318   :  { %6340 = vmatprep.subr.bf16.mxu1 %v6339_v19 }
0x331b   :  { %6342 = vmatpush3.bf16.msra.mxu1 %v6339_v19 }
0x331c   :  { %6344 = vmatprep.subr.bf16.mxu1 %v6343_v44 }
0x33e9   :  { %v6138_v11 = vpop.f32.mrb[48].mxu1 }
0x33ea   :  { %v4952_v40 = vadd.f32 %v6138_v11, %v5592_v45  ;;  %v4946_v53 = vpop.f32.mrb[49].mxu1 }
0x33eb   :  { %v4947_v39 = vadd.f32 %v5592_v45, %v4946_v53  ;;  %v5201_v45 = vld [vmem:[%s7784_s17 + $0x18] sm:$0xff] }
0x33ec   :  { %v4956_v13 = vmax.f32 %v4952_v40, 0.0  ;;  %v6347_v53 = vpack.c.bf16 %v5201_v45, %v5200_v55 }
0x33ed   :  { %v4955_v12 = vmax.f32 %v4947_v39, 0.0  ;;  %v5202_v39 = vld [vmem:[%s7784_s17 + $0x20] sm:$0xff] }
0x33ef   :  { %6155 = vmatprep.mubr.msk.f32.mxu0 %vm3132_vm5, %v4955_v12  ;;  %v5203_v12 = vld [vmem:[%s7784_s17 + $0x28] sm:$0xff] }
0x33f0   :  { %6156 = vmatmul.mubr.msk.f32.vlgmr.msra.gmra.mrb[46].mxu0 %vm3132_vm5, %v4956_v13  ;;  %v6351_v13 = vpack.c.bf16 %v5203_v12, %v5202_v39 }
0x33f1   :  { %6196 = vmatprep.mubr.msk.f32.mxu0 %vm6638_vm0, %v6639_v9 }
0x34c3   :  { %v6157_v16 = vpop.f32.mrb[46].mxu0 }
0x34c4   :  { %v5041_v18 = vadd.f32 %v6157_v16, %v5595_v14  ;;  %v5035_v21 = vpop.f32.mrb[47].mxu0  ;;  %v5205_v16 = vld [vmem:[%s7784_s17 + $0x38] sm:$0xff] }
0x34c5   :  { %v5036_v22 = vadd.f32 %v5595_v14, %v5035_v21  ;;  %v5204_v14 = vld [vmem:[%s7784_s17 + $0x30] sm:$0xff]  ;;  %v5303_v21 = vsub.s32 1, %v7131_v58  ;;  %v6655_v58 = vmov 0  }
0x34c6   :  { %v5045_v23 = vadd.f32 %v5041_v18, %v4867_v50  ;;  %v6355_v18 = vpack.c.bf16 %v5205_v16, %v5204_v14  ;;  %6388 = vset.pattern.permute.xlu0 %v6655_v58  ;;  %6387 = vset.pattern.permute.xlu1 %v6655_v58  ;;  %v5375_v14 = vld [vmem:[%s7786_s19] sm:$0xff]  ;;  %v5376_v16 = vld [vmem:[%s7786_s19 + $0x8] sm:$0xff] }
0x34c7   :  { %v5044_v24 = vadd.f32 %v5036_v22, %v4866_v20  ;;  %v5599_v20 = vld [vmem:[%s7781_s14 + $0x7] ss:$0 sm:$0xff]  ;;  %v5297_v22 = vrot.slane %v7136_v60, %v7141_v0 }
0x34c8   :  { %v5049_v26 = vsel %vm93_vm1, %v5045_v23, 0.0 }
0x34c9   :  { %5050 = vadd.xlane.f32.xlu1 %v5049_v26  ;;  %v5046_v25 = vsel %vm93_vm1, %v5044_v24, 0.0 }
0x34ca   :  { %5047 = vadd.xlane.f32.xlu0 %v5046_v25 }
0x3556   :  { %v5051_v27 = vpop.xlane.xlu1 %5050 }
0x3557   :  { %v5053_v28 = vmul.f32 0.03125, %v5051_v27  ;;  %v5048_v29 = vpop.xlane.xlu0 %5047 }
0x3558   :  { %v5052_v9 = vmul.f32 0.03125, %v5048_v29 }
0x3559   :  { %v5055_v47 = vsub.f32 %v5045_v23, %v5053_v28  ;;  %v5304_v23 = vrot.slane %v7136_v60, %v5303_v21  ;;  %v5603_v60 = vld [vmem:[#allocation3] ss:$0 sm:$0xff] }
0x355a   :  { %v5054_v56 = vsub.f32 %v5044_v24, %v5052_v9  ;;  %v5600_v24 = vld [vmem:[%s7783_s16] ss:$0 sm:$0xff]  ;;  %v5377_v21 = vld [vmem:[%s7786_s19 + $0x10] sm:$0xff] }
0x355b   :  { %v5057_v6 = vmul.f32 %v5055_v47, %v5055_v47 }
0x355c   :  { %v5056_v30 = vmul.f32 %v5054_v56, %v5054_v56 }
0x355d   :  { %v5061_v33 = vsel %vm93_vm1, %v5057_v6, 0.0 }
0x355e   :  { %5062 = vadd.xlane.f32.xlu1 %v5061_v33  ;;  %v5058_v34 = vsel %vm93_vm1, %v5056_v30, 0.0 }
0x355f   :  { %5059 = vadd.xlane.f32.xlu0 %v5058_v34 }
0x356f   :  { %5306 = vbcast.lane.b32.xlu1 %v5304_v23, 256 }
0x3575   :  { %5299 = vbcast.lane.b32.xlu0 %v5297_v22, 256  ;;  %v5378_v22 = vld [vmem:[%s7786_s19 + $0x18] sm:$0xff]  ;;  %s6656_s19 = smov [#allocation6]  }
0x3576   :  { %v6363_v23 = vpack.c.bf16 %v5378_v22, %v5377_v21  ;;  %s5478_s15 = sshll.u32 %s6656_s19, 4  ;;  %s5479_s15 = int_to_ptr.vmem [resolvable:$true] %s5478_s15 }
0x3577   :  { %s6589_s28 = scalar_lea.vmem %s5479_s15, 256  ;;  %p6594_p1 = scmp.lt.s32.totalorder %s5479_s15, %s5479_s15 }
0x3578   :  { %p6590_p0 = scmp.ne.s32.totalorder %s5479_s15, %s6589_s28  ;;  %p6595_p2 = scmp.lt.s32.totalorder %s6589_s28, %s6589_s28 }
0x357a   :  { %p6596_p3 = por %p6595_p2, %p6594_p1 }
0x357c   :  { %p6597_p4 = pnand %p6596_p3, %p6590_p0 }
0x35eb   :  { %v5063_v46 = vpop.xlane.xlu1 %5062 }
0x35ec   :  { %v5065_v48 = vmul.f32 0.032258064, %v5063_v46  ;;  %v5060_v49 = vpop.xlane.xlu0 %5059 }
0x35ed   :  { %v5064_v52 = vmul.f32 0.032258064, %v5060_v49 }
0x35ee   :  { %6573 = vrsqrt.f32 %v5065_v48  ;;  %vm5075_vm0 = vcmp.eq.f32.partialorder %v5065_v48, inf  ;;  %v5078_v61 = vand.u32 2147483648, %v5065_v48  ;;  %vm5077_vm14 = vcmp.eq.f32.partialorder %v5065_v48, 0.0 }
0x35ef   :  { %6575 = vrsqrt.f32 %v5064_v52  ;;  %vm5068_vm15 = vcmp.eq.f32.partialorder %v5064_v52, inf  ;;  %v5071_v1 = vand.u32 2147483648, %v5064_v52  ;;  %vm5070_vm3 = vcmp.eq.f32.partialorder %v5064_v52, 0.0 }
0x35f0   :  { %v5300_v30 = vpop.permute.xlu0 %5299 }
0x35f8   :  { %v6574_v54 = vpop.eup %6573 }
0x35f9   :  { %v6576_v59 = vpop.eup %6575  ;;  %v5074_v17 = vmul.f32 %v6574_v54, %v5065_v48 }
0x35fa   :  { %v5067_v62 = vmul.f32 %v6576_v59, %v5064_v52 }
0x35fb   :  { %v5076_v63 = vsel %vm5075_vm0, %v5065_v48, %v5074_v17 }
0x35fc   :  { %v5079_v10 = vsel %vm5077_vm14, %v5078_v61, %v5076_v63  ;;  %v5069_v32 = vsel %vm5068_vm15, %v5064_v52, %v5067_v62 }
0x35fd   :  { %v5081_v7 = vadd.f32 1e-06, %v5079_v10  ;;  %v5072_v8 = vsel %vm5070_vm3, %v5071_v1, %v5069_v32 }
0x35fe   :  { %v5080_v31 = vadd.f32 1e-06, %v5072_v8 }
0x35ff   :  { %6577 = vrcp.f32 %v5081_v7 }
0x3600   :  { %6579 = vrcp.f32 %v5080_v31 }
0x3609   :  { %v6578_v15 = vpop.eup %6577 }
0x360a   :  { %v6580_v57 = vpop.eup %6579  ;;  %v5085_v37 = vmul.f32 %v6578_v15, %v5055_v47  ;;  %v5307_v47 = vpop.permute.xlu1 %5306 }
0x360b   :  { %v5084_v50 = vmul.f32 %v6580_v57, %v5054_v56 }
0x360c   :  { %v5093_v2 = vmul.f32 %v5598_v51, %v5085_v37 }
0x360d   :  { %v5092_v3 = vmul.f32 %v5598_v51, %v5084_v50 }
0x360e   :  { %v7683_v11 = vadd.f32 %v5599_v20, %v5093_v2 }
0x360f   :  { %v7685_v40 = vadd.f32 %v5599_v20, %v5092_v3 }
0x3610   :  { %5103 = vst.msk [vmem:[#allocation6 + $0x8] sm:$0xff] %vm93_vm1, %v7683_v11 }
0x3611   :  { %6166 = vmatprep.mubr.msk.f32.mxu1 %vm93_vm1, %v7685_v40  ;;  %5102 = vst.msk [vmem:[#allocation6] sm:$0xff] %vm93_vm1, %v7685_v40 }
0x3612   :  { %6167 = vmatmul.mubr.msk.f32.vlgmr.msra.gmra.mrb[50].mxu1 %vm93_vm1, %v7683_v11 }
0x3613   :  { %6346 = vmatpush3.bf16.msra.mxu1 %v6343_v44 }
0x3614   :  { %6348 = vmatprep.subr.bf16.mxu1 %v6347_v53 }
0x3617   :  { %6350 = vmatpush3.bf16.msra.mxu1 %v6347_v53 }
0x3618   :  { %6352 = vmatprep.subr.bf16.mxu1 %v6351_v13 }
0x361b   :  { %6354 = vmatpush3.bf16.msra.mxu1 %v6351_v13 }
0x361c   :  { %6356 = vmatprep.subr.bf16.mxu1 %v6355_v18 }
0x361f   :  { %6358 = vmatpush3.bf16.msra.mxu1 %v6355_v18  ;;  %v6360_v18 = vpack.c.bf16 %v5376_v16, %v5375_v14 }
0x3621   :  { %6361 = vmatpush3.bf16.msra.mxu0 %v6360_v18 }
0x3622   :  { %6362 = vmatprep.subr.bf16.mxu0 %v6637_v4 }
0x3625   :  { %6364 = vmatpush3.bf16.msra.mxu0 %v6363_v23 }
0x36e5   :  { %v6168_v26 = vpop.f32.mrb[50].mxu1 }
0x36e6   :  { %v5193_v25 = vadd.f32 %v6168_v26, %v5600_v24  ;;  %v5187_v27 = vpop.f32.mrb[51].mxu1 }
0x36e7   :  { %v5188_v28 = vadd.f32 %v5600_v24, %v5187_v27 }
0x36e8   :  { %v5197_v9 = vmax.f32 %v5193_v25, 0.0 }
0x36e9   :  { %v5196_v29 = vmax.f32 %v5188_v28, 0.0 }
0x36eb   :  { %6185 = vmatprep.mubr.msk.f32.mxu1 %vm3132_vm5, %v5196_v29 }
0x36ec   :  { %6186 = vmatmul.mubr.msk.f32.vlgmr.msra.gmra.mrb[52].mxu1 %vm3132_vm5, %v5197_v9 }
0x37bf   :  { %v6187_v0 = vpop.f32.mrb[52].mxu1 }
0x37c0   :  { %v5291_v56 = vadd.f32 %v6187_v0, %v5603_v60  ;;  %v5285_v6 = vpop.f32.mrb[53].mxu1 }
0x37c1   :  { %v5286_v33 = vadd.f32 %v5603_v60, %v5285_v6 }
0x37c2   :  { %v5309_v34 = vadd.f32 %v5307_v47, %v5291_v56 }
0x37c3   :  { %v5308_v5 = vadd.f32 %v5300_v30, %v5286_v33 }
0x37c4   :  { %v5318_v35 = vsel %vm5310_vm4, %v5309_v34, -inf }
0x37c5   :  { %v5319_v38 = vrot.slane %v5318_v35, 4  ;;  %v5311_v36 = vsel %vm5310_vm4, %v5308_v5, -inf }
0x37c6   :  { %v5312_v41 = vrot.slane %v5311_v36, 4 }
0x37c7   :  { %v5320_v19 = vmax.f32 %v5318_v35, %v5319_v38 }
0x37c8   :  { %v5313_v43 = vmax.f32 %v5311_v36, %v5312_v41 }
0x37c9   :  { %v5321_v42 = vrot.slane %v5320_v19, 2 }
0x37ca   :  { %v5314_v44 = vrot.slane %v5313_v43, 2 }
0x37cb   :  { %v5322_v46 = vmax.f32 %v5320_v19, %v5321_v42 }
0x37cc   :  { %v5315_v48 = vmax.f32 %v5313_v43, %v5314_v44 }
0x37cd   :  { %v5323_v49 = vrot.slane %v5322_v46, 1 }
0x37ce   :  { %v5316_v52 = vrot.slane %v5315_v48, 1 }
0x37cf   :  { %v5324_v54 = vmax.f32 %v5322_v46, %v5323_v49 }
0x37d0   :  { %v5317_v59 = vmax.f32 %v5315_v48, %v5316_v52 }
0x37d1   :  { %v5326_v17 = vsub.f32 %v5309_v34, %v5324_v54 }
0x37d2   :  { %v5325_v61 = vsub.f32 %v5308_v5, %v5317_v59 }
0x37d3   :  { %v5329_v62 = vmul.f32 1.442695, %v5326_v17 }
0x37d4   :  { %v5327_v63 = vmul.f32 1.442695, %v5325_v61 }
0x37d5   :  { %6581 = vpow2.f32 %v5329_v62 }
0x37d6   :  { %6583 = vpow2.f32 %v5327_v63 }
0x37df   :  { %v6582_v1 = vpop.eup %6581 }
0x37e0   :  { %v6584_v10 = vpop.eup %6583  ;;  %v5338_v32 = vsel %vm5310_vm4, %v6582_v1, 0.0 }
0x37e1   :  { %v5339_v7 = vrot.slane %v5338_v32, 4  ;;  %v5331_v8 = vsel %vm5310_vm4, %v6584_v10, 0.0 }
0x37e2   :  { %v5332_v31 = vrot.slane %v5331_v8, 4 }
0x37e3   :  { %v5340_v15 = vadd.f32 %v5339_v7, %v5338_v32 }
0x37e4   :  { %v5333_v51 = vadd.f32 %v5332_v31, %v5331_v8 }
0x37e5   :  { %v5341_v57 = vrot.slane %v5340_v15, 2 }
0x37e6   :  { %v5334_v37 = vrot.slane %v5333_v51, 2 }
0x37e7   :  { %v5342_v20 = vadd.f32 %v5341_v57, %v5340_v15 }
0x37e8   :  { %v5335_v50 = vadd.f32 %v5334_v37, %v5333_v51 }
0x37e9   :  { %v5343_v2 = vrot.slane %v5342_v20, 1 }
0x37ea   :  { %v5336_v3 = vrot.slane %v5335_v50, 1 }
0x37eb   :  { %v5344_v55 = vadd.f32 %v5343_v2, %v5342_v20 }
0x37ec   :  { %v5337_v45 = vadd.f32 %v5336_v3, %v5335_v50 }
0x37ed   :  { %6585 = vrcp.f32 %v5344_v55 }
0x37ee   :  { %6587 = vrcp.f32 %v5337_v45 }
0x37f7   :  { %v6586_v53 = vpop.eup %6585 }
0x37f8   :  { %v6588_v39 = vpop.eup %6587  ;;  %v5348_v12 = vmul.f32 %v6586_v53, %v6582_v1 }
0x37f9   :  { %v5347_v13 = vmul.f32 %v6588_v39, %v6584_v10 }
0x37fa   :  { %5356 = vperm.xlu0 %6388, %v5348_v12  }
0x37fb   :  { %5351 = vperm.xlu1 %6387, %v5347_v13  }
0x3879   :  { %v5357_v24 = vpop.permute.xlu0 %5356 }
0x387a   :  { %v5360_v26 = vmul.f32 %v5357_v24, %v7683_v11  ;;  %v5352_v25 = vpop.permute.xlu1 %5351 }
0x387b   :  { %v5359_v27 = vmul.f32 %v5352_v25, %v7685_v40 }
0x387c   :  { %v5368_v28 = vsel %vm93_vm1, %v5360_v26, 0.0 }
0x387d   :  { %v5369_v29 = vrot.slane %v5368_v28, 4  ;;  %v5361_v4 = vsel %vm93_vm1, %v5359_v27, 0.0 }
0x387e   :  { %v5362_v9 = vrot.slane %v5361_v4, 4 }
0x387f   :  { %v5370_v58 = vadd.f32 %v5369_v29, %v5368_v28 }
0x3880   :  { %v5363_v60 = vadd.f32 %v5362_v9, %v5361_v4 }
0x3881   :  { %v5371_v0 = vrot.slane %v5370_v58, 2 }
0x3882   :  { %v5364_v47 = vrot.slane %v5363_v60, 2 }
0x3883   :  { %v5372_v56 = vadd.f32 %v5371_v0, %v5370_v58 }
0x3884   :  { %v5365_v6 = vadd.f32 %v5364_v47, %v5363_v60 }
0x3885   :  { %v5373_v30 = vrot.slane %v5372_v56, 1 }
0x3886   :  { %v5366_v33 = vrot.slane %v5365_v6, 1 }
0x3887   :  { %v5374_v34 = vadd.f32 %v5373_v30, %v5372_v56 }
0x3888   :  { %v5367_v5 = vadd.f32 %v5366_v33, %v5365_v6 }
0x388a   :  { %v5388_v11 = vsel %vm320_vm2, %v5374_v34, %v5367_v5 }
0x388b   :  { %6197 = vmatmul.mubr.msk.f32.vlgmr.msra.gmra.mrb[48].mxu0 %vm93_vm1, %v5388_v11 }
0x388c   :  { %6600 = shalt.err (!%p6597_p4)
}
0x388d   :  { %s6601_s2 = scalar_lea.hbm %s7789_s22, 256 }
0x388e   :  { %p6602_p5 = scmp.ne.s32.totalorder %s7789_s22, %s6601_s2  ;;  %p6605_p6 = scmp.lt.u32.totalorder %s6601_s2, %s7789_s22 }
0x3890   :  { %p6607_p7 = pnand %p6605_p6, %p6602_p5 }
0x3892   :  { %6610 = shalt.err (!%p6607_p7)
}
0x3893   :  { %s6657_s30 = smov 128   ;;  %v5606_v40 = vld [vmem:[%s7787_s20] ss:$0 sm:$0xff]  ;;  %s6658_s4 = smov [#allocation4]   ;;  %vm5461_vm1 = vcmask 517120  }
0x3894   :  { %5484 = dma.vmem_to_hbm [thread:$0]  %s5479_s15, 256, %s7789_s22, [#allocation7], %s6657_s30, %s6657_s30, %s7832_s1  }
0x3895   :  { %s5469_s18 = sshll.u32 %s6658_s4, 4  ;;  %s5470_s18 = int_to_ptr.vmem [resolvable:$true] %s5469_s18 }
0x3896   :  { %s6611_s26 = scalar_lea.vmem %s5470_s18, 32  ;;  %p6616_p9 = scmp.lt.s32.totalorder %s5470_s18, %s5470_s18 }
0x3897   :  { %p6612_p8 = scmp.ne.s32.totalorder %s5470_s18, %s6611_s26  ;;  %p6617_p10 = scmp.lt.s32.totalorder %s6611_s26, %s6611_s26 }
0x3899   :  { %p6618_p11 = por %p6617_p10, %p6616_p9 }
0x389b   :  { %p6619_p12 = pnand %p6618_p11, %p6612_p8 }
0x395e   :  { %v5457_v35 = vpop.f32.mrb[48].mxu0 }
0x395f   :  { %v5458_v38 = vadd.f32 %v5606_v40, %v5457_v35  ;;  %v6198_v36 = vpop.f32.mrb[49].mxu0 }
0x3961   :  { %5462 = vst.msk [vmem:[#allocation4] sm:$0x3] %vm5461_vm1, %v5458_v38 }
0x3962   :  { %6622 = shalt.err (!%p6619_p12)
}
0x3963   :  { %s6623_s10 = scalar_lea.hbm %s7788_s21, 32 }
0x3964   :  { %p6624_p13 = scmp.ne.s32.totalorder %s7788_s21, %s6623_s10  ;;  %p6627_p0 = scmp.lt.u32.totalorder %s6623_s10, %s7788_s21 }
0x3966   :  { %p6629_p1 = pnand %p6627_p0, %p6624_p13 }
0x3968   :  { %6632 = shalt.err (!%p6629_p1)
}
0x3969   :  { %5472 = dma.vmem_to_hbm [thread:$0]  %s5470_s18, 32, %s7788_s21, [#allocation5]  }
0x396a   :  { %6633 = dma.done.wait [#allocation5], 32  }
0x396b   :  { %6634 = vsyncadd [#allocation5], 4294967264 }
0x396c   :  { %6635 = dma.done.wait [#allocation7], 256  }
0x396d   :  { %6636 = vsyncadd [#allocation7], 4294967040 }
0x396e   :  { %5491 = vsyncpa [#allocation5], 1 }
0x396f   :  { %5492 = vsyncpa [#allocation7], 1 }

</bundles_post_ra>
